<compile_context>
chip_gen: v7x
topology: tpu7x:2x2x1
jax: 0.10.0
libtpu: 0.0.40
codegen_flags: <defaults>
</compile_context>

<pallas_src>
import jax
import jax.numpy as jnp
from jax.experimental import pallas as pl
from jax.experimental.pallas import tpu as pltpu


def _round_up(x, m):
    return ((x + m - 1) // m) * m


# ---------------------------------------------------------------------------
# Fused kernel factory: LSTM stack + FC head, built for a fixed static config.
# ---------------------------------------------------------------------------
def _make_fused_kernel(num_layers: int, T: int, BP: int, B: int, HP: int):
    def kernel(*refs):
        x_ref = refs[0]                                     # (T*BP, 2) f32
        lyr = refs[1:1 + 3 * num_layers]                    # per layer: wih, whh, bias
        (w1_ref, b1_ref, gamma_ref, beta_ref,
         w2_ref, b2_ref, o_ref) = refs[1 + 3 * num_layers:]

        f32 = jnp.float32
        bf16 = jnp.bfloat16

        # ---- Layer-0 input projection (K=2): VPU broadcast multiply-adds, hoisted
        # for all T steps; keeps the K=2 matmul off the MXU entirely. ----
        wih0 = lyr[0][...]                                  # (2, 4*HP) f32
        bias0 = lyr[2][...]                                 # (1, 4*HP) f32
        x = x_ref[...]                                      # (T*BP, 2) f32
        gx0 = x[:, 0:1] * wih0[0:1, :] + x[:, 1:2] * wih0[1:2, :] + bias0  # (T*BP, 4*HP)

        # Per-layer hidden / cell state as plain values (no scratch, no stores).
        h = [jnp.zeros((BP, HP), f32) for _ in range(num_layers)]
        c = [jnp.zeros((BP, HP), f32) for _ in range(num_layers)]

        # ---- Wavefront-interleaved, fully-unrolled recurrence ----
        # layer l step t is emitted right after layer l-1 step t, so the unrolled
        # dependency DAG has a critical path of ~T + num_layers - 1 steps.
        for t in range(T):
            for l in range(num_layers):
                if l == 0:
                    # gx0 slice: whole 8-row sublane tile (leading multiple of 8).
                    gates = gx0[t * BP:(t + 1) * BP, :] + jnp.dot(
                        h[0].astype(bf16), lyr[1][...], preferred_element_type=f32)
                else:
                    # Wavefront: layer-l input is layer-(l-1) output at the SAME t.
                    gates = (jnp.dot(h[l - 1].astype(bf16), lyr[3 * l][...],
                                     preferred_element_type=f32)
                             + jnp.dot(h[l].astype(bf16), lyr[3 * l + 1][...],
                                       preferred_element_type=f32)
                             + lyr[3 * l + 2][...])
                # Gate slices are whole 128-lane blocks (lane-padded layout):
                # padded lanes have pre-activation exactly 0, so h/c stay 0 there.
                i_g = jax.nn.sigmoid(gates[:, 0 * HP:1 * HP])
                f_g = jax.nn.sigmoid(gates[:, 1 * HP:2 * HP])
                g_g = jnp.tanh(gates[:, 2 * HP:3 * HP])
                o_g = jax.nn.sigmoid(gates[:, 3 * HP:4 * HP])
                c[l] = f_g * c[l] + i_g * g_g
                h[l] = o_g * jnp.tanh(c[l])

        # ---- FC head on the last layer's final hidden state:
        # Linear -> ReLU -> BatchNorm1d (training-mode stats over REAL rows) -> Linear.
        z = jnp.dot(h[-1].astype(bf16), w1_ref[...],
                    preferred_element_type=f32) + b1_ref[...]          # (BP, H)
        z = jnp.maximum(z, 0.0)
        row = jax.lax.broadcasted_iota(jnp.int32, (BP, 1), 0)
        mask = (row < B).astype(f32)                                   # zero out padded batch rows
        mean = jnp.sum(z * mask, axis=0, keepdims=True) * (1.0 / B)
        d = (z - mean) * mask
        var = jnp.sum(d * d, axis=0, keepdims=True) * (1.0 / B)
        zn = (z - mean) * jax.lax.rsqrt(var + 1e-5) * gamma_ref[...] + beta_ref[...]
        out = jnp.dot(zn.astype(bf16), w2_ref[...],
                      preferred_element_type=f32) + b2_ref[...]        # (BP, 2*output_size)
        o_ref[...] = out[:B, :].astype(o_ref.dtype)

    return kernel


# ---------------------------------------------------------------------------
# Full model wrapper: one pallas_call for the whole forward pass.
# ---------------------------------------------------------------------------
@jax.jit
def trajectory_baseline_forward(x, kparams):
    """x: (B, T, 2) batch-first, like the PyTorch module. kparams from pack_params().
    Returns (B, 2*output_size)."""
    B, T, _ = x.shape
    lstm = kparams["lstm"]
    fc = kparams["fc"]
    num_layers = len(lstm)
    HP = lstm[0]["whh"].shape[0]
    out_dim = fc["w2"].shape[1]
    BP = _round_up(max(B, 8), 8)

    # Time-major, batch zero-padded to a full sublane tile, flattened so every
    # per-step slice in the kernel is an aligned (8, 128)-tile slice.
    xt = jnp.transpose(x, (1, 0, 2)).astype(jnp.float32)         # (T, B, 2)
    if BP != B:
        xt = jnp.pad(xt, ((0, 0), (0, BP - B), (0, 0)))
    x_flat = xt.reshape(T * BP, 2)

    flat_inputs = [x_flat]
    for layer in lstm:
        flat_inputs += [layer["wih"], layer["whh"], layer["bias"]]
    flat_inputs += [fc["w1"], fc["b1"], fc["gamma"], fc["beta"], fc["w2"], fc["b2"]]

    vmem = pl.BlockSpec(memory_space=pltpu.MemorySpace.VMEM)
    return pl.pallas_call(
        _make_fused_kernel(num_layers, T, BP, B, HP),
        out_shape=jax.ShapeDtypeStruct((B, out_dim), jnp.float32),
        in_specs=[vmem] * len(flat_inputs),
        out_specs=vmem,
    )(*flat_inputs)


# ---------------------------------------------------------------------------
# One-time parameter repacking into the kernel layout (done ONCE, not per call):
#   * gates padded to 128-lane blocks: columns [g*128 : g*128+H] hold gate g,
#     contraction rows padded to 128 with zeros,
#   * b_ih + b_hh pre-summed,
#   * MXU operands cast to bf16; layer-0 input projection (VPU path) stays f32.
# ---------------------------------------------------------------------------
def pack_params(params):
    f32, bf16 = jnp.float32, jnp.bfloat16
    H = params["lstm"][0]["whh"].shape[0]
    HP = _round_up(max(H, 128), 128)
    G = 4 * HP
    packed = {"lstm": [], "fc": {}}
    for li, layer in enumerate(params["lstm"]):
        d_in = layer["wih"].shape[0]
        bias = (layer["bih"] + layer["bhh"]).astype(f32)        # (1, 4H) pre-summed
        wih_p = jnp.zeros((d_in if li == 0 else HP, G), f32)
        whh_p = jnp.zeros((HP, G), f32)
        bias_p = jnp.zeros((1, G), f32)
        for g in range(4):
            dst = slice(g * HP, g * HP + H)
            src = slice(g * H, (g + 1) * H)
            rows = slice(0, d_in) if li == 0 else slice(0, H)
            wih_p = wih_p.at[rows, dst].set(layer["wih"][:, src])
            whh_p = whh_p.at[0:H, dst].set(layer["whh"][:, src])
            bias_p = bias_p.at[:, dst].set(bias[:, src])
        packed["lstm"].append({
            "wih": wih_p if li == 0 else wih_p.astype(bf16),    # layer-0 proj stays f32 (VPU)
            "whh": whh_p.astype(bf16),
            "bias": bias_p,
        })
    fc = params["fc"]
    w1_p = jnp.zeros((HP, H), f32).at[0:H, :].set(fc["w1"]).astype(bf16)
    packed["fc"] = {
        "w1": w1_p,
        "b1": fc["b1"].astype(f32),
        "gamma": fc["gamma"].astype(f32),
        "beta": fc["beta"].astype(f32),
        "w2": fc["w2"].astype(bf16),
        "b2": fc["b2"].astype(f32),
    }
    return packed


# ---------------------------------------------------------------------------
# Deterministic parameter construction (PyTorch-style uniform init shapes).
# ---------------------------------------------------------------------------
def make_params(key, hidden_dim, lstm_layers, output_size):
    bound = 1.0 / jnp.sqrt(hidden_dim)
    params = {"lstm": [], "fc": {}}
    for layer in range(lstm_layers):
        d_in = 2 if layer == 0 else hidden_dim
        key, k1, k2, k3, k4 = jax.random.split(key, 5)
        params["lstm"].append({
            # stored pre-transposed: (D_in, 4H) / (H, 4H); biases as (1, 4H)
            "wih": jax.random.uniform(k1, (d_in, 4 * hidden_dim), jnp.float32, -bound, bound),
            "whh": jax.random.uniform(k2, (hidden_dim, 4 * hidden_dim), jnp.float32, -bound, bound),
            "bih": jax.random.uniform(k3, (1, 4 * hidden_dim), jnp.float32, -bound, bound),
            "bhh": jax.random.uniform(k4, (1, 4 * hidden_dim), jnp.float32, -bound, bound),
        })
    key, k1, k2, k3, k4 = jax.random.split(key, 5)
    params["fc"] = {
        "w1": jax.random.uniform(k1, (hidden_dim, hidden_dim), jnp.float32, -bound, bound),
        "b1": jax.random.uniform(k2, (1, hidden_dim), jnp.float32, -bound, bound),
        "gamma": jnp.ones((1, hidden_dim), jnp.float32),
        "beta": jnp.zeros((1, hidden_dim), jnp.float32),
        "w2": jax.random.uniform(k3, (hidden_dim, 2 * output_size), jnp.float32, -bound, bound),
        "b2": jax.random.uniform(k4, (1, 2 * output_size), jnp.float32, -bound, bound),
    }
    return params


# ---------------------------------------------------------------------------
# Pure-JAX reference mirroring the kernel numerics (f32 VPU layer-0 projection,
# bf16 MXU operands with f32 accumulation elsewhere).
# ---------------------------------------------------------------------------
def reference_forward(x, params):
    bf16, f32 = jnp.bfloat16, jnp.float32
    B, T, _ = x.shape
    seq = x.astype(f32)                                    # (B, T, D)
    for li, layer in enumerate(params["lstm"]):
        H = layer["whh"].shape[0]
        wih = layer["wih"]
        whh = layer["whh"].astype(bf16)
        bias = (layer["bih"] + layer["bhh"]).astype(f32)
        h = jnp.zeros((B, H), f32)
        c = jnp.zeros((B, H), f32)
        outs = []
        for t in range(T):
            xt = seq[:, t, :]
            if li == 0:
                gx = xt[:, 0:1] * wih[0:1, :] + xt[:, 1:2] * wih[1:2, :]   # f32 VPU mirror
            else:
                gx = jnp.dot(xt.astype(bf16), wih.astype(bf16), preferred_element_type=f32)
            gates = gx + jnp.dot(h.astype(bf16), whh, preferred_element_type=f32) + bias
            i_g = jax.nn.sigmoid(gates[:, 0:H])
            f_g = jax.nn.sigmoid(gates[:, H:2 * H])
            g_g = jnp.tanh(gates[:, 2 * H:3 * H])
            o_g = jax.nn.sigmoid(gates[:, 3 * H:4 * H])
            c = f_g * c + i_g * g_g
            h = o_g * jnp.tanh(c)
            outs.append(h)
        seq = jnp.stack(outs, axis=1)
    h_last = seq[:, -1, :]
    fc = params["fc"]
    z = jnp.maximum(jnp.dot(h_last.astype(bf16), fc["w1"].astype(bf16),
                            preferred_element_type=f32) + fc["b1"], 0.0)
    mean = jnp.mean(z, axis=0, keepdims=True)
    var = jnp.mean((z - mean) ** 2, axis=0, keepdims=True)
    zn = (z - mean) * jax.lax.rsqrt(var + 1e-5) * fc["gamma"] + fc["beta"]
    return jnp.dot(zn.astype(bf16), fc["w2"].astype(bf16),
                   preferred_element_type=f32) + fc["b2"]


if __name__ == "__main__":
    B, T = 2, 8
    hidden_dim = 32
    lstm_layers = 2
    output_size = 4
    # dropout = 0.0 -> no stochastic branch in forward.
    # TODO(synk): inter-layer LSTM dropout (>0, training mode) is not implemented.
    # TODO(synk): BatchNorm1d eval-mode running statistics are not implemented
    #             (training-mode batch statistics only, matching a fresh module).

    key = jax.random.PRNGKey(0)
    key, pkey, xkey = jax.random.split(key, 3)
    params = make_params(pkey, hidden_dim, lstm_layers, output_size)
    kparams = pack_params(params)       # one-time repack (bf16 / lane-padded / pre-summed bias)
    x = jax.random.normal(xkey, (B, T, 2), jnp.float32)  # (batch, seq, ball xy)

    out = jax.block_until_ready(trajectory_baseline_forward(x, kparams))
    ref = reference_forward(x, params)

    assert out.shape == (B, 2 * output_size)
    assert jnp.allclose(out, ref, atol=2e-3, rtol=2e-3), "mismatch vs pure-JAX reference"

    print("KERNEL_OK")
</pallas_src>

<mosaic_0001>
module attributes {stable_mosaic.version = 11 : i64} {
  func.func @kernel(%arg0: memref<64x2xf32, #tpu.memory_space<vmem>>, %arg1: memref<2x512xf32, #tpu.memory_space<vmem>>, %arg2: memref<128x512xbf16, #tpu.memory_space<vmem>>, %arg3: memref<1x512xf32, #tpu.memory_space<vmem>>, %arg4: memref<128x512xbf16, #tpu.memory_space<vmem>>, %arg5: memref<128x512xbf16, #tpu.memory_space<vmem>>, %arg6: memref<1x512xf32, #tpu.memory_space<vmem>>, %arg7: memref<128x32xbf16, #tpu.memory_space<vmem>>, %arg8: memref<1x32xf32, #tpu.memory_space<vmem>>, %arg9: memref<1x32xf32, #tpu.memory_space<vmem>>, %arg10: memref<1x32xf32, #tpu.memory_space<vmem>>, %arg11: memref<32x8xbf16, #tpu.memory_space<vmem>>, %arg12: memref<1x8xf32, #tpu.memory_space<vmem>>, %arg13: memref<2x8xf32, #tpu.memory_space<vmem>>) attributes {dimension_semantics = [], scalar_prefetch = 0 : i64, scratch_operands = 0 : i64, tpu.core_type = #tpu.core_type<tc>} {
    %c0 = arith.constant 0 : index
    %c0_0 = arith.constant 0 : index
    %0 = vector.load %arg1[%c0, %c0_0] : memref<2x512xf32, #tpu.memory_space<vmem>>, vector<2x512xf32>
    %c0_1 = arith.constant 0 : index
    %c0_2 = arith.constant 0 : index
    %1 = vector.load %arg3[%c0_1, %c0_2] : memref<1x512xf32, #tpu.memory_space<vmem>>, vector<1x512xf32>
    %c0_3 = arith.constant 0 : index
    %c0_4 = arith.constant 0 : index
    %2 = vector.load %arg0[%c0_3, %c0_4] : memref<64x2xf32, #tpu.memory_space<vmem>>, vector<64x2xf32>
    %3 = vector.extract_strided_slice %2 {offsets = [0, 0], sizes = [64, 1], strides = [1, 1]} : vector<64x2xf32> to vector<64x1xf32>
    %4 = vector.extract_strided_slice %0 {offsets = [0, 0], sizes = [1, 512], strides = [1, 1]} : vector<2x512xf32> to vector<1x512xf32>
    %5 = vector.broadcast %3 : vector<64x1xf32> to vector<64x512xf32>
    %6 = vector.broadcast %4 : vector<1x512xf32> to vector<64x512xf32>
    %7 = arith.mulf %5, %6 : vector<64x512xf32>
    %8 = vector.extract_strided_slice %2 {offsets = [0, 1], sizes = [64, 1], strides = [1, 1]} : vector<64x2xf32> to vector<64x1xf32>
    %9 = vector.extract_strided_slice %0 {offsets = [1, 0], sizes = [1, 512], strides = [1, 1]} : vector<2x512xf32> to vector<1x512xf32>
    %10 = vector.broadcast %8 : vector<64x1xf32> to vector<64x512xf32>
    %11 = vector.broadcast %9 : vector<1x512xf32> to vector<64x512xf32>
    %12 = arith.mulf %10, %11 : vector<64x512xf32>
    %13 = arith.addf %7, %12 : vector<64x512xf32>
    %14 = vector.broadcast %1 : vector<1x512xf32> to vector<64x512xf32>
    %15 = arith.addf %13, %14 : vector<64x512xf32>
    %cst = arith.constant 0.000000e+00 : f32
    %16 = vector.broadcast %cst : f32 to vector<8x128xf32>
    %cst_5 = arith.constant 0.000000e+00 : f32
    %17 = vector.broadcast %cst_5 : f32 to vector<8x128xf32>
    %cst_6 = arith.constant 0.000000e+00 : f32
    %18 = vector.broadcast %cst_6 : f32 to vector<8x128xf32>
    %cst_7 = arith.constant 0.000000e+00 : f32
    %19 = vector.broadcast %cst_7 : f32 to vector<8x128xf32>
    %20 = vector.extract_strided_slice %15 {offsets = [0, 0], sizes = [8, 512], strides = [1, 1]} : vector<64x512xf32> to vector<8x512xf32>
    %21 = arith.truncf %16 : vector<8x128xf32> to vector<8x128xbf16>
    %c0_8 = arith.constant 0 : index
    %c0_9 = arith.constant 0 : index
    %22 = vector.load %arg2[%c0_8, %c0_9] : memref<128x512xbf16, #tpu.memory_space<vmem>>, vector<128x512xbf16>
    %cst_10 = arith.constant dense<0.000000e+00> : vector<8x512xf32>
    %23 = tpu.matmul %21, %22, %cst_10 {dimension_numbers = #tpu.dot_dimension_numbers<[1], [0], [0], [1], [0, 0, 1, 1], [], []>} : vector<8x128xbf16>, vector<128x512xbf16>, vector<8x512xf32> -> vector<8x512xf32>
    %24 = arith.addf %20, %23 : vector<8x512xf32>
    %25 = vector.extract_strided_slice %24 {offsets = [0, 0], sizes = [8, 128], strides = [1, 1]} : vector<8x512xf32> to vector<8x128xf32>
    %26 = arith.negf %25 : vector<8x128xf32>
    %27 = math.exp %26 : vector<8x128xf32>
    %cst_11 = arith.constant 1.000000e+00 : f32
    %28 = vector.broadcast %cst_11 : f32 to vector<8x128xf32>
    %29 = arith.addf %28, %27 : vector<8x128xf32>
    %30 = arith.divf %28, %29 : vector<8x128xf32>
    %31 = vector.extract_strided_slice %24 {offsets = [0, 128], sizes = [8, 128], strides = [1, 1]} : vector<8x512xf32> to vector<8x128xf32>
    %32 = arith.negf %31 : vector<8x128xf32>
    %33 = math.exp %32 : vector<8x128xf32>
    %cst_12 = arith.constant 1.000000e+00 : f32
    %34 = vector.broadcast %cst_12 : f32 to vector<8x128xf32>
    %35 = arith.addf %34, %33 : vector<8x128xf32>
    %36 = arith.divf %34, %35 : vector<8x128xf32>
    %37 = vector.extract_strided_slice %24 {offsets = [0, 256], sizes = [8, 128], strides = [1, 1]} : vector<8x512xf32> to vector<8x128xf32>
    %38 = math.tanh %37 : vector<8x128xf32>
    %39 = vector.extract_strided_slice %24 {offsets = [0, 384], sizes = [8, 128], strides = [1, 1]} : vector<8x512xf32> to vector<8x128xf32>
    %40 = arith.negf %39 : vector<8x128xf32>
    %41 = math.exp %40 : vector<8x128xf32>
    %cst_13 = arith.constant 1.000000e+00 : f32
    %42 = vector.broadcast %cst_13 : f32 to vector<8x128xf32>
    %43 = arith.addf %42, %41 : vector<8x128xf32>
    %44 = arith.divf %42, %43 : vector<8x128xf32>
    %45 = arith.mulf %36, %18 : vector<8x128xf32>
    %46 = arith.mulf %30, %38 : vector<8x128xf32>
    %47 = arith.addf %45, %46 : vector<8x128xf32>
    %48 = math.tanh %47 : vector<8x128xf32>
    %49 = arith.mulf %44, %48 : vector<8x128xf32>
    %50 = arith.truncf %49 : vector<8x128xf32> to vector<8x128xbf16>
    %c0_14 = arith.constant 0 : index
    %c0_15 = arith.constant 0 : index
    %51 = vector.load %arg4[%c0_14, %c0_15] : memref<128x512xbf16, #tpu.memory_space<vmem>>, vector<128x512xbf16>
    %cst_16 = arith.constant dense<0.000000e+00> : vector<8x512xf32>
    %52 = tpu.matmul %50, %51, %cst_16 {dimension_numbers = #tpu.dot_dimension_numbers<[1], [0], [0], [1], [0, 0, 1, 1], [], []>} : vector<8x128xbf16>, vector<128x512xbf16>, vector<8x512xf32> -> vector<8x512xf32>
    %53 = arith.truncf %17 : vector<8x128xf32> to vector<8x128xbf16>
    %c0_17 = arith.constant 0 : index
    %c0_18 = arith.constant 0 : index
    %54 = vector.load %arg5[%c0_17, %c0_18] : memref<128x512xbf16, #tpu.memory_space<vmem>>, vector<128x512xbf16>
    %cst_19 = arith.constant dense<0.000000e+00> : vector<8x512xf32>
    %55 = tpu.matmul %53, %54, %cst_19 {dimension_numbers = #tpu.dot_dimension_numbers<[1], [0], [0], [1], [0, 0, 1, 1], [], []>} : vector<8x128xbf16>, vector<128x512xbf16>, vector<8x512xf32> -> vector<8x512xf32>
    %56 = arith.addf %52, %55 : vector<8x512xf32>
    %c0_20 = arith.constant 0 : index
    %c0_21 = arith.constant 0 : index
    %57 = vector.load %arg6[%c0_20, %c0_21] : memref<1x512xf32, #tpu.memory_space<vmem>>, vector<1x512xf32>
    %58 = vector.broadcast %57 : vector<1x512xf32> to vector<8x512xf32>
    %59 = arith.addf %56, %58 : vector<8x512xf32>
    %60 = vector.extract_strided_slice %59 {offsets = [0, 0], sizes = [8, 128], strides = [1, 1]} : vector<8x512xf32> to vector<8x128xf32>
    %61 = arith.negf %60 : vector<8x128xf32>
    %62 = math.exp %61 : vector<8x128xf32>
    %cst_22 = arith.constant 1.000000e+00 : f32
    %63 = vector.broadcast %cst_22 : f32 to vector<8x128xf32>
    %64 = arith.addf %63, %62 : vector<8x128xf32>
    %65 = arith.divf %63, %64 : vector<8x128xf32>
    %66 = vector.extract_strided_slice %59 {offsets = [0, 128], sizes = [8, 128], strides = [1, 1]} : vector<8x512xf32> to vector<8x128xf32>
    %67 = arith.negf %66 : vector<8x128xf32>
    %68 = math.exp %67 : vector<8x128xf32>
    %cst_23 = arith.constant 1.000000e+00 : f32
    %69 = vector.broadcast %cst_23 : f32 to vector<8x128xf32>
    %70 = arith.addf %69, %68 : vector<8x128xf32>
    %71 = arith.divf %69, %70 : vector<8x128xf32>
    %72 = vector.extract_strided_slice %59 {offsets = [0, 256], sizes = [8, 128], strides = [1, 1]} : vector<8x512xf32> to vector<8x128xf32>
    %73 = math.tanh %72 : vector<8x128xf32>
    %74 = vector.extract_strided_slice %59 {offsets = [0, 384], sizes = [8, 128], strides = [1, 1]} : vector<8x512xf32> to vector<8x128xf32>
    %75 = arith.negf %74 : vector<8x128xf32>
    %76 = math.exp %75 : vector<8x128xf32>
    %cst_24 = arith.constant 1.000000e+00 : f32
    %77 = vector.broadcast %cst_24 : f32 to vector<8x128xf32>
    %78 = arith.addf %77, %76 : vector<8x128xf32>
    %79 = arith.divf %77, %78 : vector<8x128xf32>
    %80 = arith.mulf %71, %19 : vector<8x128xf32>
    %81 = arith.mulf %65, %73 : vector<8x128xf32>
    %82 = arith.addf %80, %81 : vector<8x128xf32>
    %83 = math.tanh %82 : vector<8x128xf32>
    %84 = arith.mulf %79, %83 : vector<8x128xf32>
    %85 = vector.extract_strided_slice %15 {offsets = [8, 0], sizes = [8, 512], strides = [1, 1]} : vector<64x512xf32> to vector<8x512xf32>
    %86 = arith.truncf %49 : vector<8x128xf32> to vector<8x128xbf16>
    %c0_25 = arith.constant 0 : index
    %c0_26 = arith.constant 0 : index
    %87 = vector.load %arg2[%c0_25, %c0_26] : memref<128x512xbf16, #tpu.memory_space<vmem>>, vector<128x512xbf16>
    %cst_27 = arith.constant dense<0.000000e+00> : vector<8x512xf32>
    %88 = tpu.matmul %86, %87, %cst_27 {dimension_numbers = #tpu.dot_dimension_numbers<[1], [0], [0], [1], [0, 0, 1, 1], [], []>} : vector<8x128xbf16>, vector<128x512xbf16>, vector<8x512xf32> -> vector<8x512xf32>
    %89 = arith.addf %85, %88 : vector<8x512xf32>
    %90 = vector.extract_strided_slice %89 {offsets = [0, 0], sizes = [8, 128], strides = [1, 1]} : vector<8x512xf32> to vector<8x128xf32>
    %91 = arith.negf %90 : vector<8x128xf32>
    %92 = math.exp %91 : vector<8x128xf32>
    %cst_28 = arith.constant 1.000000e+00 : f32
    %93 = vector.broadcast %cst_28 : f32 to vector<8x128xf32>
    %94 = arith.addf %93, %92 : vector<8x128xf32>
    %95 = arith.divf %93, %94 : vector<8x128xf32>
    %96 = vector.extract_strided_slice %89 {offsets = [0, 128], sizes = [8, 128], strides = [1, 1]} : vector<8x512xf32> to vector<8x128xf32>
    %97 = arith.negf %96 : vector<8x128xf32>
    %98 = math.exp %97 : vector<8x128xf32>
    %cst_29 = arith.constant 1.000000e+00 : f32
    %99 = vector.broadcast %cst_29 : f32 to vector<8x128xf32>
    %100 = arith.addf %99, %98 : vector<8x128xf32>
    %101 = arith.divf %99, %100 : vector<8x128xf32>
    %102 = vector.extract_strided_slice %89 {offsets = [0, 256], sizes = [8, 128], strides = [1, 1]} : vector<8x512xf32> to vector<8x128xf32>
    %103 = math.tanh %102 : vector<8x128xf32>
    %104 = vector.extract_strided_slice %89 {offsets = [0, 384], sizes = [8, 128], strides = [1, 1]} : vector<8x512xf32> to vector<8x128xf32>
    %105 = arith.negf %104 : vector<8x128xf32>
    %106 = math.exp %105 : vector<8x128xf32>
    %cst_30 = arith.constant 1.000000e+00 : f32
    %107 = vector.broadcast %cst_30 : f32 to vector<8x128xf32>
    %108 = arith.addf %107, %106 : vector<8x128xf32>
    %109 = arith.divf %107, %108 : vector<8x128xf32>
    %110 = arith.mulf %101, %47 : vector<8x128xf32>
    %111 = arith.mulf %95, %103 : vector<8x128xf32>
    %112 = arith.addf %110, %111 : vector<8x128xf32>
    %113 = math.tanh %112 : vector<8x128xf32>
    %114 = arith.mulf %109, %113 : vector<8x128xf32>
    %115 = arith.truncf %114 : vector<8x128xf32> to vector<8x128xbf16>
    %c0_31 = arith.constant 0 : index
    %c0_32 = arith.constant 0 : index
    %116 = vector.load %arg4[%c0_31, %c0_32] : memref<128x512xbf16, #tpu.memory_space<vmem>>, vector<128x512xbf16>
    %cst_33 = arith.constant dense<0.000000e+00> : vector<8x512xf32>
    %117 = tpu.matmul %115, %116, %cst_33 {dimension_numbers = #tpu.dot_dimension_numbers<[1], [0], [0], [1], [0, 0, 1, 1], [], []>} : vector<8x128xbf16>, vector<128x512xbf16>, vector<8x512xf32> -> vector<8x512xf32>
    %118 = arith.truncf %84 : vector<8x128xf32> to vector<8x128xbf16>
    %c0_34 = arith.constant 0 : index
    %c0_35 = arith.constant 0 : index
    %119 = vector.load %arg5[%c0_34, %c0_35] : memref<128x512xbf16, #tpu.memory_space<vmem>>, vector<128x512xbf16>
    %cst_36 = arith.constant dense<0.000000e+00> : vector<8x512xf32>
    %120 = tpu.matmul %118, %119, %cst_36 {dimension_numbers = #tpu.dot_dimension_numbers<[1], [0], [0], [1], [0, 0, 1, 1], [], []>} : vector<8x128xbf16>, vector<128x512xbf16>, vector<8x512xf32> -> vector<8x512xf32>
    %121 = arith.addf %117, %120 : vector<8x512xf32>
    %c0_37 = arith.constant 0 : index
    %c0_38 = arith.constant 0 : index
    %122 = vector.load %arg6[%c0_37, %c0_38] : memref<1x512xf32, #tpu.memory_space<vmem>>, vector<1x512xf32>
    %123 = vector.broadcast %122 : vector<1x512xf32> to vector<8x512xf32>
    %124 = arith.addf %121, %123 : vector<8x512xf32>
    %125 = vector.extract_strided_slice %124 {offsets = [0, 0], sizes = [8, 128], strides = [1, 1]} : vector<8x512xf32> to vector<8x128xf32>
    %126 = arith.negf %125 : vector<8x128xf32>
    %127 = math.exp %126 : vector<8x128xf32>
    %cst_39 = arith.constant 1.000000e+00 : f32
    %128 = vector.broadcast %cst_39 : f32 to vector<8x128xf32>
    %129 = arith.addf %128, %127 : vector<8x128xf32>
    %130 = arith.divf %128, %129 : vector<8x128xf32>
    %131 = vector.extract_strided_slice %124 {offsets = [0, 128], sizes = [8, 128], strides = [1, 1]} : vector<8x512xf32> to vector<8x128xf32>
    %132 = arith.negf %131 : vector<8x128xf32>
    %133 = math.exp %132 : vector<8x128xf32>
    %cst_40 = arith.constant 1.000000e+00 : f32
    %134 = vector.broadcast %cst_40 : f32 to vector<8x128xf32>
    %135 = arith.addf %134, %133 : vector<8x128xf32>
    %136 = arith.divf %134, %135 : vector<8x128xf32>
    %137 = vector.extract_strided_slice %124 {offsets = [0, 256], sizes = [8, 128], strides = [1, 1]} : vector<8x512xf32> to vector<8x128xf32>
    %138 = math.tanh %137 : vector<8x128xf32>
    %139 = vector.extract_strided_slice %124 {offsets = [0, 384], sizes = [8, 128], strides = [1, 1]} : vector<8x512xf32> to vector<8x128xf32>
    %140 = arith.negf %139 : vector<8x128xf32>
    %141 = math.exp %140 : vector<8x128xf32>
    %cst_41 = arith.constant 1.000000e+00 : f32
    %142 = vector.broadcast %cst_41 : f32 to vector<8x128xf32>
    %143 = arith.addf %142, %141 : vector<8x128xf32>
    %144 = arith.divf %142, %143 : vector<8x128xf32>
    %145 = arith.mulf %136, %82 : vector<8x128xf32>
    %146 = arith.mulf %130, %138 : vector<8x128xf32>
    %147 = arith.addf %145, %146 : vector<8x128xf32>
    %148 = math.tanh %147 : vector<8x128xf32>
    %149 = arith.mulf %144, %148 : vector<8x128xf32>
    %150 = vector.extract_strided_slice %15 {offsets = [16, 0], sizes = [8, 512], strides = [1, 1]} : vector<64x512xf32> to vector<8x512xf32>
    %151 = arith.truncf %114 : vector<8x128xf32> to vector<8x128xbf16>
    %c0_42 = arith.constant 0 : index
    %c0_43 = arith.constant 0 : index
    %152 = vector.load %arg2[%c0_42, %c0_43] : memref<128x512xbf16, #tpu.memory_space<vmem>>, vector<128x512xbf16>
    %cst_44 = arith.constant dense<0.000000e+00> : vector<8x512xf32>
    %153 = tpu.matmul %151, %152, %cst_44 {dimension_numbers = #tpu.dot_dimension_numbers<[1], [0], [0], [1], [0, 0, 1, 1], [], []>} : vector<8x128xbf16>, vector<128x512xbf16>, vector<8x512xf32> -> vector<8x512xf32>
    %154 = arith.addf %150, %153 : vector<8x512xf32>
    %155 = vector.extract_strided_slice %154 {offsets = [0, 0], sizes = [8, 128], strides = [1, 1]} : vector<8x512xf32> to vector<8x128xf32>
    %156 = arith.negf %155 : vector<8x128xf32>
    %157 = math.exp %156 : vector<8x128xf32>
    %cst_45 = arith.constant 1.000000e+00 : f32
    %158 = vector.broadcast %cst_45 : f32 to vector<8x128xf32>
    %159 = arith.addf %158, %157 : vector<8x128xf32>
    %160 = arith.divf %158, %159 : vector<8x128xf32>
    %161 = vector.extract_strided_slice %154 {offsets = [0, 128], sizes = [8, 128], strides = [1, 1]} : vector<8x512xf32> to vector<8x128xf32>
    %162 = arith.negf %161 : vector<8x128xf32>
    %163 = math.exp %162 : vector<8x128xf32>
    %cst_46 = arith.constant 1.000000e+00 : f32
    %164 = vector.broadcast %cst_46 : f32 to vector<8x128xf32>
    %165 = arith.addf %164, %163 : vector<8x128xf32>
    %166 = arith.divf %164, %165 : vector<8x128xf32>
    %167 = vector.extract_strided_slice %154 {offsets = [0, 256], sizes = [8, 128], strides = [1, 1]} : vector<8x512xf32> to vector<8x128xf32>
    %168 = math.tanh %167 : vector<8x128xf32>
    %169 = vector.extract_strided_slice %154 {offsets = [0, 384], sizes = [8, 128], strides = [1, 1]} : vector<8x512xf32> to vector<8x128xf32>
    %170 = arith.negf %169 : vector<8x128xf32>
    %171 = math.exp %170 : vector<8x128xf32>
    %cst_47 = arith.constant 1.000000e+00 : f32
    %172 = vector.broadcast %cst_47 : f32 to vector<8x128xf32>
    %173 = arith.addf %172, %171 : vector<8x128xf32>
    %174 = arith.divf %172, %173 : vector<8x128xf32>
    %175 = arith.mulf %166, %112 : vector<8x128xf32>
    %176 = arith.mulf %160, %168 : vector<8x128xf32>
    %177 = arith.addf %175, %176 : vector<8x128xf32>
    %178 = math.tanh %177 : vector<8x128xf32>
    %179 = arith.mulf %174, %178 : vector<8x128xf32>
    %180 = arith.truncf %179 : vector<8x128xf32> to vector<8x128xbf16>
    %c0_48 = arith.constant 0 : index
    %c0_49 = arith.constant 0 : index
    %181 = vector.load %arg4[%c0_48, %c0_49] : memref<128x512xbf16, #tpu.memory_space<vmem>>, vector<128x512xbf16>
    %cst_50 = arith.constant dense<0.000000e+00> : vector<8x512xf32>
    %182 = tpu.matmul %180, %181, %cst_50 {dimension_numbers = #tpu.dot_dimension_numbers<[1], [0], [0], [1], [0, 0, 1, 1], [], []>} : vector<8x128xbf16>, vector<128x512xbf16>, vector<8x512xf32> -> vector<8x512xf32>
    %183 = arith.truncf %149 : vector<8x128xf32> to vector<8x128xbf16>
    %c0_51 = arith.constant 0 : index
    %c0_52 = arith.constant 0 : index
    %184 = vector.load %arg5[%c0_51, %c0_52] : memref<128x512xbf16, #tpu.memory_space<vmem>>, vector<128x512xbf16>
    %cst_53 = arith.constant dense<0.000000e+00> : vector<8x512xf32>
    %185 = tpu.matmul %183, %184, %cst_53 {dimension_numbers = #tpu.dot_dimension_numbers<[1], [0], [0], [1], [0, 0, 1, 1], [], []>} : vector<8x128xbf16>, vector<128x512xbf16>, vector<8x512xf32> -> vector<8x512xf32>
    %186 = arith.addf %182, %185 : vector<8x512xf32>
    %c0_54 = arith.constant 0 : index
    %c0_55 = arith.constant 0 : index
    %187 = vector.load %arg6[%c0_54, %c0_55] : memref<1x512xf32, #tpu.memory_space<vmem>>, vector<1x512xf32>
    %188 = vector.broadcast %187 : vector<1x512xf32> to vector<8x512xf32>
    %189 = arith.addf %186, %188 : vector<8x512xf32>
    %190 = vector.extract_strided_slice %189 {offsets = [0, 0], sizes = [8, 128], strides = [1, 1]} : vector<8x512xf32> to vector<8x128xf32>
    %191 = arith.negf %190 : vector<8x128xf32>
    %192 = math.exp %191 : vector<8x128xf32>
    %cst_56 = arith.constant 1.000000e+00 : f32
    %193 = vector.broadcast %cst_56 : f32 to vector<8x128xf32>
    %194 = arith.addf %193, %192 : vector<8x128xf32>
    %195 = arith.divf %193, %194 : vector<8x128xf32>
    %196 = vector.extract_strided_slice %189 {offsets = [0, 128], sizes = [8, 128], strides = [1, 1]} : vector<8x512xf32> to vector<8x128xf32>
    %197 = arith.negf %196 : vector<8x128xf32>
    %198 = math.exp %197 : vector<8x128xf32>
    %cst_57 = arith.constant 1.000000e+00 : f32
    %199 = vector.broadcast %cst_57 : f32 to vector<8x128xf32>
    %200 = arith.addf %199, %198 : vector<8x128xf32>
    %201 = arith.divf %199, %200 : vector<8x128xf32>
    %202 = vector.extract_strided_slice %189 {offsets = [0, 256], sizes = [8, 128], strides = [1, 1]} : vector<8x512xf32> to vector<8x128xf32>
    %203 = math.tanh %202 : vector<8x128xf32>
    %204 = vector.extract_strided_slice %189 {offsets = [0, 384], sizes = [8, 128], strides = [1, 1]} : vector<8x512xf32> to vector<8x128xf32>
    %205 = arith.negf %204 : vector<8x128xf32>
    %206 = math.exp %205 : vector<8x128xf32>
    %cst_58 = arith.constant 1.000000e+00 : f32
    %207 = vector.broadcast %cst_58 : f32 to vector<8x128xf32>
    %208 = arith.addf %207, %206 : vector<8x128xf32>
    %209 = arith.divf %207, %208 : vector<8x128xf32>
    %210 = arith.mulf %201, %147 : vector<8x128xf32>
    %211 = arith.mulf %195, %203 : vector<8x128xf32>
    %212 = arith.addf %210, %211 : vector<8x128xf32>
    %213 = math.tanh %212 : vector<8x128xf32>
    %214 = arith.mulf %209, %213 : vector<8x128xf32>
    %215 = vector.extract_strided_slice %15 {offsets = [24, 0], sizes = [8, 512], strides = [1, 1]} : vector<64x512xf32> to vector<8x512xf32>
    %216 = arith.truncf %179 : vector<8x128xf32> to vector<8x128xbf16>
    %c0_59 = arith.constant 0 : index
    %c0_60 = arith.constant 0 : index
    %217 = vector.load %arg2[%c0_59, %c0_60] : memref<128x512xbf16, #tpu.memory_space<vmem>>, vector<128x512xbf16>
    %cst_61 = arith.constant dense<0.000000e+00> : vector<8x512xf32>
    %218 = tpu.matmul %216, %217, %cst_61 {dimension_numbers = #tpu.dot_dimension_numbers<[1], [0], [0], [1], [0, 0, 1, 1], [], []>} : vector<8x128xbf16>, vector<128x512xbf16>, vector<8x512xf32> -> vector<8x512xf32>
    %219 = arith.addf %215, %218 : vector<8x512xf32>
    %220 = vector.extract_strided_slice %219 {offsets = [0, 0], sizes = [8, 128], strides = [1, 1]} : vector<8x512xf32> to vector<8x128xf32>
    %221 = arith.negf %220 : vector<8x128xf32>
    %222 = math.exp %221 : vector<8x128xf32>
    %cst_62 = arith.constant 1.000000e+00 : f32
    %223 = vector.broadcast %cst_62 : f32 to vector<8x128xf32>
    %224 = arith.addf %223, %222 : vector<8x128xf32>
    %225 = arith.divf %223, %224 : vector<8x128xf32>
    %226 = vector.extract_strided_slice %219 {offsets = [0, 128], sizes = [8, 128], strides = [1, 1]} : vector<8x512xf32> to vector<8x128xf32>
    %227 = arith.negf %226 : vector<8x128xf32>
    %228 = math.exp %227 : vector<8x128xf32>
    %cst_63 = arith.constant 1.000000e+00 : f32
    %229 = vector.broadcast %cst_63 : f32 to vector<8x128xf32>
    %230 = arith.addf %229, %228 : vector<8x128xf32>
    %231 = arith.divf %229, %230 : vector<8x128xf32>
    %232 = vector.extract_strided_slice %219 {offsets = [0, 256], sizes = [8, 128], strides = [1, 1]} : vector<8x512xf32> to vector<8x128xf32>
    %233 = math.tanh %232 : vector<8x128xf32>
    %234 = vector.extract_strided_slice %219 {offsets = [0, 384], sizes = [8, 128], strides = [1, 1]} : vector<8x512xf32> to vector<8x128xf32>
    %235 = arith.negf %234 : vector<8x128xf32>
    %236 = math.exp %235 : vector<8x128xf32>
    %cst_64 = arith.constant 1.000000e+00 : f32
    %237 = vector.broadcast %cst_64 : f32 to vector<8x128xf32>
    %238 = arith.addf %237, %236 : vector<8x128xf32>
    %239 = arith.divf %237, %238 : vector<8x128xf32>
    %240 = arith.mulf %231, %177 : vector<8x128xf32>
    %241 = arith.mulf %225, %233 : vector<8x128xf32>
    %242 = arith.addf %240, %241 : vector<8x128xf32>
    %243 = math.tanh %242 : vector<8x128xf32>
    %244 = arith.mulf %239, %243 : vector<8x128xf32>
    %245 = arith.truncf %244 : vector<8x128xf32> to vector<8x128xbf16>
    %c0_65 = arith.constant 0 : index
    %c0_66 = arith.constant 0 : index
    %246 = vector.load %arg4[%c0_65, %c0_66] : memref<128x512xbf16, #tpu.memory_space<vmem>>, vector<128x512xbf16>
    %cst_67 = arith.constant dense<0.000000e+00> : vector<8x512xf32>
    %247 = tpu.matmul %245, %246, %cst_67 {dimension_numbers = #tpu.dot_dimension_numbers<[1], [0], [0], [1], [0, 0, 1, 1], [], []>} : vector<8x128xbf16>, vector<128x512xbf16>, vector<8x512xf32> -> vector<8x512xf32>
    %248 = arith.truncf %214 : vector<8x128xf32> to vector<8x128xbf16>
    %c0_68 = arith.constant 0 : index
    %c0_69 = arith.constant 0 : index
    %249 = vector.load %arg5[%c0_68, %c0_69] : memref<128x512xbf16, #tpu.memory_space<vmem>>, vector<128x512xbf16>
    %cst_70 = arith.constant dense<0.000000e+00> : vector<8x512xf32>
    %250 = tpu.matmul %248, %249, %cst_70 {dimension_numbers = #tpu.dot_dimension_numbers<[1], [0], [0], [1], [0, 0, 1, 1], [], []>} : vector<8x128xbf16>, vector<128x512xbf16>, vector<8x512xf32> -> vector<8x512xf32>
    %251 = arith.addf %247, %250 : vector<8x512xf32>
    %c0_71 = arith.constant 0 : index
    %c0_72 = arith.constant 0 : index
    %252 = vector.load %arg6[%c0_71, %c0_72] : memref<1x512xf32, #tpu.memory_space<vmem>>, vector<1x512xf32>
    %253 = vector.broadcast %252 : vector<1x512xf32> to vector<8x512xf32>
    %254 = arith.addf %251, %253 : vector<8x512xf32>
    %255 = vector.extract_strided_slice %254 {offsets = [0, 0], sizes = [8, 128], strides = [1, 1]} : vector<8x512xf32> to vector<8x128xf32>
    %256 = arith.negf %255 : vector<8x128xf32>
    %257 = math.exp %256 : vector<8x128xf32>
    %cst_73 = arith.constant 1.000000e+00 : f32
    %258 = vector.broadcast %cst_73 : f32 to vector<8x128xf32>
    %259 = arith.addf %258, %257 : vector<8x128xf32>
    %260 = arith.divf %258, %259 : vector<8x128xf32>
    %261 = vector.extract_strided_slice %254 {offsets = [0, 128], sizes = [8, 128], strides = [1, 1]} : vector<8x512xf32> to vector<8x128xf32>
    %262 = arith.negf %261 : vector<8x128xf32>
    %263 = math.exp %262 : vector<8x128xf32>
    %cst_74 = arith.constant 1.000000e+00 : f32
    %264 = vector.broadcast %cst_74 : f32 to vector<8x128xf32>
    %265 = arith.addf %264, %263 : vector<8x128xf32>
    %266 = arith.divf %264, %265 : vector<8x128xf32>
    %267 = vector.extract_strided_slice %254 {offsets = [0, 256], sizes = [8, 128], strides = [1, 1]} : vector<8x512xf32> to vector<8x128xf32>
    %268 = math.tanh %267 : vector<8x128xf32>
    %269 = vector.extract_strided_slice %254 {offsets = [0, 384], sizes = [8, 128], strides = [1, 1]} : vector<8x512xf32> to vector<8x128xf32>
    %270 = arith.negf %269 : vector<8x128xf32>
    %271 = math.exp %270 : vector<8x128xf32>
    %cst_75 = arith.constant 1.000000e+00 : f32
    %272 = vector.broadcast %cst_75 : f32 to vector<8x128xf32>
    %273 = arith.addf %272, %271 : vector<8x128xf32>
    %274 = arith.divf %272, %273 : vector<8x128xf32>
    %275 = arith.mulf %266, %212 : vector<8x128xf32>
    %276 = arith.mulf %260, %268 : vector<8x128xf32>
    %277 = arith.addf %275, %276 : vector<8x128xf32>
    %278 = math.tanh %277 : vector<8x128xf32>
    %279 = arith.mulf %274, %278 : vector<8x128xf32>
    %280 = vector.extract_strided_slice %15 {offsets = [32, 0], sizes = [8, 512], strides = [1, 1]} : vector<64x512xf32> to vector<8x512xf32>
    %281 = arith.truncf %244 : vector<8x128xf32> to vector<8x128xbf16>
    %c0_76 = arith.constant 0 : index
    %c0_77 = arith.constant 0 : index
    %282 = vector.load %arg2[%c0_76, %c0_77] : memref<128x512xbf16, #tpu.memory_space<vmem>>, vector<128x512xbf16>
    %cst_78 = arith.constant dense<0.000000e+00> : vector<8x512xf32>
    %283 = tpu.matmul %281, %282, %cst_78 {dimension_numbers = #tpu.dot_dimension_numbers<[1], [0], [0], [1], [0, 0, 1, 1], [], []>} : vector<8x128xbf16>, vector<128x512xbf16>, vector<8x512xf32> -> vector<8x512xf32>
    %284 = arith.addf %280, %283 : vector<8x512xf32>
    %285 = vector.extract_strided_slice %284 {offsets = [0, 0], sizes = [8, 128], strides = [1, 1]} : vector<8x512xf32> to vector<8x128xf32>
    %286 = arith.negf %285 : vector<8x128xf32>
    %287 = math.exp %286 : vector<8x128xf32>
    %cst_79 = arith.constant 1.000000e+00 : f32
    %288 = vector.broadcast %cst_79 : f32 to vector<8x128xf32>
    %289 = arith.addf %288, %287 : vector<8x128xf32>
    %290 = arith.divf %288, %289 : vector<8x128xf32>
    %291 = vector.extract_strided_slice %284 {offsets = [0, 128], sizes = [8, 128], strides = [1, 1]} : vector<8x512xf32> to vector<8x128xf32>
    %292 = arith.negf %291 : vector<8x128xf32>
    %293 = math.exp %292 : vector<8x128xf32>
    %cst_80 = arith.constant 1.000000e+00 : f32
    %294 = vector.broadcast %cst_80 : f32 to vector<8x128xf32>
    %295 = arith.addf %294, %293 : vector<8x128xf32>
    %296 = arith.divf %294, %295 : vector<8x128xf32>
    %297 = vector.extract_strided_slice %284 {offsets = [0, 256], sizes = [8, 128], strides = [1, 1]} : vector<8x512xf32> to vector<8x128xf32>
    %298 = math.tanh %297 : vector<8x128xf32>
    %299 = vector.extract_strided_slice %284 {offsets = [0, 384], sizes = [8, 128], strides = [1, 1]} : vector<8x512xf32> to vector<8x128xf32>
    %300 = arith.negf %299 : vector<8x128xf32>
    %301 = math.exp %300 : vector<8x128xf32>
    %cst_81 = arith.constant 1.000000e+00 : f32
    %302 = vector.broadcast %cst_81 : f32 to vector<8x128xf32>
    %303 = arith.addf %302, %301 : vector<8x128xf32>
    %304 = arith.divf %302, %303 : vector<8x128xf32>
    %305 = arith.mulf %296, %242 : vector<8x128xf32>
    %306 = arith.mulf %290, %298 : vector<8x128xf32>
    %307 = arith.addf %305, %306 : vector<8x128xf32>
    %308 = math.tanh %307 : vector<8x128xf32>
    %309 = arith.mulf %304, %308 : vector<8x128xf32>
    %310 = arith.truncf %309 : vector<8x128xf32> to vector<8x128xbf16>
    %c0_82 = arith.constant 0 : index
    %c0_83 = arith.constant 0 : index
    %311 = vector.load %arg4[%c0_82, %c0_83] : memref<128x512xbf16, #tpu.memory_space<vmem>>, vector<128x512xbf16>
    %cst_84 = arith.constant dense<0.000000e+00> : vector<8x512xf32>
    %312 = tpu.matmul %310, %311, %cst_84 {dimension_numbers = #tpu.dot_dimension_numbers<[1], [0], [0], [1], [0, 0, 1, 1], [], []>} : vector<8x128xbf16>, vector<128x512xbf16>, vector<8x512xf32> -> vector<8x512xf32>
    %313 = arith.truncf %279 : vector<8x128xf32> to vector<8x128xbf16>
    %c0_85 = arith.constant 0 : index
    %c0_86 = arith.constant 0 : index
    %314 = vector.load %arg5[%c0_85, %c0_86] : memref<128x512xbf16, #tpu.memory_space<vmem>>, vector<128x512xbf16>
    %cst_87 = arith.constant dense<0.000000e+00> : vector<8x512xf32>
    %315 = tpu.matmul %313, %314, %cst_87 {dimension_numbers = #tpu.dot_dimension_numbers<[1], [0], [0], [1], [0, 0, 1, 1], [], []>} : vector<8x128xbf16>, vector<128x512xbf16>, vector<8x512xf32> -> vector<8x512xf32>
    %316 = arith.addf %312, %315 : vector<8x512xf32>
    %c0_88 = arith.constant 0 : index
    %c0_89 = arith.constant 0 : index
    %317 = vector.load %arg6[%c0_88, %c0_89] : memref<1x512xf32, #tpu.memory_space<vmem>>, vector<1x512xf32>
    %318 = vector.broadcast %317 : vector<1x512xf32> to vector<8x512xf32>
    %319 = arith.addf %316, %318 : vector<8x512xf32>
    %320 = vector.extract_strided_slice %319 {offsets = [0, 0], sizes = [8, 128], strides = [1, 1]} : vector<8x512xf32> to vector<8x128xf32>
    %321 = arith.negf %320 : vector<8x128xf32>
    %322 = math.exp %321 : vector<8x128xf32>
    %cst_90 = arith.constant 1.000000e+00 : f32
    %323 = vector.broadcast %cst_90 : f32 to vector<8x128xf32>
    %324 = arith.addf %323, %322 : vector<8x128xf32>
    %325 = arith.divf %323, %324 : vector<8x128xf32>
    %326 = vector.extract_strided_slice %319 {offsets = [0, 128], sizes = [8, 128], strides = [1, 1]} : vector<8x512xf32> to vector<8x128xf32>
    %327 = arith.negf %326 : vector<8x128xf32>
    %328 = math.exp %327 : vector<8x128xf32>
    %cst_91 = arith.constant 1.000000e+00 : f32
    %329 = vector.broadcast %cst_91 : f32 to vector<8x128xf32>
    %330 = arith.addf %329, %328 : vector<8x128xf32>
    %331 = arith.divf %329, %330 : vector<8x128xf32>
    %332 = vector.extract_strided_slice %319 {offsets = [0, 256], sizes = [8, 128], strides = [1, 1]} : vector<8x512xf32> to vector<8x128xf32>
    %333 = math.tanh %332 : vector<8x128xf32>
    %334 = vector.extract_strided_slice %319 {offsets = [0, 384], sizes = [8, 128], strides = [1, 1]} : vector<8x512xf32> to vector<8x128xf32>
    %335 = arith.negf %334 : vector<8x128xf32>
    %336 = math.exp %335 : vector<8x128xf32>
    %cst_92 = arith.constant 1.000000e+00 : f32
    %337 = vector.broadcast %cst_92 : f32 to vector<8x128xf32>
    %338 = arith.addf %337, %336 : vector<8x128xf32>
    %339 = arith.divf %337, %338 : vector<8x128xf32>
    %340 = arith.mulf %331, %277 : vector<8x128xf32>
    %341 = arith.mulf %325, %333 : vector<8x128xf32>
    %342 = arith.addf %340, %341 : vector<8x128xf32>
    %343 = math.tanh %342 : vector<8x128xf32>
    %344 = arith.mulf %339, %343 : vector<8x128xf32>
    %345 = vector.extract_strided_slice %15 {offsets = [40, 0], sizes = [8, 512], strides = [1, 1]} : vector<64x512xf32> to vector<8x512xf32>
    %346 = arith.truncf %309 : vector<8x128xf32> to vector<8x128xbf16>
    %c0_93 = arith.constant 0 : index
    %c0_94 = arith.constant 0 : index
    %347 = vector.load %arg2[%c0_93, %c0_94] : memref<128x512xbf16, #tpu.memory_space<vmem>>, vector<128x512xbf16>
    %cst_95 = arith.constant dense<0.000000e+00> : vector<8x512xf32>
    %348 = tpu.matmul %346, %347, %cst_95 {dimension_numbers = #tpu.dot_dimension_numbers<[1], [0], [0], [1], [0, 0, 1, 1], [], []>} : vector<8x128xbf16>, vector<128x512xbf16>, vector<8x512xf32> -> vector<8x512xf32>
    %349 = arith.addf %345, %348 : vector<8x512xf32>
    %350 = vector.extract_strided_slice %349 {offsets = [0, 0], sizes = [8, 128], strides = [1, 1]} : vector<8x512xf32> to vector<8x128xf32>
    %351 = arith.negf %350 : vector<8x128xf32>
    %352 = math.exp %351 : vector<8x128xf32>
    %cst_96 = arith.constant 1.000000e+00 : f32
    %353 = vector.broadcast %cst_96 : f32 to vector<8x128xf32>
    %354 = arith.addf %353, %352 : vector<8x128xf32>
    %355 = arith.divf %353, %354 : vector<8x128xf32>
    %356 = vector.extract_strided_slice %349 {offsets = [0, 128], sizes = [8, 128], strides = [1, 1]} : vector<8x512xf32> to vector<8x128xf32>
    %357 = arith.negf %356 : vector<8x128xf32>
    %358 = math.exp %357 : vector<8x128xf32>
    %cst_97 = arith.constant 1.000000e+00 : f32
    %359 = vector.broadcast %cst_97 : f32 to vector<8x128xf32>
    %360 = arith.addf %359, %358 : vector<8x128xf32>
    %361 = arith.divf %359, %360 : vector<8x128xf32>
    %362 = vector.extract_strided_slice %349 {offsets = [0, 256], sizes = [8, 128], strides = [1, 1]} : vector<8x512xf32> to vector<8x128xf32>
    %363 = math.tanh %362 : vector<8x128xf32>
    %364 = vector.extract_strided_slice %349 {offsets = [0, 384], sizes = [8, 128], strides = [1, 1]} : vector<8x512xf32> to vector<8x128xf32>
    %365 = arith.negf %364 : vector<8x128xf32>
    %366 = math.exp %365 : vector<8x128xf32>
    %cst_98 = arith.constant 1.000000e+00 : f32
    %367 = vector.broadcast %cst_98 : f32 to vector<8x128xf32>
    %368 = arith.addf %367, %366 : vector<8x128xf32>
    %369 = arith.divf %367, %368 : vector<8x128xf32>
    %370 = arith.mulf %361, %307 : vector<8x128xf32>
    %371 = arith.mulf %355, %363 : vector<8x128xf32>
    %372 = arith.addf %370, %371 : vector<8x128xf32>
    %373 = math.tanh %372 : vector<8x128xf32>
    %374 = arith.mulf %369, %373 : vector<8x128xf32>
    %375 = arith.truncf %374 : vector<8x128xf32> to vector<8x128xbf16>
    %c0_99 = arith.constant 0 : index
    %c0_100 = arith.constant 0 : index
    %376 = vector.load %arg4[%c0_99, %c0_100] : memref<128x512xbf16, #tpu.memory_space<vmem>>, vector<128x512xbf16>
    %cst_101 = arith.constant dense<0.000000e+00> : vector<8x512xf32>
    %377 = tpu.matmul %375, %376, %cst_101 {dimension_numbers = #tpu.dot_dimension_numbers<[1], [0], [0], [1], [0, 0, 1, 1], [], []>} : vector<8x128xbf16>, vector<128x512xbf16>, vector<8x512xf32> -> vector<8x512xf32>
    %378 = arith.truncf %344 : vector<8x128xf32> to vector<8x128xbf16>
    %c0_102 = arith.constant 0 : index
    %c0_103 = arith.constant 0 : index
    %379 = vector.load %arg5[%c0_102, %c0_103] : memref<128x512xbf16, #tpu.memory_space<vmem>>, vector<128x512xbf16>
    %cst_104 = arith.constant dense<0.000000e+00> : vector<8x512xf32>
    %380 = tpu.matmul %378, %379, %cst_104 {dimension_numbers = #tpu.dot_dimension_numbers<[1], [0], [0], [1], [0, 0, 1, 1], [], []>} : vector<8x128xbf16>, vector<128x512xbf16>, vector<8x512xf32> -> vector<8x512xf32>
    %381 = arith.addf %377, %380 : vector<8x512xf32>
    %c0_105 = arith.constant 0 : index
    %c0_106 = arith.constant 0 : index
    %382 = vector.load %arg6[%c0_105, %c0_106] : memref<1x512xf32, #tpu.memory_space<vmem>>, vector<1x512xf32>
    %383 = vector.broadcast %382 : vector<1x512xf32> to vector<8x512xf32>
    %384 = arith.addf %381, %383 : vector<8x512xf32>
    %385 = vector.extract_strided_slice %384 {offsets = [0, 0], sizes = [8, 128], strides = [1, 1]} : vector<8x512xf32> to vector<8x128xf32>
    %386 = arith.negf %385 : vector<8x128xf32>
    %387 = math.exp %386 : vector<8x128xf32>
    %cst_107 = arith.constant 1.000000e+00 : f32
    %388 = vector.broadcast %cst_107 : f32 to vector<8x128xf32>
    %389 = arith.addf %388, %387 : vector<8x128xf32>
    %390 = arith.divf %388, %389 : vector<8x128xf32>
    %391 = vector.extract_strided_slice %384 {offsets = [0, 128], sizes = [8, 128], strides = [1, 1]} : vector<8x512xf32> to vector<8x128xf32>
    %392 = arith.negf %391 : vector<8x128xf32>
    %393 = math.exp %392 : vector<8x128xf32>
    %cst_108 = arith.constant 1.000000e+00 : f32
    %394 = vector.broadcast %cst_108 : f32 to vector<8x128xf32>
    %395 = arith.addf %394, %393 : vector<8x128xf32>
    %396 = arith.divf %394, %395 : vector<8x128xf32>
    %397 = vector.extract_strided_slice %384 {offsets = [0, 256], sizes = [8, 128], strides = [1, 1]} : vector<8x512xf32> to vector<8x128xf32>
    %398 = math.tanh %397 : vector<8x128xf32>
    %399 = vector.extract_strided_slice %384 {offsets = [0, 384], sizes = [8, 128], strides = [1, 1]} : vector<8x512xf32> to vector<8x128xf32>
    %400 = arith.negf %399 : vector<8x128xf32>
    %401 = math.exp %400 : vector<8x128xf32>
    %cst_109 = arith.constant 1.000000e+00 : f32
    %402 = vector.broadcast %cst_109 : f32 to vector<8x128xf32>
    %403 = arith.addf %402, %401 : vector<8x128xf32>
    %404 = arith.divf %402, %403 : vector<8x128xf32>
    %405 = arith.mulf %396, %342 : vector<8x128xf32>
    %406 = arith.mulf %390, %398 : vector<8x128xf32>
    %407 = arith.addf %405, %406 : vector<8x128xf32>
    %408 = math.tanh %407 : vector<8x128xf32>
    %409 = arith.mulf %404, %408 : vector<8x128xf32>
    %410 = vector.extract_strided_slice %15 {offsets = [48, 0], sizes = [8, 512], strides = [1, 1]} : vector<64x512xf32> to vector<8x512xf32>
    %411 = arith.truncf %374 : vector<8x128xf32> to vector<8x128xbf16>
    %c0_110 = arith.constant 0 : index
    %c0_111 = arith.constant 0 : index
    %412 = vector.load %arg2[%c0_110, %c0_111] : memref<128x512xbf16, #tpu.memory_space<vmem>>, vector<128x512xbf16>
    %cst_112 = arith.constant dense<0.000000e+00> : vector<8x512xf32>
    %413 = tpu.matmul %411, %412, %cst_112 {dimension_numbers = #tpu.dot_dimension_numbers<[1], [0], [0], [1], [0, 0, 1, 1], [], []>} : vector<8x128xbf16>, vector<128x512xbf16>, vector<8x512xf32> -> vector<8x512xf32>
    %414 = arith.addf %410, %413 : vector<8x512xf32>
    %415 = vector.extract_strided_slice %414 {offsets = [0, 0], sizes = [8, 128], strides = [1, 1]} : vector<8x512xf32> to vector<8x128xf32>
    %416 = arith.negf %415 : vector<8x128xf32>
    %417 = math.exp %416 : vector<8x128xf32>
    %cst_113 = arith.constant 1.000000e+00 : f32
    %418 = vector.broadcast %cst_113 : f32 to vector<8x128xf32>
    %419 = arith.addf %418, %417 : vector<8x128xf32>
    %420 = arith.divf %418, %419 : vector<8x128xf32>
    %421 = vector.extract_strided_slice %414 {offsets = [0, 128], sizes = [8, 128], strides = [1, 1]} : vector<8x512xf32> to vector<8x128xf32>
    %422 = arith.negf %421 : vector<8x128xf32>
    %423 = math.exp %422 : vector<8x128xf32>
    %cst_114 = arith.constant 1.000000e+00 : f32
    %424 = vector.broadcast %cst_114 : f32 to vector<8x128xf32>
    %425 = arith.addf %424, %423 : vector<8x128xf32>
    %426 = arith.divf %424, %425 : vector<8x128xf32>
    %427 = vector.extract_strided_slice %414 {offsets = [0, 256], sizes = [8, 128], strides = [1, 1]} : vector<8x512xf32> to vector<8x128xf32>
    %428 = math.tanh %427 : vector<8x128xf32>
    %429 = vector.extract_strided_slice %414 {offsets = [0, 384], sizes = [8, 128], strides = [1, 1]} : vector<8x512xf32> to vector<8x128xf32>
    %430 = arith.negf %429 : vector<8x128xf32>
    %431 = math.exp %430 : vector<8x128xf32>
    %cst_115 = arith.constant 1.000000e+00 : f32
    %432 = vector.broadcast %cst_115 : f32 to vector<8x128xf32>
    %433 = arith.addf %432, %431 : vector<8x128xf32>
    %434 = arith.divf %432, %433 : vector<8x128xf32>
    %435 = arith.mulf %426, %372 : vector<8x128xf32>
    %436 = arith.mulf %420, %428 : vector<8x128xf32>
    %437 = arith.addf %435, %436 : vector<8x128xf32>
    %438 = math.tanh %437 : vector<8x128xf32>
    %439 = arith.mulf %434, %438 : vector<8x128xf32>
    %440 = arith.truncf %439 : vector<8x128xf32> to vector<8x128xbf16>
    %c0_116 = arith.constant 0 : index
    %c0_117 = arith.constant 0 : index
    %441 = vector.load %arg4[%c0_116, %c0_117] : memref<128x512xbf16, #tpu.memory_space<vmem>>, vector<128x512xbf16>
    %cst_118 = arith.constant dense<0.000000e+00> : vector<8x512xf32>
    %442 = tpu.matmul %440, %441, %cst_118 {dimension_numbers = #tpu.dot_dimension_numbers<[1], [0], [0], [1], [0, 0, 1, 1], [], []>} : vector<8x128xbf16>, vector<128x512xbf16>, vector<8x512xf32> -> vector<8x512xf32>
    %443 = arith.truncf %409 : vector<8x128xf32> to vector<8x128xbf16>
    %c0_119 = arith.constant 0 : index
    %c0_120 = arith.constant 0 : index
    %444 = vector.load %arg5[%c0_119, %c0_120] : memref<128x512xbf16, #tpu.memory_space<vmem>>, vector<128x512xbf16>
    %cst_121 = arith.constant dense<0.000000e+00> : vector<8x512xf32>
    %445 = tpu.matmul %443, %444, %cst_121 {dimension_numbers = #tpu.dot_dimension_numbers<[1], [0], [0], [1], [0, 0, 1, 1], [], []>} : vector<8x128xbf16>, vector<128x512xbf16>, vector<8x512xf32> -> vector<8x512xf32>
    %446 = arith.addf %442, %445 : vector<8x512xf32>
    %c0_122 = arith.constant 0 : index
    %c0_123 = arith.constant 0 : index
    %447 = vector.load %arg6[%c0_122, %c0_123] : memref<1x512xf32, #tpu.memory_space<vmem>>, vector<1x512xf32>
    %448 = vector.broadcast %447 : vector<1x512xf32> to vector<8x512xf32>
    %449 = arith.addf %446, %448 : vector<8x512xf32>
    %450 = vector.extract_strided_slice %449 {offsets = [0, 0], sizes = [8, 128], strides = [1, 1]} : vector<8x512xf32> to vector<8x128xf32>
    %451 = arith.negf %450 : vector<8x128xf32>
    %452 = math.exp %451 : vector<8x128xf32>
    %cst_124 = arith.constant 1.000000e+00 : f32
    %453 = vector.broadcast %cst_124 : f32 to vector<8x128xf32>
    %454 = arith.addf %453, %452 : vector<8x128xf32>
    %455 = arith.divf %453, %454 : vector<8x128xf32>
    %456 = vector.extract_strided_slice %449 {offsets = [0, 128], sizes = [8, 128], strides = [1, 1]} : vector<8x512xf32> to vector<8x128xf32>
    %457 = arith.negf %456 : vector<8x128xf32>
    %458 = math.exp %457 : vector<8x128xf32>
    %cst_125 = arith.constant 1.000000e+00 : f32
    %459 = vector.broadcast %cst_125 : f32 to vector<8x128xf32>
    %460 = arith.addf %459, %458 : vector<8x128xf32>
    %461 = arith.divf %459, %460 : vector<8x128xf32>
    %462 = vector.extract_strided_slice %449 {offsets = [0, 256], sizes = [8, 128], strides = [1, 1]} : vector<8x512xf32> to vector<8x128xf32>
    %463 = math.tanh %462 : vector<8x128xf32>
    %464 = vector.extract_strided_slice %449 {offsets = [0, 384], sizes = [8, 128], strides = [1, 1]} : vector<8x512xf32> to vector<8x128xf32>
    %465 = arith.negf %464 : vector<8x128xf32>
    %466 = math.exp %465 : vector<8x128xf32>
    %cst_126 = arith.constant 1.000000e+00 : f32
    %467 = vector.broadcast %cst_126 : f32 to vector<8x128xf32>
    %468 = arith.addf %467, %466 : vector<8x128xf32>
    %469 = arith.divf %467, %468 : vector<8x128xf32>
    %470 = arith.mulf %461, %407 : vector<8x128xf32>
    %471 = arith.mulf %455, %463 : vector<8x128xf32>
    %472 = arith.addf %470, %471 : vector<8x128xf32>
    %473 = math.tanh %472 : vector<8x128xf32>
    %474 = arith.mulf %469, %473 : vector<8x128xf32>
    %475 = vector.extract_strided_slice %15 {offsets = [56, 0], sizes = [8, 512], strides = [1, 1]} : vector<64x512xf32> to vector<8x512xf32>
    %476 = arith.truncf %439 : vector<8x128xf32> to vector<8x128xbf16>
    %c0_127 = arith.constant 0 : index
    %c0_128 = arith.constant 0 : index
    %477 = vector.load %arg2[%c0_127, %c0_128] : memref<128x512xbf16, #tpu.memory_space<vmem>>, vector<128x512xbf16>
    %cst_129 = arith.constant dense<0.000000e+00> : vector<8x512xf32>
    %478 = tpu.matmul %476, %477, %cst_129 {dimension_numbers = #tpu.dot_dimension_numbers<[1], [0], [0], [1], [0, 0, 1, 1], [], []>} : vector<8x128xbf16>, vector<128x512xbf16>, vector<8x512xf32> -> vector<8x512xf32>
    %479 = arith.addf %475, %478 : vector<8x512xf32>
    %480 = vector.extract_strided_slice %479 {offsets = [0, 0], sizes = [8, 128], strides = [1, 1]} : vector<8x512xf32> to vector<8x128xf32>
    %481 = arith.negf %480 : vector<8x128xf32>
    %482 = math.exp %481 : vector<8x128xf32>
    %cst_130 = arith.constant 1.000000e+00 : f32
    %483 = vector.broadcast %cst_130 : f32 to vector<8x128xf32>
    %484 = arith.addf %483, %482 : vector<8x128xf32>
    %485 = arith.divf %483, %484 : vector<8x128xf32>
    %486 = vector.extract_strided_slice %479 {offsets = [0, 128], sizes = [8, 128], strides = [1, 1]} : vector<8x512xf32> to vector<8x128xf32>
    %487 = arith.negf %486 : vector<8x128xf32>
    %488 = math.exp %487 : vector<8x128xf32>
    %cst_131 = arith.constant 1.000000e+00 : f32
    %489 = vector.broadcast %cst_131 : f32 to vector<8x128xf32>
    %490 = arith.addf %489, %488 : vector<8x128xf32>
    %491 = arith.divf %489, %490 : vector<8x128xf32>
    %492 = vector.extract_strided_slice %479 {offsets = [0, 256], sizes = [8, 128], strides = [1, 1]} : vector<8x512xf32> to vector<8x128xf32>
    %493 = math.tanh %492 : vector<8x128xf32>
    %494 = vector.extract_strided_slice %479 {offsets = [0, 384], sizes = [8, 128], strides = [1, 1]} : vector<8x512xf32> to vector<8x128xf32>
    %495 = arith.negf %494 : vector<8x128xf32>
    %496 = math.exp %495 : vector<8x128xf32>
    %cst_132 = arith.constant 1.000000e+00 : f32
    %497 = vector.broadcast %cst_132 : f32 to vector<8x128xf32>
    %498 = arith.addf %497, %496 : vector<8x128xf32>
    %499 = arith.divf %497, %498 : vector<8x128xf32>
    %500 = arith.mulf %491, %437 : vector<8x128xf32>
    %501 = arith.mulf %485, %493 : vector<8x128xf32>
    %502 = arith.addf %500, %501 : vector<8x128xf32>
    %503 = math.tanh %502 : vector<8x128xf32>
    %504 = arith.mulf %499, %503 : vector<8x128xf32>
    %505 = arith.truncf %504 : vector<8x128xf32> to vector<8x128xbf16>
    %c0_133 = arith.constant 0 : index
    %c0_134 = arith.constant 0 : index
    %506 = vector.load %arg4[%c0_133, %c0_134] : memref<128x512xbf16, #tpu.memory_space<vmem>>, vector<128x512xbf16>
    %cst_135 = arith.constant dense<0.000000e+00> : vector<8x512xf32>
    %507 = tpu.matmul %505, %506, %cst_135 {dimension_numbers = #tpu.dot_dimension_numbers<[1], [0], [0], [1], [0, 0, 1, 1], [], []>} : vector<8x128xbf16>, vector<128x512xbf16>, vector<8x512xf32> -> vector<8x512xf32>
    %508 = arith.truncf %474 : vector<8x128xf32> to vector<8x128xbf16>
    %c0_136 = arith.constant 0 : index
    %c0_137 = arith.constant 0 : index
    %509 = vector.load %arg5[%c0_136, %c0_137] : memref<128x512xbf16, #tpu.memory_space<vmem>>, vector<128x512xbf16>
    %cst_138 = arith.constant dense<0.000000e+00> : vector<8x512xf32>
    %510 = tpu.matmul %508, %509, %cst_138 {dimension_numbers = #tpu.dot_dimension_numbers<[1], [0], [0], [1], [0, 0, 1, 1], [], []>} : vector<8x128xbf16>, vector<128x512xbf16>, vector<8x512xf32> -> vector<8x512xf32>
    %511 = arith.addf %507, %510 : vector<8x512xf32>
    %c0_139 = arith.constant 0 : index
    %c0_140 = arith.constant 0 : index
    %512 = vector.load %arg6[%c0_139, %c0_140] : memref<1x512xf32, #tpu.memory_space<vmem>>, vector<1x512xf32>
    %513 = vector.broadcast %512 : vector<1x512xf32> to vector<8x512xf32>
    %514 = arith.addf %511, %513 : vector<8x512xf32>
    %515 = vector.extract_strided_slice %514 {offsets = [0, 0], sizes = [8, 128], strides = [1, 1]} : vector<8x512xf32> to vector<8x128xf32>
    %516 = arith.negf %515 : vector<8x128xf32>
    %517 = math.exp %516 : vector<8x128xf32>
    %cst_141 = arith.constant 1.000000e+00 : f32
    %518 = vector.broadcast %cst_141 : f32 to vector<8x128xf32>
    %519 = arith.addf %518, %517 : vector<8x128xf32>
    %520 = arith.divf %518, %519 : vector<8x128xf32>
    %521 = vector.extract_strided_slice %514 {offsets = [0, 128], sizes = [8, 128], strides = [1, 1]} : vector<8x512xf32> to vector<8x128xf32>
    %522 = arith.negf %521 : vector<8x128xf32>
    %523 = math.exp %522 : vector<8x128xf32>
    %cst_142 = arith.constant 1.000000e+00 : f32
    %524 = vector.broadcast %cst_142 : f32 to vector<8x128xf32>
    %525 = arith.addf %524, %523 : vector<8x128xf32>
    %526 = arith.divf %524, %525 : vector<8x128xf32>
    %527 = vector.extract_strided_slice %514 {offsets = [0, 256], sizes = [8, 128], strides = [1, 1]} : vector<8x512xf32> to vector<8x128xf32>
    %528 = math.tanh %527 : vector<8x128xf32>
    %529 = vector.extract_strided_slice %514 {offsets = [0, 384], sizes = [8, 128], strides = [1, 1]} : vector<8x512xf32> to vector<8x128xf32>
    %530 = arith.negf %529 : vector<8x128xf32>
    %531 = math.exp %530 : vector<8x128xf32>
    %cst_143 = arith.constant 1.000000e+00 : f32
    %532 = vector.broadcast %cst_143 : f32 to vector<8x128xf32>
    %533 = arith.addf %532, %531 : vector<8x128xf32>
    %534 = arith.divf %532, %533 : vector<8x128xf32>
    %535 = arith.mulf %526, %472 : vector<8x128xf32>
    %536 = arith.mulf %520, %528 : vector<8x128xf32>
    %537 = arith.addf %535, %536 : vector<8x128xf32>
    %538 = math.tanh %537 : vector<8x128xf32>
    %539 = arith.mulf %534, %538 : vector<8x128xf32>
    %540 = arith.truncf %539 : vector<8x128xf32> to vector<8x128xbf16>
    %c0_144 = arith.constant 0 : index
    %c0_145 = arith.constant 0 : index
    %541 = vector.load %arg7[%c0_144, %c0_145] : memref<128x32xbf16, #tpu.memory_space<vmem>>, vector<128x32xbf16>
    %cst_146 = arith.constant dense<0.000000e+00> : vector<8x32xf32>
    %542 = tpu.matmul %540, %541, %cst_146 {dimension_numbers = #tpu.dot_dimension_numbers<[1], [0], [0], [1], [0, 0, 1, 1], [], []>} : vector<8x128xbf16>, vector<128x32xbf16>, vector<8x32xf32> -> vector<8x32xf32>
    %c0_147 = arith.constant 0 : index
    %c0_148 = arith.constant 0 : index
    %543 = vector.load %arg8[%c0_147, %c0_148] : memref<1x32xf32, #tpu.memory_space<vmem>>, vector<1x32xf32>
    %544 = vector.broadcast %543 : vector<1x32xf32> to vector<8x32xf32>
    %545 = arith.addf %542, %544 : vector<8x32xf32>
    %cst_149 = arith.constant 0.000000e+00 : f32
    %546 = vector.broadcast %cst_149 : f32 to vector<8x32xf32>
    %547 = arith.maximumf %545, %546 : vector<8x32xf32>
    %548 = tpu.iota {dimensions = array<i32: 0>} : vector<8x1xi32>
    %c2_i32 = arith.constant 2 : i32
    %549 = vector.broadcast %c2_i32 : i32 to vector<8x1xi32>
    %550 = arith.cmpi slt, %548, %549 : vector<8x1xi32>
    %551 = arith.extui %550 : vector<8x1xi1> to vector<8x1xi32>
    %552 = arith.sitofp %551 : vector<8x1xi32> to vector<8x1xf32>
    %553 = vector.broadcast %552 : vector<8x1xf32> to vector<8x32xf32>
    %554 = arith.mulf %547, %553 : vector<8x32xf32>
    %cst_150 = arith.constant dense<0.000000e+00> : vector<32xf32>
    %555 = vector.multi_reduction <add>, %554, %cst_150 [0] : vector<8x32xf32> to vector<32xf32>
    %556 = vector.shape_cast %555 : vector<32xf32> to vector<1x32xf32>
    %cst_151 = arith.constant 5.000000e-01 : f32
    %557 = vector.broadcast %cst_151 : f32 to vector<1x32xf32>
    %558 = arith.mulf %556, %557 : vector<1x32xf32>
    %559 = vector.broadcast %558 : vector<1x32xf32> to vector<8x32xf32>
    %560 = arith.subf %547, %559 : vector<8x32xf32>
    %561 = vector.broadcast %552 : vector<8x1xf32> to vector<8x32xf32>
    %562 = arith.mulf %560, %561 : vector<8x32xf32>
    %563 = arith.mulf %562, %562 : vector<8x32xf32>
    %cst_152 = arith.constant dense<0.000000e+00> : vector<32xf32>
    %564 = vector.multi_reduction <add>, %563, %cst_152 [0] : vector<8x32xf32> to vector<32xf32>
    %565 = vector.shape_cast %564 : vector<32xf32> to vector<1x32xf32>
    %cst_153 = arith.constant 5.000000e-01 : f32
    %566 = vector.broadcast %cst_153 : f32 to vector<1x32xf32>
    %567 = arith.mulf %565, %566 : vector<1x32xf32>
    %568 = vector.broadcast %558 : vector<1x32xf32> to vector<8x32xf32>
    %569 = arith.subf %547, %568 : vector<8x32xf32>
    %cst_154 = arith.constant 9.99999974E-6 : f32
    %570 = vector.broadcast %cst_154 : f32 to vector<1x32xf32>
    %571 = arith.addf %567, %570 : vector<1x32xf32>
    %572 = math.rsqrt %571 : vector<1x32xf32>
    %573 = vector.broadcast %572 : vector<1x32xf32> to vector<8x32xf32>
    %574 = arith.mulf %569, %573 : vector<8x32xf32>
    %c0_155 = arith.constant 0 : index
    %c0_156 = arith.constant 0 : index
    %575 = vector.load %arg9[%c0_155, %c0_156] : memref<1x32xf32, #tpu.memory_space<vmem>>, vector<1x32xf32>
    %576 = vector.broadcast %575 : vector<1x32xf32> to vector<8x32xf32>
    %577 = arith.mulf %574, %576 : vector<8x32xf32>
    %c0_157 = arith.constant 0 : index
    %c0_158 = arith.constant 0 : index
    %578 = vector.load %arg10[%c0_157, %c0_158] : memref<1x32xf32, #tpu.memory_space<vmem>>, vector<1x32xf32>
    %579 = vector.broadcast %578 : vector<1x32xf32> to vector<8x32xf32>
    %580 = arith.addf %577, %579 : vector<8x32xf32>
    %581 = arith.truncf %580 : vector<8x32xf32> to vector<8x32xbf16>
    %c0_159 = arith.constant 0 : index
    %c0_160 = arith.constant 0 : index
    %582 = vector.load %arg11[%c0_159, %c0_160] : memref<32x8xbf16, #tpu.memory_space<vmem>>, vector<32x8xbf16>
    %cst_161 = arith.constant dense<0.000000e+00> : vector<8x8xf32>
    %583 = tpu.matmul %581, %582, %cst_161 {dimension_numbers = #tpu.dot_dimension_numbers<[1], [0], [0], [1], [0, 0, 1, 1], [], []>} : vector<8x32xbf16>, vector<32x8xbf16>, vector<8x8xf32> -> vector<8x8xf32>
    %c0_162 = arith.constant 0 : index
    %c0_163 = arith.constant 0 : index
    %584 = vector.load %arg12[%c0_162, %c0_163] : memref<1x8xf32, #tpu.memory_space<vmem>>, vector<1x8xf32>
    %585 = vector.broadcast %584 : vector<1x8xf32> to vector<8x8xf32>
    %586 = arith.addf %583, %585 : vector<8x8xf32>
    %587 = vector.extract_strided_slice %586 {offsets = [0, 0], sizes = [2, 8], strides = [1, 1]} : vector<8x8xf32> to vector<2x8xf32>
    %c0_164 = arith.constant 0 : index
    %c0_165 = arith.constant 0 : index
    %588 = vector.load %arg13[%c0_164, %c0_165] : memref<2x8xf32, #tpu.memory_space<vmem>>, vector<2x8xf32>
    tpu.vector_store %arg13[%c0_164, %c0_165], %587 {strides = array<i32>} : memref<2x8xf32, #tpu.memory_space<vmem>>, vector<2x8xf32>,
    return
  }
}

</mosaic_0001>

<bundles_post_ra>
// kernel: trajectory_baseline_forward.1
= control target key start
LH: loop header
LB: loop body
LE: loop exit
PB: predicated region body
PF: predicated region fallthrough
CT: control target
= control target key end

     0   :  { %18 = vsyncpa [#allocation3], 0  ;;  %s6564_s0 = inlined_call_operand.vmem [shape: f32[64,2], index: 0, kind: input, shape index: {}]   ;;  %s6565_s1 = inlined_call_operand.vmem [shape: f32[2,512], index: 1, kind: input, shape index: {}]   ;;  %s6566_s2 = inlined_call_operand.hbm [shape: bf16[128,512], index: 2, kind: input, shape index: {}]   ;;  %s6567_s3 = inlined_call_operand.vmem [shape: f32[1,512], index: 3, kind: input, shape index: {}]   ;;  %s6568_s4 = inlined_call_operand.hbm [shape: bf16[128,512], index: 4, kind: input, shape index: {}]   ;;  %s6569_s5 = inlined_call_operand.hbm [shape: bf16[128,512], index: 5, kind: input, shape index: {}]   ;;  %s6570_s6 = inlined_call_operand.vmem [shape: f32[1,512], index: 6, kind: input, shape index: {}]   ;;  %s6571_s7 = inlined_call_operand.vmem [shape: bf16[128,32], index: 7, kind: input, shape index: {}]   ;;  %s6572_s8 = inlined_call_operand.vmem [shape: f32[1,32], index: 8, kind: input, shape index: {}]   ;;  %s6573_s9 = inlined_call_operand.vmem [shape: f32[1,32], index: 9, kind: input, shape index: {}]   ;;  %s6574_s10 = inlined_call_operand.vmem [shape: f32[1,32], index: 10, kind: input, shape index: {}]   ;;  %s6575_s11 = inlined_call_operand.vmem [shape: bf16[32,8], index: 11, kind: input, shape index: {}]   ;;  %s6576_s12 = inlined_call_operand.vmem [shape: f32[1,8], index: 12, kind: input, shape index: {}]   ;;  %s6577_s13 = inlined_call_operand.hbm [shape: f32[2,8], index: 13, kind: output, shape index: {}]  }
   0x1   :  { %19 = vsyncpa [#allocation6], 0 }
   0x2   :  { %20 = vsyncpa [#allocation4], 0  ;;  %s4579_s25 = smov [#allocation5]   ;;  %s4580_s27 = smov [#allocation2]  }
   0x3   :  { %s44_s26 = sshll.u32 %s4579_s25, 4  ;;  %s30_s28 = sshll.u32 %s4580_s27, 4  ;;  %s45_s26 = int_to_ptr.vmem [resolvable:$true] %s44_s26  ;;  %s4659_s28 = int_to_ptr.vmem [resolvable:$true] %s30_s28 }
   0x4   :  { %s4485_s14 = scalar_lea.hbm %s6568_s4, 4096 }
   0x5   :  { %p4486_p0 = scmp.ne.s32.totalorder %s6568_s4, %s4485_s14  ;;  %p4489_p1 = scmp.lt.u32.totalorder %s4485_s14, %s6568_s4 }
   0x7   :  { %p4491_p2 = pnand %p4489_p1, %p4486_p0 }
   0x9   :  { %4494 = shalt.err (!%p4491_p2)
}
   0xa   :  { %s4495_s19 = scalar_lea.vmem %s45_s26, 4096  ;;  %p4500_p4 = scmp.lt.s32.totalorder %s45_s26, %s45_s26 }
   0xb   :  { %p4496_p3 = scmp.ne.s32.totalorder %s45_s26, %s4495_s19  ;;  %p4501_p5 = scmp.lt.s32.totalorder %s4495_s19, %s4495_s19 }
   0xd   :  { %p4502_p6 = por %p4501_p5, %p4500_p4 }
   0xf   :  { %p4503_p7 = pnand %p4502_p6, %p4496_p3 }
  0x11   :  { %4506 = shalt.err (!%p4503_p7)
}
  0x12   :  { %s4581_s20 = smov 256   ;;  %s4582_s21 = smov 16  }
  0x13   :  { %50 = dma.hbm_to_vmem [thread:$0]  %s6568_s4, 4096, %s45_s26, [#allocation6], %s4581_s20, %s4581_s20, %s4582_s21  }
  0x14   :  { %s4507_s27 = scalar_lea.hbm %s6566_s2, 4096 }
  0x15   :  { %p4508_p8 = scmp.ne.s32.totalorder %s6566_s2, %s4507_s27  ;;  %p4511_p9 = scmp.lt.u32.totalorder %s4507_s27, %s6566_s2 }
  0x17   :  { %p4513_p10 = pnand %p4511_p9, %p4508_p8 }
  0x19   :  { %4516 = shalt.err (!%p4513_p10)
}
  0x1a   :  { %s4517_s16 = scalar_lea.vmem %s4659_s28, 4096  ;;  %p4522_p12 = scmp.lt.s32.totalorder %s4659_s28, %s4659_s28 }
  0x1b   :  { %p4518_p11 = scmp.ne.s32.totalorder %s4659_s28, %s4517_s16  ;;  %p4523_p13 = scmp.lt.s32.totalorder %s4517_s16, %s4517_s16 }
  0x1d   :  { %p4524_p0 = por %p4523_p13, %p4522_p12 }
  0x1f   :  { %p4525_p1 = pnand %p4524_p0, %p4518_p11 }
  0x21   :  { %4528 = shalt.err (!%p4525_p1)
}
  0x22   :  { %36 = dma.hbm_to_vmem [thread:$0]  %s6566_s2, 4096, %s4659_s28, [#allocation3], %s4581_s20, %s4581_s20, %s4582_s21  }
  0x23   :  { %s4583_s17 = smov [#allocation7]   ;;  %s4529_s23 = scalar_lea.hbm %s6569_s5, 4096 }
  0x24   :  { %s56_s18 = sshll.u32 %s4583_s17, 4  ;;  %p4530_p2 = scmp.ne.s32.totalorder %s6569_s5, %s4529_s23  ;;  %s57_s18 = int_to_ptr.vmem [resolvable:$true] %s56_s18 }
  0x25   :  { %p4533_p3 = scmp.lt.u32.totalorder %s4529_s23, %s6569_s5 }
  0x27   :  { %p4535_p4 = pnand %p4533_p3, %p4530_p2 }
  0x29   :  { %4538 = shalt.err (!%p4535_p4)
}
  0x2a   :  { %s4539_s30 = scalar_lea.vmem %s57_s18, 4096  ;;  %p4544_p6 = scmp.lt.s32.totalorder %s57_s18, %s57_s18 }
  0x2b   :  { %p4540_p5 = scmp.ne.s32.totalorder %s57_s18, %s4539_s30  ;;  %p4545_p7 = scmp.lt.s32.totalorder %s4539_s30, %s4539_s30 }
  0x2d   :  { %p4546_p8 = por %p4545_p7, %p4544_p6 }
  0x2f   :  { %p4547_p9 = pnand %p4546_p8, %p4540_p5 }
  0x31   :  { %4550 = shalt.err (!%p4547_p9)
}
  0x32   :  { %62 = dma.hbm_to_vmem [thread:$0]  %s6569_s5, 4096, %s57_s18, [#allocation6], %s4581_s20, %s4581_s20, %s4582_s21  }
  0x33   :  { %4573 = dma.done.wait [#allocation3], 4096  }
  0x34   :  { %4574 = vsyncadd [#allocation3], 4294963200 }
  0x35   :  { %4575 = dma.done.wait [#allocation6], 8192  }
  0x36   :  { %4576 = vsyncadd [#allocation6], 4294959104  ;;  %v6590_v0 = vmov 0   ;;  %v4715_v1 = vld [vmem:[#allocation2 + $0x4] ss:$16 sps:$4 sm:$0xff]   ;;  %v90_v27 = vld [vmem:[%s6564_s0 + $0x8] sm:$0xff] }
  0x37   :  { %615 = vmatprep.mubr.bf16.mxu0 %v6590_v0  ;;  %656 = vmatprep.mubr.bf16.mxu1 %v6590_v0  ;;  %v4717_v2 = vld [vmem:[#allocation2 + $0xc] ss:$16 sps:$4 sm:$0xff]   ;;  %v3882_v3 = vld [vmem:[#allocation2] ss:$16 sps:$4 sm:$0xff]   ;;  %v3883_v4 = vld [vmem:[#allocation2 + $0x8] ss:$16 sps:$4 sm:$0xff]  }
  0x38   :  { %3875 = vset.pattern.permute.xlu1 %v6590_v0  ;;  %3873 = vset.pattern.permute.xlu0 %v6590_v0  ;;  %v3884_v5 = vld [vmem:[#allocation2 + $0x24] ss:$16 sps:$4 sm:$0xff]   ;;  %v4721_v6 = vld [vmem:[#allocation2 + $0x2c] ss:$16 sps:$4 sm:$0xff]   ;;  %v4723_v7 = vld [vmem:[#allocation2 + $0x20] ss:$16 sps:$4 sm:$0xff]  }
  0x39   :  { %583 = vmatprep.subr.bf16.mxu0 %v4715_v1  ;;  %624 = vmatprep.subr.bf16.mxu1 %v4717_v2  ;;  %v4725_v8 = vld [vmem:[#allocation2 + $0x28] ss:$16 sps:$4 sm:$0xff]   ;;  %v4728_v9 = vld [vmem:[#allocation2 + $0x44] ss:$16 sps:$4 sm:$0xff]   ;;  %v4730_v10 = vld [vmem:[#allocation2 + $0x4c] ss:$16 sps:$4 sm:$0xff]  }
  0x3a   :  { %584 = vmatpush1.bf16.msra.mxu0 %v3882_v3  ;;  %625 = vmatpush1.bf16.msra.mxu1 %v3883_v4  ;;  %v4732_v11 = vld [vmem:[#allocation2 + $0x40] ss:$16 sps:$4 sm:$0xff]   ;;  %v4734_v12 = vld [vmem:[#allocation2 + $0x48] ss:$16 sps:$4 sm:$0xff]   ;;  %v4738_v13 = vld [vmem:[#allocation2 + $0x64] ss:$16 sps:$4 sm:$0xff]  }
  0x3b   :  { %585 = vmatprep.subr.bf16.mxu0 %v3884_v5  ;;  %626 = vmatprep.subr.bf16.mxu1 %v4721_v6  ;;  %v4742_v14 = vld [vmem:[#allocation2 + $0x6c] ss:$16 sps:$4 sm:$0xff]   ;;  %v4744_v15 = vld [vmem:[#allocation2 + $0x60] ss:$16 sps:$4 sm:$0xff]   ;;  %v4748_v16 = vld [vmem:[#allocation2 + $0x68] ss:$16 sps:$4 sm:$0xff]  }
  0x3c   :  { %v4750_v17 = vld [vmem:[#allocation2 + $0x84] ss:$16 sps:$4 sm:$0xff]   ;;  %v4754_v18 = vld [vmem:[#allocation2 + $0x8c] ss:$16 sps:$4 sm:$0xff]   ;;  %v4756_v19 = vld [vmem:[#allocation2 + $0x80] ss:$16 sps:$4 sm:$0xff]   ;;  %104 = vperm.xlu1 %3875, %v90_v27  }
  0x3d   :  { %v4758_v20 = vld [vmem:[#allocation2 + $0x88] ss:$16 sps:$4 sm:$0xff]   ;;  %v4762_v21 = vld [vmem:[#allocation2 + $0xa4] ss:$16 sps:$4 sm:$0xff]   ;;  %v4766_v22 = vld [vmem:[#allocation2 + $0xac] ss:$16 sps:$4 sm:$0xff]  }
  0x3e   :  { %586 = vmatpush1.bf16.msra.mxu0 %v4723_v7  ;;  %627 = vmatpush1.bf16.msra.mxu1 %v4725_v8  ;;  %v4768_v23 = vld [vmem:[#allocation2 + $0xa0] ss:$16 sps:$4 sm:$0xff]   ;;  %v4772_v24 = vld [vmem:[#allocation2 + $0xa8] ss:$16 sps:$4 sm:$0xff]   ;;  %v4774_v25 = vld [vmem:[#allocation2 + $0xc4] ss:$16 sps:$4 sm:$0xff]  }
  0x3f   :  { %587 = vmatprep.subr.bf16.mxu0 %v4728_v9  ;;  %628 = vmatprep.subr.bf16.mxu1 %v4730_v10  ;;  %v4778_v26 = vld [vmem:[#allocation2 + $0xcc] ss:$16 sps:$4 sm:$0xff]   ;;  %v89_v28 = vld [vmem:[%s6564_s0] sm:$0xff]  ;;  %v4788_v30 = vld [vmem:[#allocation2 + $0xc8] ss:$16 sps:$4 sm:$0xff]   ;;  %v4585_v35 = vmov 1  }
  0x40   :  { %99 = vperm.xlu0 %3873, %v89_v28   ;;  %v4786_v29 = vld [vmem:[#allocation2 + $0xc0] ss:$16 sps:$4 sm:$0xff]   ;;  %v4790_v31 = vld [vmem:[#allocation2 + $0xe4] ss:$16 sps:$4 sm:$0xff]   ;;  %v4794_v32 = vld [vmem:[#allocation2 + $0xec] ss:$16 sps:$4 sm:$0xff]   ;;  %3876 = vset.pattern.permute.xlu1 %v4585_v35 }
  0x41   :  { %v4798_v33 = vld [vmem:[#allocation2 + $0xe0] ss:$16 sps:$4 sm:$0xff]   ;;  %v4800_v34 = vld [vmem:[#allocation2 + $0xe8] ss:$16 sps:$4 sm:$0xff]   ;;  %211 = vperm.xlu1 %3876, %v90_v27   ;;  %v4821_v39 = vld [vmem:[#allocation7 + $0x4] ss:$16 sps:$4 sm:$0xff]  }
  0x42   :  { %588 = vmatpush1.bf16.msra.mxu0 %v4732_v11  ;;  %629 = vmatpush1.bf16.msra.mxu1 %v4734_v12  ;;  %v91_v36 = vld [vmem:[%s6564_s0 + $0x10] sm:$0xff]  ;;  %v92_v37 = vld [vmem:[%s6564_s0 + $0x18] sm:$0xff]  ;;  %v93_v38 = vld [vmem:[%s6564_s0 + $0x20] sm:$0xff]  ;;  %6865 = vst [vmem:[#allocation12_spill] sm:$0xff] %v4821_v39  ;;  %vm4587_vm0 = vmmov 0   ;;  %vm3539_vm2 = vcmask 261120  }
  0x43   :  { %589 = vmatprep.subr.bf16.mxu0 %v4738_v13  ;;  %630 = vmatprep.subr.bf16.mxu1 %v4742_v14  ;;  %v94_v40 = vld [vmem:[%s6564_s0 + $0x28] sm:$0xff]  ;;  %v4828_v41 = vld [vmem:[#allocation7] ss:$16 sps:$4 sm:$0xff]   ;;  %v4834_v44 = vld [vmem:[#allocation7 + $0x24] ss:$16 sps:$4 sm:$0xff]   ;;  %s4588_s28 = smov [#allocation8]  }
  0x44   :  { %3874 = vset.pattern.permute.xlu0 %v4585_v35  ;;  %6866 = vst [vmem:[#allocation13_spill] sm:$0xff] %v4828_v41  ;;  %v4830_v42 = vld [vmem:[#allocation7 + $0xc] ss:$16 sps:$4 sm:$0xff]   ;;  %v4832_v43 = vld [vmem:[#allocation7 + $0x8] ss:$16 sps:$4 sm:$0xff]   ;;  %6869 = vst [vmem:[#allocation16_spill] sm:$0xff] %v4834_v44 }
  0x45   :  { %207 = vperm.xlu0 %3874, %v89_v28   ;;  %3877 = vset.pattern.permute.xlu1 %v6590_v0  ;;  %6867 = vst [vmem:[#allocation14_spill] sm:$0xff] %v4830_v42  ;;  %6868 = vst [vmem:[#allocation15_spill] sm:$0xff] %v4832_v43  ;;  %v95_v45 = vld [vmem:[%s6564_s0 + $0x30] sm:$0xff]  ;;  %v4845_v47 = vld [vmem:[#allocation7 + $0x2c] ss:$16 sps:$4 sm:$0xff]   ;;  %s3653_s5 = sshll.u32 %s4588_s28, 4  ;;  %s3654_s5 = int_to_ptr.vmem [resolvable:$true] %s3653_s5 }
  0x46   :  { %590 = vmatpush1.bf16.msra.mxu0 %v4744_v15  ;;  %631 = vmatpush1.bf16.msra.mxu1 %v4748_v16  ;;  %v4843_v46 = vld [vmem:[#allocation7 + $0x20] ss:$16 sps:$4 sm:$0xff]   ;;  %6871 = vst [vmem:[#allocation18_spill] sm:$0xff] %v4845_v47  ;;  %v4847_v48 = vld [vmem:[#allocation7 + $0x28] ss:$16 sps:$4 sm:$0xff]   ;;  %vm3645_vm3 = vcmask 58368   ;;  %p4556_p11 = scmp.lt.s32.totalorder %s3654_s5, %s3654_s5 }
  0x47   :  { %591 = vmatprep.subr.bf16.mxu0 %v4750_v17  ;;  %632 = vmatprep.subr.bf16.mxu1 %v4754_v18  ;;  %6870 = vst [vmem:[#allocation17_spill] sm:$0xff] %v4843_v46  ;;  %6872 = vst [vmem:[#allocation19_spill] sm:$0xff] %v4847_v48  ;;  %v4849_v49 = vld [vmem:[#allocation7 + $0x44] ss:$16 sps:$4 sm:$0xff]   ;;  %v96_v50 = vld [vmem:[%s6564_s0 + $0x38] sm:$0xff] }
  0x48   :  { %109 = vperm.xlu1 %3877, %v91_v36   ;;  %6873 = vst [vmem:[#allocation20_spill] sm:$0xff] %v4849_v49  ;;  %v4858_v51 = vld [vmem:[#allocation7 + $0x40] ss:$16 sps:$4 sm:$0xff]   ;;  %v4860_v52 = vld [vmem:[#allocation7 + $0x4c] ss:$16 sps:$4 sm:$0xff]  }
  0x49   :  { %215 = vperm.xlu0 %3874, %v91_v36   ;;  %6874 = vst [vmem:[#allocation21_spill] sm:$0xff] %v4858_v51  ;;  %6875 = vst [vmem:[#allocation22_spill] sm:$0xff] %v4860_v52  ;;  %v4862_v53 = vld [vmem:[#allocation7 + $0x48] ss:$16 sps:$4 sm:$0xff]   ;;  %v4864_v54 = vld [vmem:[#allocation7 + $0x64] ss:$16 sps:$4 sm:$0xff]  }
  0x4a   :  { %592 = vmatpush1.bf16.msra.mxu0 %v4756_v19  ;;  %633 = vmatpush1.bf16.msra.mxu1 %v4758_v20  ;;  %6876 = vst [vmem:[#allocation23_spill] sm:$0xff] %v4862_v53  ;;  %6877 = vst [vmem:[#allocation24_spill] sm:$0xff] %v4864_v54  ;;  %v4870_v55 = vld [vmem:[#allocation7 + $0x60] ss:$16 sps:$4 sm:$0xff]   ;;  %v4872_v56 = vld [vmem:[#allocation7 + $0x6c] ss:$16 sps:$4 sm:$0xff]  }
  0x4b   :  { %593 = vmatprep.subr.bf16.mxu0 %v4762_v21  ;;  %634 = vmatprep.subr.bf16.mxu1 %v4766_v22  ;;  %6878 = vst [vmem:[#allocation25_spill] sm:$0xff] %v4870_v55  ;;  %6879 = vst [vmem:[#allocation26_spill] sm:$0xff] %v4872_v56  ;;  %v4874_v57 = vld [vmem:[#allocation7 + $0x68] ss:$16 sps:$4 sm:$0xff]   ;;  %v4876_v58 = vld [vmem:[#allocation7 + $0x84] ss:$16 sps:$4 sm:$0xff]  }
  0x4c   :  { %114 = vperm.xlu1 %3877, %v92_v37   ;;  %6880 = vst [vmem:[#allocation27_spill] sm:$0xff] %v4874_v57  ;;  %6881 = vst [vmem:[#allocation28_spill] sm:$0xff] %v4876_v58  ;;  %v4882_v59 = vld [vmem:[#allocation7 + $0x80] ss:$16 sps:$4 sm:$0xff]   ;;  %v4884_v60 = vld [vmem:[#allocation7 + $0x8c] ss:$16 sps:$4 sm:$0xff]  }
  0x4d   :  { %219 = vperm.xlu0 %3874, %v92_v37   ;;  %6882 = vst [vmem:[#allocation29_spill] sm:$0xff] %v4882_v59  ;;  %6883 = vst [vmem:[#allocation30_spill] sm:$0xff] %v4884_v60  ;;  %v4888_v61 = vld [vmem:[#allocation7 + $0x88] ss:$16 sps:$4 sm:$0xff]   ;;  %v4891_v62 = vld [vmem:[#allocation7 + $0xa4] ss:$16 sps:$4 sm:$0xff]  }
  0x4e   :  { %594 = vmatpush1.bf16.msra.mxu0 %v4768_v23  ;;  %635 = vmatpush1.bf16.msra.mxu1 %v4772_v24  ;;  %6884 = vst [vmem:[#allocation31_spill] sm:$0xff] %v4888_v61  ;;  %6885 = vst [vmem:[#allocation32_spill] sm:$0xff] %v4891_v62  ;;  %v4893_v63 = vld [vmem:[#allocation7 + $0xa0] ss:$16 sps:$4 sm:$0xff]   ;;  %v4895_v3 = vld [vmem:[#allocation7 + $0xac] ss:$16 sps:$4 sm:$0xff]  }
  0x4f   :  { %595 = vmatprep.subr.bf16.mxu0 %v4774_v25  ;;  %636 = vmatprep.subr.bf16.mxu1 %v4778_v26  ;;  %6886 = vst [vmem:[#allocation33_spill] sm:$0xff] %v4893_v63  ;;  %6887 = vst [vmem:[#allocation34_spill] sm:$0xff] %v4895_v3  ;;  %v4898_v4 = vld [vmem:[#allocation7 + $0xa8] ss:$16 sps:$4 sm:$0xff]   ;;  %v4903_v5 = vld [vmem:[#allocation7 + $0xc4] ss:$16 sps:$4 sm:$0xff]  }
  0x50   :  { %119 = vperm.xlu1 %3877, %v93_v38   ;;  %6888 = vst [vmem:[#allocation35_spill] sm:$0xff] %v4898_v4  ;;  %6889 = vst [vmem:[#allocation36_spill] sm:$0xff] %v4903_v5  ;;  %v4905_v27 = vld [vmem:[#allocation7 + $0xc0] ss:$16 sps:$4 sm:$0xff]   ;;  %v4907_v28 = vld [vmem:[#allocation7 + $0xcc] ss:$16 sps:$4 sm:$0xff]  }
  0x51   :  { %223 = vperm.xlu0 %3874, %v93_v38   ;;  %6890 = vst [vmem:[#allocation37_spill] sm:$0xff] %v4905_v27  ;;  %6891 = vst [vmem:[#allocation38_spill] sm:$0xff] %v4907_v28  ;;  %v4910_v35 = vld [vmem:[#allocation7 + $0xc8] ss:$16 sps:$4 sm:$0xff]   ;;  %v4915_v36 = vld [vmem:[#allocation7 + $0xe4] ss:$16 sps:$4 sm:$0xff]  }
  0x52   :  { %596 = vmatpush1.bf16.msra.mxu0 %v4786_v29  ;;  %637 = vmatpush1.bf16.msra.mxu1 %v4788_v30  ;;  %6892 = vst [vmem:[#allocation39_spill] sm:$0xff] %v4910_v35  ;;  %6893 = vst [vmem:[#allocation40_spill] sm:$0xff] %v4915_v36  ;;  %v4917_v37 = vld [vmem:[#allocation7 + $0xe0] ss:$16 sps:$4 sm:$0xff]   ;;  %v4919_v38 = vld [vmem:[#allocation7 + $0xec] ss:$16 sps:$4 sm:$0xff]  }
  0x53   :  { %597 = vmatprep.subr.bf16.mxu0 %v4790_v31  ;;  %638 = vmatprep.subr.bf16.mxu1 %v4794_v32  ;;  %6894 = vst [vmem:[#allocation41_spill] sm:$0xff] %v4917_v37  ;;  %6895 = vst [vmem:[#allocation42_spill] sm:$0xff] %v4919_v38 }
  0x54   :  { %124 = vperm.xlu1 %3877, %v94_v40  }
  0x55   :  { %227 = vperm.xlu0 %3874, %v94_v40   ;;  %v4922_v40 = vld [vmem:[#allocation7 + $0xe8] ss:$16 sps:$4 sm:$0xff]  }
  0x56   :  { %598 = vmatpush1.bf16.msra.mxu0 %v4798_v33  ;;  %639 = vmatpush1.bf16.msra.mxu1 %v4800_v34  ;;  %6896 = vst [vmem:[#allocation43_spill] sm:$0xff] %v4922_v40 }
  0x57   :  { %918 = vmatprep.subr.bf16.mxu0 %v4821_v39  ;;  %959 = vmatprep.subr.bf16.mxu1 %v4830_v42 }
  0x58   :  { %129 = vperm.xlu1 %3877, %v95_v45  }
  0x59   :  { %616 = vmatmul.mubr.bf16.vlgmr.msra.gmra.mrb[0].mxu0 %v6590_v0  ;;  %657 = vmatmul.mubr.bf16.vlgmr.msra.gmra.mrb[0].mxu1 %v6590_v0 }
  0x5a   :  { %950 = vmatprep.mubr.bf16.mxu0 %v6590_v0  ;;  %991 = vmatprep.mubr.bf16.mxu1 %v6590_v0 }
  0x5b   :  { %919 = vmatpush1.bf16.msra.mxu0 %v4828_v41  ;;  %960 = vmatpush1.bf16.msra.mxu1 %v4832_v43 }
  0x5c   :  { %920 = vmatprep.subr.bf16.mxu0 %v4834_v44  ;;  %961 = vmatprep.subr.bf16.mxu1 %v4845_v47  ;;  %v5086_v47 = vld [vmem:[#allocation5 + $0xe8] ss:$16 sps:$4 sm:$0xff]  }
  0x5d   :  { %231 = vperm.xlu0 %3874, %v95_v45   ;;  %134 = vperm.xlu1 %3877, %v96_v50   ;;  %v4927_v45 = vld [vmem:[#allocation5 + $0x4] ss:$16 sps:$4 sm:$0xff]   ;;  %6931 = vst [vmem:[#allocation78_spill] sm:$0xff] %v5086_v47 }
  0x5e   :  { %6897 = vst [vmem:[#allocation44_spill] sm:$0xff] %v4927_v45 }
  0x5f   :  { %921 = vmatpush1.bf16.msra.mxu0 %v4843_v46  ;;  %962 = vmatpush1.bf16.msra.mxu1 %v4847_v48 }
  0x60   :  { %922 = vmatprep.subr.bf16.mxu0 %v4849_v49  ;;  %963 = vmatprep.subr.bf16.mxu1 %v4860_v52 }
  0x61   :  { %235 = vperm.xlu0 %3874, %v96_v50   ;;  %v4929_v50 = vld [vmem:[#allocation5 + $0xc] ss:$16 sps:$4 sm:$0xff]  }
  0x62   :  { %6898 = vst [vmem:[#allocation45_spill] sm:$0xff] %v4929_v50 }
  0x63   :  { %923 = vmatpush1.bf16.msra.mxu0 %v4858_v51  ;;  %964 = vmatpush1.bf16.msra.mxu1 %v4862_v53 }
  0x64   :  { %924 = vmatprep.subr.bf16.mxu0 %v4864_v54  ;;  %965 = vmatprep.subr.bf16.mxu1 %v4872_v56  ;;  %v5027_v54 = vld [vmem:[#allocation5 + $0xc4] ss:$16 sps:$4 sm:$0xff]  }
  0x65   :  { %6923 = vst [vmem:[#allocation70_spill] sm:$0xff] %v5027_v54 }
  0x67   :  { %925 = vmatpush1.bf16.msra.mxu0 %v4870_v55  ;;  %966 = vmatpush1.bf16.msra.mxu1 %v4874_v57 }
  0x68   :  { %926 = vmatprep.subr.bf16.mxu0 %v4876_v58  ;;  %967 = vmatprep.subr.bf16.mxu1 %v4884_v60  ;;  %v5018_v60 = vld [vmem:[#allocation5 + $0xac] ss:$16 sps:$4 sm:$0xff]   ;;  %v5020_v58 = vld [vmem:[#allocation5 + $0xa0] ss:$16 sps:$4 sm:$0xff]  }
  0x69   :  { %6920 = vst [vmem:[#allocation67_spill] sm:$0xff] %v5018_v60  ;;  %6921 = vst [vmem:[#allocation68_spill] sm:$0xff] %v5020_v58 }
  0x6b   :  { %927 = vmatpush1.bf16.msra.mxu0 %v4882_v59  ;;  %968 = vmatpush1.bf16.msra.mxu1 %v4888_v61  ;;  %v5008_v61 = vld [vmem:[#allocation5 + $0x80] ss:$16 sps:$4 sm:$0xff]  }
  0x6c   :  { %928 = vmatprep.subr.bf16.mxu0 %v4891_v62  ;;  %969 = vmatprep.subr.bf16.mxu1 %v4895_v3  ;;  %v5004_v3 = vld [vmem:[#allocation5 + $0x8c] ss:$16 sps:$4 sm:$0xff]   ;;  %6917 = vst [vmem:[#allocation64_spill] sm:$0xff] %v5008_v61 }
  0x6d   :  { %6916 = vst [vmem:[#allocation63_spill] sm:$0xff] %v5004_v3 }
  0x6f   :  { %929 = vmatpush1.bf16.msra.mxu0 %v4893_v63  ;;  %970 = vmatpush1.bf16.msra.mxu1 %v4898_v4  ;;  %v5002_v63 = vld [vmem:[#allocation5 + $0x84] ss:$16 sps:$4 sm:$0xff]  }
  0x70   :  { %930 = vmatprep.subr.bf16.mxu0 %v4903_v5  ;;  %971 = vmatprep.subr.bf16.mxu1 %v4907_v28  ;;  %v4961_v28 = vld [vmem:[#allocation5 + $0x48] ss:$16 sps:$4 sm:$0xff]   ;;  %6915 = vst [vmem:[#allocation62_spill] sm:$0xff] %v5002_v63 }
  0x71   :  { %6908 = vst [vmem:[#allocation55_spill] sm:$0xff] %v4961_v28 }
  0x73   :  { %931 = vmatpush1.bf16.msra.mxu0 %v4905_v27  ;;  %972 = vmatpush1.bf16.msra.mxu1 %v4910_v35  ;;  %v4932_v35 = vld [vmem:[#allocation5] ss:$16 sps:$4 sm:$0xff]   ;;  %v4934_v27 = vld [vmem:[#allocation5 + $0x8] ss:$16 sps:$4 sm:$0xff]  }
  0x74   :  { %932 = vmatprep.subr.bf16.mxu0 %v4915_v36  ;;  %973 = vmatprep.subr.bf16.mxu1 %v4919_v38  ;;  %6899 = vst [vmem:[#allocation46_spill] sm:$0xff] %v4932_v35  ;;  %6900 = vst [vmem:[#allocation47_spill] sm:$0xff] %v4934_v27  ;;  %v4946_v38 = vld [vmem:[#allocation5 + $0x20] ss:$16 sps:$4 sm:$0xff]   ;;  %v4948_v36 = vld [vmem:[#allocation5 + $0x28] ss:$16 sps:$4 sm:$0xff]  }
  0x75   :  { %6903 = vst [vmem:[#allocation50_spill] sm:$0xff] %v4946_v38  ;;  %6904 = vst [vmem:[#allocation51_spill] sm:$0xff] %v4948_v36 }
  0x77   :  { %933 = vmatpush1.bf16.msra.mxu0 %v4917_v37  ;;  %974 = vmatpush1.bf16.msra.mxu1 %v4922_v40  ;;  %v4941_v40 = vld [vmem:[#allocation5 + $0x24] ss:$16 sps:$4 sm:$0xff]   ;;  %v4943_v37 = vld [vmem:[#allocation5 + $0x2c] ss:$16 sps:$4 sm:$0xff]  }
  0x78   :  { %1160 = vmatprep.subr.bf16.mxu0 %v4927_v45  ;;  %1201 = vmatprep.subr.bf16.mxu1 %v4929_v50  ;;  %6901 = vst [vmem:[#allocation48_spill] sm:$0xff] %v4941_v40  ;;  %6902 = vst [vmem:[#allocation49_spill] sm:$0xff] %v4943_v37  ;;  %v138_v45 = vlaneseq  ;;  %v4959_v50 = vld [vmem:[#allocation5 + $0x40] ss:$16 sps:$4 sm:$0xff]  }
  0x79   :  { %6907 = vst [vmem:[#allocation54_spill] sm:$0xff] %v4959_v50 }
  0x7a   :  { %951 = vmatmul.mubr.bf16.vlgmr.msra.gmra.mrb[4].mxu0 %v6590_v0  ;;  %992 = vmatmul.mubr.bf16.vlgmr.msra.gmra.mrb[4].mxu1 %v6590_v0  ;;  %v4963_v5 = vshrl.u32 %v138_v45, 7 }
  0x7b   :  { %1161 = vmatpush1.bf16.msra.mxu0 %v4932_v35  ;;  %1202 = vmatpush1.bf16.msra.mxu1 %v4934_v27  ;;  %v4955_v27 = vld [vmem:[#allocation5 + $0x44] ss:$16 sps:$4 sm:$0xff]   ;;  %v4957_v35 = vld [vmem:[#allocation5 + $0x4c] ss:$16 sps:$4 sm:$0xff]  }
  0x7c   :  { %1192 = vmatprep.mubr.bf16.mxu0 %v6590_v0  ;;  %1233 = vmatprep.mubr.bf16.mxu1 %v6590_v0  ;;  %6905 = vst [vmem:[#allocation52_spill] sm:$0xff] %v4955_v27  ;;  %6906 = vst [vmem:[#allocation53_spill] sm:$0xff] %v4957_v35  ;;  %v4969_v0 = vld [vmem:[#allocation5 + $0x64] ss:$16 sps:$4 sm:$0xff]   ;;  %v4983_v45 = vsub.s32 2, %v4963_v5  ;;  %v252_v4 = vsub.s32 7, %v4963_v5 }
  0x7d   :  { %1162 = vmatprep.subr.bf16.mxu0 %v4941_v40  ;;  %1203 = vmatprep.subr.bf16.mxu1 %v4943_v37  ;;  %6909 = vst [vmem:[#allocation56_spill] sm:$0xff] %v4963_v5  ;;  %6910 = vst [vmem:[#allocation57_spill] sm:$0xff] %v4969_v0  ;;  %v4975_v37 = vld [vmem:[#allocation5 + $0x68] ss:$16 sps:$4 sm:$0xff]   ;;  %v4978_v40 = vsub.s32 0, %v4963_v5  ;;  %v148_v62 = vsub.s32 4, %v4963_v5 }
  0x7e   :  { %6913 = vst [vmem:[#allocation60_spill] sm:$0xff] %v4975_v37 }
  0x7f   :  { %1163 = vmatpush1.bf16.msra.mxu0 %v4946_v38  ;;  %1204 = vmatpush1.bf16.msra.mxu1 %v4948_v36  ;;  %v4971_v36 = vld [vmem:[#allocation5 + $0x6c] ss:$16 sps:$4 sm:$0xff]   ;;  %v4973_v38 = vld [vmem:[#allocation5 + $0x60] ss:$16 sps:$4 sm:$0xff]  }
  0x80   :  { %1164 = vmatprep.subr.bf16.mxu0 %v4955_v27  ;;  %1205 = vmatprep.subr.bf16.mxu1 %v4957_v35  ;;  %6911 = vst [vmem:[#allocation58_spill] sm:$0xff] %v4971_v36  ;;  %6912 = vst [vmem:[#allocation59_spill] sm:$0xff] %v4973_v38  ;;  %v248_v35 = vsub.s32 5, %v4963_v5 }
  0x83   :  { %1165 = vmatpush1.bf16.msra.mxu0 %v4959_v50  ;;  %1206 = vmatpush1.bf16.msra.mxu1 %v4961_v28  ;;  %v4986_v28 = vsub.s32 1, %v4963_v5  ;;  %v4989_v50 = vsub.s32 3, %v4963_v5 }
  0x84   :  { %1166 = vmatprep.subr.bf16.mxu0 %v4969_v0  ;;  %1207 = vmatprep.subr.bf16.mxu1 %v4971_v36  ;;  %v87_v0 = vld [vmem:[%s6565_s1] sm:$0xff] }
  0x85   :  { %v241_v59 = vrot.slane %v87_v0, %v4986_v28  ;;  %v245_v57 = vrot.slane %v87_v0, %v4989_v50  ;;  %v249_v55 = vrot.slane %v87_v0, %v248_v35  ;;  %v253_v56 = vrot.slane %v87_v0, %v252_v4  ;;  %v5036_v35 = vld [vmem:[#allocation5 + $0xcc] ss:$16 sps:$4 sm:$0xff]  }
  0x86   :  { %6925 = vst [vmem:[#allocation72_spill] sm:$0xff] %v5036_v35 }
  0x87   :  { %1167 = vmatpush1.bf16.msra.mxu0 %v4973_v38  ;;  %1208 = vmatpush1.bf16.msra.mxu1 %v4975_v37  ;;  %v152_v38 = vsub.s32 6, %v4963_v5  ;;  %v5016_v37 = vld [vmem:[#allocation5 + $0xa4] ss:$16 sps:$4 sm:$0xff]   ;;  %v141_v5 = vrot.slane %v87_v0, %v4978_v40  ;;  %v5039_v4 = vrot.slane %v241_v59, %v4986_v28 }
  0x88   :  { %1168 = vmatprep.subr.bf16.mxu0 %v5002_v63  ;;  %1209 = vmatprep.subr.bf16.mxu1 %v5004_v3  ;;  %6919 = vst [vmem:[#allocation66_spill] sm:$0xff] %v5016_v37  ;;  %v5025_v63 = vld [vmem:[#allocation5 + $0xa8] ss:$16 sps:$4 sm:$0xff]   ;;  %v149_v3 = vrot.slane %v87_v0, %v148_v62  ;;  %v5045_v62 = vrot.slane %v245_v57, %v4986_v28 }
  0x89   :  { %6922 = vst [vmem:[#allocation69_spill] sm:$0xff] %v5025_v63  ;;  %v153_v53 = vrot.slane %v87_v0, %v152_v38  ;;  %v5051_v38 = vrot.slane %v253_v56, %v4986_v28  ;;  %v5058_v59 = vrot.slane %v141_v5, %v4978_v40 }
  0x8a   :  { %v5064_v57 = vrot.slane %v149_v3, %v4978_v40 }
  0x8b   :  { %1169 = vmatpush1.bf16.msra.mxu0 %v5008_v61  ;;  %v145_v61 = vrot.slane %v87_v0, %v4983_v45  ;;  %v5048_v0 = vrot.slane %v249_v55, %v4986_v28  ;;  %v5067_v55 = vrot.slane %v153_v53, %v4978_v40  ;;  %v5079_v53 = vld [vmem:[#allocation5 + $0xe0] ss:$16 sps:$4 sm:$0xff]  }
  0x8c   :  { %1170 = vmatprep.subr.bf16.mxu0 %v5016_v37  ;;  %6930 = vst [vmem:[#allocation77_spill] sm:$0xff] %v5079_v53 }
  0x8f   :  { %1171 = vmatpush1.bf16.msra.mxu0 %v5020_v58  ;;  %v5061_v58 = vrot.slane %v145_v61, %v4978_v40 }
  0x90   :  { %1172 = vmatprep.subr.bf16.mxu0 %v5027_v54  ;;  %v5072_v54 = vld [vmem:[#allocation5 + $0xec] ss:$16 sps:$4 sm:$0xff]  }
  0x91   :  { %6929 = vst [vmem:[#allocation76_spill] sm:$0xff] %v5072_v54 }
  0xbb   :  { %v4993_v27 = vpop.permute.xlu1 %104 }
  0xbc   :  { %6914 = vst [vmem:[#allocation61_spill] sm:$0xff] %v4993_v27  ;;  %v5010_v27 = vld [vmem:[#allocation5 + $0x88] ss:$16 sps:$4 sm:$0xff]  }
  0xbd   :  { %6918 = vst [vmem:[#allocation65_spill] sm:$0xff] %v5010_v27  ;;  %1210 = vmatpush1.bf16.msra.mxu1 %v5010_v27  ;;  %v5042_v27 = vld [vmem:[#allocation5 + $0xc0] ss:$16 sps:$4 sm:$0xff]  }
  0xbe   :  { %1211 = vmatprep.subr.bf16.mxu1 %v5018_v60  ;;  %6926 = vst [vmem:[#allocation73_spill] sm:$0xff] %v5042_v27  ;;  %v5055_v60 = vld [vmem:[#allocation5 + $0xc8] ss:$16 sps:$4 sm:$0xff]   ;;  %1173 = vmatpush1.bf16.msra.mxu0 %v5042_v27 }
  0xbf   :  { %v4998_v36 = vpop.permute.xlu0 %99  ;;  %6927 = vst [vmem:[#allocation74_spill] sm:$0xff] %v5055_v60 }
  0xc0   :  { %v5030_v51 = vpop.permute.xlu1 %211 }
  0xc1   :  { %6924 = vst [vmem:[#allocation71_spill] sm:$0xff] %v5030_v51  ;;  %1212 = vmatpush1.bf16.msra.mxu1 %v5025_v63  ;;  %v5070_v63 = vld [vmem:[#allocation5 + $0xe4] ss:$16 sps:$4 sm:$0xff]  }
  0xc2   :  { %1213 = vmatprep.subr.bf16.mxu1 %v5036_v35  ;;  %6928 = vst [vmem:[#allocation75_spill] sm:$0xff] %v5070_v63  ;;  %1174 = vmatprep.subr.bf16.mxu0 %v5070_v63 }
  0xc3   :  { %1175 = vmatpush1.bf16.msra.mxu0 %v5079_v53 }
  0xc4   :  { %v5032_v52 = vpop.permute.xlu0 %207  ;;  %1292 = vmatprep.subr.bf16.mxu0 %v4715_v1 }
  0xc5   :  { %1214 = vmatpush1.bf16.msra.mxu1 %v5055_v60 }
  0xc6   :  { %1215 = vmatprep.subr.bf16.mxu1 %v5072_v54 }
  0xc7   :  { %v110_v3 = vpop.permute.xlu1 %109 }
  0xc8   :  { %v216_v56 = vpop.permute.xlu0 %215  ;;  %v182_v49 = vmul.f32 %v5058_v59, %v110_v3  ;;  %v183_v35 = vmul.f32 %v5061_v58, %v110_v3  ;;  %v184_v48 = vmul.f32 %v5064_v57, %v110_v3  ;;  %v185_v46 = vmul.f32 %v5067_v55, %v110_v3 }
  0xc9   :  { %v282_v37 = vmul.f32 %v5039_v4, %v216_v56  ;;  %v283_v5 = vmul.f32 %v5045_v62, %v216_v56  ;;  %v284_v61 = vmul.f32 %v5048_v0, %v216_v56  ;;  %v285_v51 = vmul.f32 %v5051_v38, %v216_v56  ;;  %1216 = vmatpush1.bf16.msra.mxu1 %v5086_v47 }
  0xca   :  { %1333 = vmatprep.subr.bf16.mxu1 %v4717_v2 }
  0xcb   :  { %v5090_v27 = vadd.f32 %v282_v37, %v182_v49  ;;  %v5092_v44 = vadd.f32 %v284_v61, %v184_v48  ;;  %v5094_v43 = vadd.f32 %v283_v5, %v183_v35  ;;  %v5096_v41 = vadd.f32 %v285_v51, %v185_v46  ;;  %v115_v42 = vpop.permute.xlu1 %114 }
  0xcc   :  { %v220_v56 = vpop.permute.xlu0 %219  ;;  %v186_v54 = vmul.f32 %v5058_v59, %v115_v42  ;;  %v187_v49 = vmul.f32 %v5061_v58, %v115_v42  ;;  %v188_v48 = vmul.f32 %v5064_v57, %v115_v42  ;;  %v189_v46 = vmul.f32 %v5067_v55, %v115_v42 }
  0xcd   :  { %6932 = vst [vmem:[#allocation79_spill] sm:$0xff] %v5090_v27  ;;  %6933 = vst [vmem:[#allocation80_spill] sm:$0xff] %v5092_v44  ;;  %v286_v3 = vmul.f32 %v5039_v4, %v220_v56  ;;  %v287_v60 = vmul.f32 %v5045_v62, %v220_v56  ;;  %v288_v39 = vmul.f32 %v5048_v0, %v220_v56 }
  0xce   :  { %6934 = vst [vmem:[#allocation81_spill] sm:$0xff] %v5094_v43  ;;  %6935 = vst [vmem:[#allocation82_spill] sm:$0xff] %v5096_v41  ;;  %v289_v51 = vmul.f32 %v5051_v38, %v220_v56 }
  0xcf   :  { %v5110_v35 = vadd.f32 %v286_v3, %v186_v54  ;;  %v5112_v5 = vadd.f32 %v288_v39, %v188_v48  ;;  %v5114_v61 = vadd.f32 %v287_v60, %v187_v49  ;;  %v120_v41 = vpop.permute.xlu1 %119 }
  0xd0   :  { %v224_v37 = vpop.permute.xlu0 %223  ;;  %v190_v1 = vmul.f32 %v5058_v59, %v120_v41  ;;  %v191_v2 = vmul.f32 %v5061_v58, %v120_v41  ;;  %v192_v54 = vmul.f32 %v5064_v57, %v120_v41  ;;  %v193_v39 = vmul.f32 %v5067_v55, %v120_v41 }
  0xd1   :  { %6936 = vst [vmem:[#allocation83_spill] sm:$0xff] %v5110_v35  ;;  %6937 = vst [vmem:[#allocation84_spill] sm:$0xff] %v5112_v5  ;;  %v290_v43 = vmul.f32 %v5039_v4, %v224_v37  ;;  %v291_v44 = vmul.f32 %v5045_v62, %v224_v37  ;;  %v292_v42 = vmul.f32 %v5048_v0, %v224_v37 }
  0xd2   :  { %6938 = vst [vmem:[#allocation85_spill] sm:$0xff] %v5114_v61  ;;  %v293_v56 = vmul.f32 %v5051_v38, %v224_v37  ;;  %v5124_v3 = vadd.f32 %v289_v51, %v189_v46 }
  0xd3   :  { %v5126_v49 = vadd.f32 %v290_v43, %v190_v1  ;;  %v5128_v48 = vadd.f32 %v292_v42, %v192_v54  ;;  %v5130_v61 = vadd.f32 %v291_v44, %v191_v2  ;;  %v125_v37 = vpop.permute.xlu1 %124 }
  0xd4   :  { %6939 = vst [vmem:[#allocation86_spill] sm:$0xff] %v5124_v3  ;;  %v228_v60 = vpop.permute.xlu0 %227  ;;  %v5132_v5 = vadd.f32 %v293_v56, %v193_v39  ;;  %v194_v41 = vmul.f32 %v5058_v59, %v125_v37  ;;  %v195_v46 = vmul.f32 %v5061_v58, %v125_v37  ;;  %v196_v43 = vmul.f32 %v5064_v57, %v125_v37 }
  0xd5   :  { %6940 = vst [vmem:[#allocation87_spill] sm:$0xff] %v5126_v49  ;;  %6941 = vst [vmem:[#allocation88_spill] sm:$0xff] %v5128_v48  ;;  %v294_v35 = vmul.f32 %v5039_v4, %v228_v60  ;;  %v295_v27 = vmul.f32 %v5045_v62, %v228_v60  ;;  %v296_v47 = vmul.f32 %v5048_v0, %v228_v60 }
  0xd6   :  { %6942 = vst [vmem:[#allocation89_spill] sm:$0xff] %v5130_v61  ;;  %6943 = vst [vmem:[#allocation90_spill] sm:$0xff] %v5132_v5  ;;  %v197_v51 = vmul.f32 %v5067_v55, %v125_v37  ;;  %v297_v44 = vmul.f32 %v5051_v38, %v228_v60 }
  0xd7   :  { %v5142_v56 = vadd.f32 %v294_v35, %v194_v41  ;;  %v5144_v1 = vadd.f32 %v296_v47, %v196_v43  ;;  %v5146_v2 = vadd.f32 %v295_v27, %v195_v46  ;;  %v130_v54 = vpop.permute.xlu1 %129 }
  0xd8   :  { %v198_v37 = vmul.f32 %v5058_v59, %v130_v54  ;;  %v199_v60 = vmul.f32 %v5061_v58, %v130_v54  ;;  %v200_v35 = vmul.f32 %v5064_v57, %v130_v54  ;;  %v201_v47 = vmul.f32 %v5067_v55, %v130_v54 }
  0xd9   :  { %6944 = vst [vmem:[#allocation91_spill] sm:$0xff] %v5142_v56  ;;  %6945 = vst [vmem:[#allocation92_spill] sm:$0xff] %v5144_v1  ;;  %v5156_v41 = vadd.f32 %v297_v44, %v197_v51 }
  0xda   :  { %6946 = vst [vmem:[#allocation93_spill] sm:$0xff] %v5146_v2 }
  0xdb   :  { %6947 = vst [vmem:[#allocation94_spill] sm:$0xff] %v5156_v41 }
  0xdc   :  { %v232_v42 = vpop.permute.xlu0 %231 }
  0xdd   :  { %v298_v39 = vmul.f32 %v5039_v4, %v232_v42  ;;  %v299_v5 = vmul.f32 %v5045_v62, %v232_v42  ;;  %v300_v61 = vmul.f32 %v5048_v0, %v232_v42  ;;  %v301_v48 = vmul.f32 %v5051_v38, %v232_v42  ;;  %v135_v42 = vpop.permute.xlu1 %134 }
  0xde   :  { %v202_v51 = vmul.f32 %v5058_v59, %v135_v42  ;;  %v203_v44 = vmul.f32 %v5061_v58, %v135_v42 }
  0xdf   :  { %v5158_v46 = vadd.f32 %v298_v39, %v198_v37  ;;  %v5160_v43 = vadd.f32 %v300_v61, %v200_v35  ;;  %v5162_v2 = vadd.f32 %v299_v5, %v199_v60  ;;  %v5164_v1 = vadd.f32 %v301_v48, %v201_v47 }
  0xe0   :  { %v236_v27 = vpop.permute.xlu0 %235  ;;  %v204_v61 = vmul.f32 %v5064_v57, %v135_v42  ;;  %v205_v5 = vmul.f32 %v5067_v55, %v135_v42  ;;  %v174_v35 = vmul.f32 %v5058_v59, %v4998_v36  ;;  %v274_v47 = vmul.f32 %v5039_v4, %v5032_v52 }
  0xe1   :  { %6948 = vst [vmem:[#allocation95_spill] sm:$0xff] %v5158_v46  ;;  %6949 = vst [vmem:[#allocation96_spill] sm:$0xff] %v5160_v43  ;;  %v302_v56 = vmul.f32 %v5039_v4, %v236_v27  ;;  %v303_v49 = vmul.f32 %v5045_v62, %v236_v27  ;;  %v304_v3 = vmul.f32 %v5048_v0, %v236_v27 }
  0xe2   :  { %6950 = vst [vmem:[#allocation97_spill] sm:$0xff] %v5162_v2  ;;  %6951 = vst [vmem:[#allocation98_spill] sm:$0xff] %v5164_v1  ;;  %v305_v54 = vmul.f32 %v5051_v38, %v236_v27  ;;  %v175_v27 = vmul.f32 %v5061_v58, %v4998_v36  ;;  %v275_v42 = vmul.f32 %v5045_v62, %v5032_v52 }
  0xe3   :  { %v5174_v39 = vadd.f32 %v302_v56, %v202_v51  ;;  %v5176_v48 = vadd.f32 %v304_v3, %v204_v61  ;;  %v5178_v37 = vadd.f32 %v303_v49, %v203_v44  ;;  %v88_v3 = vld [vmem:[%s6567_s3] sm:$0xf]  ;;  %v306_v49 = vadd.f32 %v274_v47, %v174_v35 }
  0xe4   :  { %v5180_v60 = vadd.f32 %v305_v54, %v205_v5  ;;  %v5194_v56 = vrot.slane %v88_v3, %v4978_v40  ;;  %v307_v54 = vadd.f32 %v275_v42, %v175_v27  ;;  %v5197_v51 = vrot.slane %v88_v3, %v4986_v28 }
  0xe5   :  { %6952 = vst [vmem:[#allocation99_spill] sm:$0xff] %v5174_v39  ;;  %6953 = vst [vmem:[#allocation100_spill] sm:$0xff] %v5176_v48  ;;  %v177_v44 = vmul.f32 %v5067_v55, %v4998_v36  ;;  %v277_v61 = vmul.f32 %v5051_v38, %v5032_v52  ;;  %v5206_v42 = vrot.slane %v88_v3, %v4989_v50 }
  0xe6   :  { %6954 = vst [vmem:[#allocation101_spill] sm:$0xff] %v5178_v37  ;;  %6955 = vst [vmem:[#allocation102_spill] sm:$0xff] %v5180_v60  ;;  %v359_v5 = vadd.f32 %v5194_v56, %v306_v49  ;;  %v360_v48 = vadd.f32 %v5197_v51, %v307_v54  ;;  %v176_v46 = vmul.f32 %v5064_v57, %v4998_v36 }
  0xe7   :  { %6956 = vst [vmem:[#allocation103_spill] sm:$0xff] %v5194_v56  ;;  %v309_v27 = vadd.f32 %v277_v61, %v177_v44  ;;  %v276_v49 = vmul.f32 %v5048_v0, %v5032_v52  ;;  %v5214_v44 = vrot.slane %v88_v3, %v4983_v45 }
  0xe9   :  { %6957 = vst [vmem:[#allocation104_spill] sm:$0xff] %v5214_v44 }
 0x12c   :  { %v617_v60 = vpop.f32.mrb[0].mxu0  ;;  %v658_v37 = vpop.f32.mrb[0].mxu1 }
 0x12d   :  { %v665_v35 = vadd.f32 %v617_v60, %v359_v5  ;;  %v619_v47 = vpop.f32.mrb[1].mxu0  ;;  %v660_v39 = vpop.f32.mrb[1].mxu1  ;;  %v308_v60 = vadd.f32 %v276_v49, %v176_v46 }
 0x12e   :  { %v666_v1 = vadd.f32 %v619_v47, %v360_v48  ;;  %v621_v2 = vpop.f32.mrb[2].mxu0  ;;  %v662_v43 = vpop.f32.mrb[2].mxu1  ;;  %v362_v48 = vadd.f32 %v5206_v42, %v309_v27 }
 0x12f   :  { %v3695_v41 = vmul.f32 -1.442695, %v665_v35  ;;  %v622_v53 = vpop.f32.mrb[3].mxu0  ;;  %v663_v63 = vpop.f32.mrb[3].mxu1  ;;  %v361_v43 = vadd.f32 %v5214_v44, %v308_v60  ;;  %v5220_v60 = vld [vmem:[#allocation2] ss:$16 sps:$4 sm:$0xff]  }
 0x130   :  { %v3696_v54 = vmul.f32 -1.442695, %v666_v1  ;;  %v668_v2 = vadd.f32 %v660_v39, %v362_v48 }
 0x131   :  { %4032 = vpow2.f32 %v3695_v41  ;;  %v667_v36 = vadd.f32 %v658_v37, %v361_v43  ;;  %v5226_v43 = vld [vmem:[#allocation2 + $0x24] ss:$16 sps:$4 sm:$0xff]  }
 0x132   :  { %4034 = vpow2.f32 %v3696_v54  ;;  %v3697_v61 = vmul.f32 -1.442695, %v668_v2  ;;  %v5223_v2 = vld [vmem:[#allocation2 + $0x8] ss:$16 sps:$4 sm:$0xff]  }
 0x134   :  { %4036 = vpow2.f32 %v3697_v61  ;;  %v6958_v61 = vmov 0  }
 0x135   :  { %4038 = vtanh.f32 %v667_v36 }
 0x13b   :  { %v4033_v5 = vpop.eup %4032 }
 0x13c   :  { %v4035_v47 = vpop.eup %4034  ;;  %v672_v52 = vadd.f32 1.0, %v4033_v5  ;;  %v6981_v5 = vld [vmem:[#allocation33_spill] sm:$0xff] }
 0x13d   :  { %v678_v63 = vadd.f32 1.0, %v4035_v47  ;;  %v6982_v47 = vld [vmem:[#allocation35_spill] sm:$0xff] }
 0x13e   :  { %4040 = vrcp.f32 %v672_v52  ;;  %v4037_v53 = vpop.eup %4036 }
 0x13f   :  { %4042 = vrcp.f32 %v678_v63  ;;  %v4039_v1 = vpop.eup %4038  ;;  %v685_v3 = vadd.f32 1.0, %v4037_v53  ;;  %v6983_v63 = vld [vmem:[#allocation36_spill] sm:$0xff]  ;;  %v6984_v53 = vld [vmem:[#allocation38_spill] sm:$0xff] }
 0x141   :  { %4044 = vrcp.f32 %v685_v3  ;;  %v6988_v3 = vld [vmem:[#allocation42_spill] sm:$0xff] }
 0x148   :  { %v4041_v41 = vpop.eup %4040 }
 0x149   :  { %v4043_v46 = vpop.eup %4042  ;;  %v689_v35 = vmul.f32 %v4041_v41, %v4039_v1  ;;  %v6985_v41 = vld [vmem:[#allocation37_spill] sm:$0xff] }
 0x14a   :  { %v688_v27 = vmul.f32 0.0, %v4043_v46  ;;  %v6986_v46 = vld [vmem:[#allocation39_spill] sm:$0xff] }
 0x14b   :  { %v4045_v37 = vpop.eup %4044 }
 0x14c   :  { %v5217_v39 = vadd.f32 %v689_v35, %v688_v27  ;;  %v6987_v35 = vld [vmem:[#allocation40_spill] sm:$0xff]  ;;  %v6989_v27 = vld [vmem:[#allocation41_spill] sm:$0xff] }
 0x14e   :  { %4046 = vtanh.f32 %v5217_v39 }
 0x158   :  { %v4047_v49 = vpop.eup %4046 }
 0x159   :  { %v692_v54 = vmul.f32 %v4047_v49, %v4045_v37  ;;  %v6990_v37 = vld [vmem:[#allocation43_spill] sm:$0xff]  ;;  %v6991_v49 = vld [vmem:[#allocation44_spill] sm:$0xff] }
 0x15b   :  { %v693_v48 = vpack.c.bf16 %v692_v54, %v692_v54  ;;  %v6992_v54 = vld [vmem:[#allocation45_spill] sm:$0xff] }
 0x15d   :  { %1193 = vmatmul.mubr.bf16.vlgmr.msra.gmra.mrb[8].mxu0 %v693_v48  ;;  %1234 = vmatmul.mubr.bf16.vlgmr.msra.gmra.mrb[8].mxu1 %v693_v48 }
 0x15e   :  { %1293 = vmatpush1.bf16.msra.mxu0 %v5220_v60  ;;  %1334 = vmatpush1.bf16.msra.mxu1 %v5223_v2 }
 0x15f   :  { %1294 = vmatprep.subr.bf16.mxu0 %v5226_v43  ;;  %1335 = vmatprep.subr.bf16.mxu1 %v4721_v6  ;;  %v6959_v6 = vld [vmem:[#allocation12_spill] sm:$0xff] }
 0x160   :  { %1324 = vmatprep.mubr.bf16.mxu0 %v6958_v61  ;;  %1365 = vmatprep.mubr.bf16.mxu1 %v6958_v61 }
 0x162   :  { %1295 = vmatpush1.bf16.msra.mxu0 %v4723_v7  ;;  %1336 = vmatpush1.bf16.msra.mxu1 %v4725_v8  ;;  %v6960_v7 = vld [vmem:[#allocation14_spill] sm:$0xff]  ;;  %v6961_v8 = vld [vmem:[#allocation13_spill] sm:$0xff] }
 0x163   :  { %1296 = vmatprep.subr.bf16.mxu0 %v4728_v9  ;;  %1337 = vmatprep.subr.bf16.mxu1 %v4730_v10  ;;  %v6962_v9 = vld [vmem:[#allocation15_spill] sm:$0xff]  ;;  %v6963_v10 = vld [vmem:[#allocation16_spill] sm:$0xff] }
 0x166   :  { %1297 = vmatpush1.bf16.msra.mxu0 %v4732_v11  ;;  %1338 = vmatpush1.bf16.msra.mxu1 %v4734_v12  ;;  %v6964_v11 = vld [vmem:[#allocation18_spill] sm:$0xff]  ;;  %v6965_v12 = vld [vmem:[#allocation17_spill] sm:$0xff] }
 0x167   :  { %1298 = vmatprep.subr.bf16.mxu0 %v4738_v13  ;;  %1339 = vmatprep.subr.bf16.mxu1 %v4742_v14  ;;  %v6966_v13 = vld [vmem:[#allocation19_spill] sm:$0xff]  ;;  %v6967_v14 = vld [vmem:[#allocation20_spill] sm:$0xff] }
 0x16a   :  { %1299 = vmatpush1.bf16.msra.mxu0 %v4744_v15  ;;  %1340 = vmatpush1.bf16.msra.mxu1 %v4748_v16  ;;  %v6968_v15 = vld [vmem:[#allocation22_spill] sm:$0xff]  ;;  %v6969_v16 = vld [vmem:[#allocation21_spill] sm:$0xff] }
 0x16b   :  { %1300 = vmatprep.subr.bf16.mxu0 %v4750_v17  ;;  %1341 = vmatprep.subr.bf16.mxu1 %v4754_v18  ;;  %v6970_v17 = vld [vmem:[#allocation23_spill] sm:$0xff]  ;;  %v6971_v18 = vld [vmem:[#allocation24_spill] sm:$0xff] }
 0x16e   :  { %1301 = vmatpush1.bf16.msra.mxu0 %v4756_v19  ;;  %1342 = vmatpush1.bf16.msra.mxu1 %v4758_v20  ;;  %v6972_v19 = vld [vmem:[#allocation26_spill] sm:$0xff]  ;;  %v6973_v20 = vld [vmem:[#allocation25_spill] sm:$0xff] }
 0x16f   :  { %1302 = vmatprep.subr.bf16.mxu0 %v4762_v21  ;;  %1343 = vmatprep.subr.bf16.mxu1 %v4766_v22  ;;  %v6974_v21 = vld [vmem:[#allocation27_spill] sm:$0xff]  ;;  %v6975_v22 = vld [vmem:[#allocation28_spill] sm:$0xff] }
 0x172   :  { %1303 = vmatpush1.bf16.msra.mxu0 %v4768_v23  ;;  %1344 = vmatpush1.bf16.msra.mxu1 %v4772_v24  ;;  %v6976_v23 = vld [vmem:[#allocation30_spill] sm:$0xff]  ;;  %v6977_v24 = vld [vmem:[#allocation29_spill] sm:$0xff] }
 0x173   :  { %1304 = vmatprep.subr.bf16.mxu0 %v4774_v25  ;;  %1345 = vmatprep.subr.bf16.mxu1 %v4778_v26  ;;  %v6978_v25 = vld [vmem:[#allocation31_spill] sm:$0xff]  ;;  %v952_v26 = vpop.f32.mrb[4].mxu0 }
 0x176   :  { %1305 = vmatpush1.bf16.msra.mxu0 %v4786_v29  ;;  %1346 = vmatpush1.bf16.msra.mxu1 %v4788_v30  ;;  %v6979_v29 = vld [vmem:[#allocation32_spill] sm:$0xff]  ;;  %v6980_v30 = vld [vmem:[#allocation34_spill] sm:$0xff] }
 0x177   :  { %1306 = vmatprep.subr.bf16.mxu0 %v4790_v31  ;;  %1347 = vmatprep.subr.bf16.mxu1 %v4794_v32  ;;  %v954_v31 = vpop.f32.mrb[5].mxu0 }
 0x178   :  { %v956_v32 = vpop.f32.mrb[6].mxu0 }
 0x17a   :  { %1307 = vmatpush1.bf16.msra.mxu0 %v4798_v33  ;;  %1348 = vmatpush1.bf16.msra.mxu1 %v4800_v34  ;;  %v993_v33 = vpop.f32.mrb[4].mxu1  ;;  %v957_v34 = vpop.f32.mrb[7].mxu0 }
 0x17b   :  { %1404 = vmatprep.subr.bf16.mxu0 %v6959_v6  ;;  %1445 = vmatprep.subr.bf16.mxu1 %v6960_v7  ;;  %v995_v36 = vpop.f32.mrb[5].mxu1 }
 0x17c   :  { %v997_v52 = vpop.f32.mrb[6].mxu1 }
 0x17d   :  { %1325 = vmatmul.mubr.bf16.vlgmr.msra.gmra.mrb[12].mxu0 %v693_v48  ;;  %1366 = vmatmul.mubr.bf16.vlgmr.msra.gmra.mrb[12].mxu1 %v693_v48  ;;  %v998_v1 = vpop.f32.mrb[7].mxu1  ;;  %v6993_v48 = vld [vmem:[#allocation61_spill] sm:$0xff] }
 0x17e   :  { %1405 = vmatpush1.bf16.msra.mxu0 %v6961_v8  ;;  %1446 = vmatpush1.bf16.msra.mxu1 %v6962_v9  ;;  %v178_v6 = vmul.f32 %v5058_v59, %v6993_v48  ;;  %v179_v7 = vmul.f32 %v5061_v58, %v6993_v48  ;;  %v180_v8 = vmul.f32 %v5064_v57, %v6993_v48  ;;  %v1242_v57 = vld [vmem:[%s6570_s6] sm:$0xf] }
 0x17f   :  { %1406 = vmatprep.subr.bf16.mxu0 %v6963_v10  ;;  %1447 = vmatprep.subr.bf16.mxu1 %v6964_v11  ;;  %v181_v9 = vmul.f32 %v5067_v55, %v6993_v48  ;;  %v6994_v10 = vld [vmem:[#allocation71_spill] sm:$0xff]  ;;  %v5314_v55 = vrot.slane %v1242_v57, %v4978_v40  ;;  %v5322_v34 = vrot.slane %v1242_v57, %v4989_v50 }
 0x180   :  { %1436 = vmatprep.mubr.bf16.mxu0 %v6958_v61  ;;  %1477 = vmatprep.mubr.bf16.mxu1 %v6958_v61  ;;  %v278_v11 = vmul.f32 %v5039_v4, %v6994_v10  ;;  %v281_v59 = vmul.f32 %v5051_v38, %v6994_v10 }
 0x181   :  { %6996 = vst [vmem:[#allocation14_spill] sm:$0xff] %v5322_v34 }
 0x182   :  { %1407 = vmatpush1.bf16.msra.mxu0 %v6965_v12  ;;  %1448 = vmatpush1.bf16.msra.mxu1 %v6966_v13  ;;  %v279_v12 = vmul.f32 %v5045_v62, %v6994_v10  ;;  %v280_v13 = vmul.f32 %v5048_v0, %v6994_v10  ;;  %v5317_v62 = vrot.slane %v1242_v57, %v4986_v28 }
 0x183   :  { %1408 = vmatprep.subr.bf16.mxu0 %v6967_v14  ;;  %1449 = vmatprep.subr.bf16.mxu1 %v6968_v15  ;;  %v310_v14 = vadd.f32 %v278_v11, %v178_v6 }
 0x184   :  { %v312_v58 = vadd.f32 %v280_v13, %v180_v8  ;;  %v311_v15 = vadd.f32 %v279_v12, %v179_v7  ;;  %6995 = vst [vmem:[#allocation12_spill] sm:$0xff] %v5317_v62 }
 0x186   :  { %1409 = vmatpush1.bf16.msra.mxu0 %v6969_v16  ;;  %1450 = vmatpush1.bf16.msra.mxu1 %v6970_v17  ;;  %v313_v16 = vadd.f32 %v281_v59, %v181_v9 }
 0x187   :  { %1410 = vmatprep.subr.bf16.mxu0 %v6971_v18  ;;  %1451 = vmatprep.subr.bf16.mxu1 %v6972_v19 }
 0x18a   :  { %1411 = vmatpush1.bf16.msra.mxu0 %v6973_v20  ;;  %1452 = vmatpush1.bf16.msra.mxu1 %v6974_v21 }
 0x18b   :  { %1412 = vmatprep.subr.bf16.mxu0 %v6975_v22  ;;  %1453 = vmatprep.subr.bf16.mxu1 %v6976_v23 }
 0x18e   :  { %1413 = vmatpush1.bf16.msra.mxu0 %v6977_v24  ;;  %1454 = vmatpush1.bf16.msra.mxu1 %v6978_v25 }
 0x18f   :  { %1414 = vmatprep.subr.bf16.mxu0 %v6979_v29  ;;  %1455 = vmatprep.subr.bf16.mxu1 %v6980_v30 }
 0x192   :  { %1415 = vmatpush1.bf16.msra.mxu0 %v6981_v5  ;;  %1456 = vmatpush1.bf16.msra.mxu1 %v6982_v47 }
 0x193   :  { %1416 = vmatprep.subr.bf16.mxu0 %v6983_v63  ;;  %1457 = vmatprep.subr.bf16.mxu1 %v6984_v53 }
 0x196   :  { %1417 = vmatpush1.bf16.msra.mxu0 %v6985_v41  ;;  %1458 = vmatpush1.bf16.msra.mxu1 %v6986_v46 }
 0x197   :  { %1418 = vmatprep.subr.bf16.mxu0 %v6987_v35  ;;  %1459 = vmatprep.subr.bf16.mxu1 %v6988_v3  ;;  %v365_v35 = vadd.f32 %v5214_v44, %v312_v58 }
 0x19a   :  { %1419 = vmatpush1.bf16.msra.mxu0 %v6989_v27  ;;  %1460 = vmatpush1.bf16.msra.mxu1 %v6990_v37 }
 0x19b   :  { %1486 = vmatprep.subr.bf16.mxu0 %v6991_v49  ;;  %1527 = vmatprep.subr.bf16.mxu1 %v6992_v54  ;;  %v364_v49 = vadd.f32 %v5197_v51, %v311_v15  ;;  %v366_v54 = vadd.f32 %v5206_v42, %v313_v16 }
 0x230   :  { %v1194_v4 = vpop.f32.mrb[8].mxu0  ;;  %v1235_v17 = vpop.f32.mrb[8].mxu1 }
 0x231   :  { %v1195_v0 = vadd.f32 %v1194_v4, %v952_v26  ;;  %v1236_v18 = vadd.f32 %v1235_v17, %v993_v33  ;;  %v1196_v19 = vpop.f32.mrb[9].mxu0  ;;  %v1237_v38 = vpop.f32.mrb[9].mxu1  ;;  %v5326_v26 = vrot.slane %v1242_v57, %v4983_v45  ;;  %v363_v45 = vadd.f32 %v5194_v56, %v310_v14 }
 0x232   :  { %v1197_v20 = vadd.f32 %v1196_v19, %v954_v31  ;;  %v1238_v21 = vadd.f32 %v1237_v38, %v995_v36  ;;  %v1198_v22 = vpop.f32.mrb[10].mxu0  ;;  %v1239_v23 = vpop.f32.mrb[10].mxu1 }
 0x233   :  { %v1264_v24 = vadd.f32 %v5314_v55, %v1195_v0  ;;  %v1199_v25 = vpop.f32.mrb[11].mxu0  ;;  %v1240_v29 = vpop.f32.mrb[11].mxu1  ;;  %6997 = vst [vmem:[#allocation13_spill] sm:$0xff] %v5326_v26  ;;  %v1266_v33 = vadd.f32 %v5326_v26, %v1236_v18  ;;  %v6999_v22 = vld [vmem:[#allocation47_spill] sm:$0xff]  ;;  %v7000_v23 = vld [vmem:[#allocation48_spill] sm:$0xff] }
 0x234   :  { %v1265_v40 = vadd.f32 %v5317_v62, %v1197_v20  ;;  %v1267_v28 = vadd.f32 %v5322_v34, %v1238_v21  ;;  %v6998_v21 = vld [vmem:[#allocation46_spill] sm:$0xff]  ;;  %v7003_v29 = vld [vmem:[#allocation51_spill] sm:$0xff] }
 0x235   :  { %v3762_v30 = vmul.f32 -1.442695, %v1264_v24  ;;  %v7001_v24 = vld [vmem:[#allocation49_spill] sm:$0xff]  ;;  %v7002_v25 = vld [vmem:[#allocation50_spill] sm:$0xff] }
 0x236   :  { %v3763_v32 = vmul.f32 -1.442695, %v1265_v40  ;;  %v3764_v31 = vmul.f32 -1.442695, %v1267_v28  ;;  %v7004_v40 = vld [vmem:[#allocation52_spill] sm:$0xff] }
 0x237   :  { %4048 = vpow2.f32 %v3762_v30  ;;  %v7005_v30 = vld [vmem:[#allocation53_spill] sm:$0xff] }
 0x238   :  { %4050 = vpow2.f32 %v3763_v32 }
 0x239   :  { %4052 = vpow2.f32 %v3764_v31 }
 0x23a   :  { %4054 = vtanh.f32 %v1266_v33  ;;  %v7006_v33 = vld [vmem:[#allocation54_spill] sm:$0xff] }
 0x241   :  { %v4049_v36 = vpop.eup %4048 }
 0x242   :  { %v4051_v5 = vpop.eup %4050  ;;  %v1271_v47 = vadd.f32 1.0, %v4049_v36  ;;  %v7007_v36 = vld [vmem:[#allocation55_spill] sm:$0xff] }
 0x243   :  { %v1277_v52 = vadd.f32 1.0, %v4051_v5  ;;  %v4053_v50 = vpop.eup %4052 }
 0x244   :  { %4056 = vrcp.f32 %v1271_v47  ;;  %v4055_v63 = vpop.eup %4054  ;;  %v1284_v46 = vadd.f32 1.0, %v4053_v50  ;;  %v7008_v50 = vld [vmem:[#allocation57_spill] sm:$0xff] }
 0x245   :  { %4058 = vrcp.f32 %v1277_v52 }
 0x246   :  { %4060 = vrcp.f32 %v1284_v46  ;;  %v7011_v46 = vld [vmem:[#allocation60_spill] sm:$0xff] }
 0x24e   :  { %v4057_v53 = vpop.eup %4056 }
 0x24f   :  { %v4059_v1 = vpop.eup %4058  ;;  %v1288_v41 = vmul.f32 %v4057_v53, %v4055_v63  ;;  %v7009_v63 = vld [vmem:[#allocation58_spill] sm:$0xff] }
 0x250   :  { %v1287_v3 = vmul.f32 0.0, %v4059_v1  ;;  %v1326_v27 = vpop.f32.mrb[12].mxu0  ;;  %v1367_v37 = vpop.f32.mrb[12].mxu1 }
 0x251   :  { %v1374_v48 = vadd.f32 %v1326_v27, %v363_v45  ;;  %v1376_v6 = vadd.f32 %v1367_v37, %v365_v35  ;;  %v1328_v7 = vpop.f32.mrb[13].mxu0  ;;  %v1369_v8 = vpop.f32.mrb[13].mxu1  ;;  %v7012_v45 = vld [vmem:[#allocation62_spill] sm:$0xff]  ;;  %v7013_v35 = vld [vmem:[#allocation63_spill] sm:$0xff]  ;;  %v7015_v27 = vld [vmem:[#allocation65_spill] sm:$0xff] }
 0x252   :  { %v5333_v9 = vadd.f32 %v1288_v41, %v1287_v3  ;;  %v1375_v10 = vadd.f32 %v1328_v7, %v364_v49  ;;  %v1377_v11 = vadd.f32 %v1369_v8, %v366_v54  ;;  %v1330_v12 = vpop.f32.mrb[14].mxu0  ;;  %v1371_v13 = vpop.f32.mrb[14].mxu1  ;;  %v7010_v41 = vld [vmem:[#allocation59_spill] sm:$0xff]  ;;  %v7014_v3 = vld [vmem:[#allocation64_spill] sm:$0xff]  ;;  %v7016_v37 = vld [vmem:[#allocation66_spill] sm:$0xff] }
 0x253   :  { %v3765_v59 = vmul.f32 -1.442695, %v1374_v48  ;;  %v1331_v14 = vpop.f32.mrb[15].mxu0  ;;  %v1372_v58 = vpop.f32.mrb[15].mxu1  ;;  %v7018_v49 = vld [vmem:[#allocation68_spill] sm:$0xff]  ;;  %v7019_v54 = vld [vmem:[#allocation69_spill] sm:$0xff] }
 0x254   :  { %4062 = vtanh.f32 %v5333_v9  ;;  %v3766_v57 = vmul.f32 -1.442695, %v1375_v10  ;;  %v3767_v15 = vmul.f32 -1.442695, %v1377_v11  ;;  %v4061_v16 = vpop.eup %4060  ;;  %v7020_v48 = vld [vmem:[#allocation70_spill] sm:$0xff]  ;;  %v7022_v10 = vld [vmem:[#allocation73_spill] sm:$0xff] }
 0x255   :  { %4064 = vpow2.f32 %v3765_v59  ;;  %v7023_v11 = vld [vmem:[#allocation74_spill] sm:$0xff]  ;;  %v7024_v12 = vld [vmem:[#allocation75_spill] sm:$0xff]  ;;  %v7025_v13 = vld [vmem:[#allocation76_spill] sm:$0xff] }
 0x256   :  { %4066 = vpow2.f32 %v3766_v57  ;;  %v7026_v14 = vld [vmem:[#allocation77_spill] sm:$0xff]  ;;  %v7027_v58 = vld [vmem:[#allocation78_spill] sm:$0xff] }
 0x257   :  { %4068 = vpow2.f32 %v3767_v15  ;;  %v5374_v15 = vld [vmem:[#allocation2 + $0x4] ss:$16 sps:$4 sm:$0xff]  }
 0x258   :  { %4070 = vtanh.f32 %v1376_v6  ;;  %v7021_v6 = vld [vmem:[#allocation72_spill] sm:$0xff] }
 0x25e   :  { %v4063_v4 = vpop.eup %4062 }
 0x25f   :  { %v4065_v17 = vpop.eup %4064  ;;  %v1291_v0 = vmul.f32 %v4063_v4, %v4061_v16  ;;  %v5377_v16 = vld [vmem:[#allocation2 + $0xc] ss:$16 sps:$4 sm:$0xff]  }
 0x260   :  { %v4067_v18 = vpop.eup %4066  ;;  %v1381_v19 = vadd.f32 1.0, %v4065_v17  ;;  %v5385_v4 = vld [vmem:[#allocation2 + $0x2c] ss:$16 sps:$4 sm:$0xff]   ;;  %v5390_v17 = vld [vmem:[#allocation2 + $0x20] ss:$16 sps:$4 sm:$0xff]  }
 0x261   :  { %v1387_v38 = vadd.f32 1.0, %v4067_v18  ;;  %v1403_v20 = vpack.c.bf16 %v1291_v0, %v1291_v0  ;;  %v4069_v32 = vpop.eup %4068  ;;  %v5393_v0 = vld [vmem:[#allocation2 + $0x28] ss:$16 sps:$4 sm:$0xff]   ;;  %v5396_v18 = vld [vmem:[#allocation2 + $0x44] ss:$16 sps:$4 sm:$0xff]  }
 0x262   :  { %4072 = vrcp.f32 %v1381_v19  ;;  %v4071_v28 = vpop.eup %4070  ;;  %v1394_v52 = vadd.f32 1.0, %v4069_v32  ;;  %v5399_v19 = vld [vmem:[#allocation2 + $0x4c] ss:$16 sps:$4 sm:$0xff]   ;;  %v5432_v32 = vld [vmem:[#allocation2 + $0xa4] ss:$16 sps:$4 sm:$0xff]  }
 0x263   :  { %4074 = vrcp.f32 %v1387_v38  ;;  %1437 = vmatmul.mubr.bf16.vlgmr.msra.gmra.mrb[16].mxu0 %v1403_v20  ;;  %1478 = vmatmul.mubr.bf16.vlgmr.msra.gmra.mrb[16].mxu1 %v1403_v20  ;;  %v5402_v38 = vld [vmem:[#allocation2 + $0x40] ss:$16 sps:$4 sm:$0xff]   ;;  %v5405_v20 = vld [vmem:[#allocation2 + $0x48] ss:$16 sps:$4 sm:$0xff]   ;;  %7032 = vst [vmem:[#allocation19_spill] sm:$0xff] %v5432_v32 }
 0x264   :  { %1487 = vmatpush1.bf16.msra.mxu0 %v6998_v21  ;;  %1528 = vmatpush1.bf16.msra.mxu1 %v6999_v22  ;;  %4076 = vrcp.f32 %v1394_v52  ;;  %v5408_v21 = vld [vmem:[#allocation2 + $0x64] ss:$16 sps:$4 sm:$0xff]   ;;  %v5411_v22 = vld [vmem:[#allocation2 + $0x6c] ss:$16 sps:$4 sm:$0xff]   ;;  %v5453_v52 = vld [vmem:[#allocation2 + $0xc8] ss:$16 sps:$4 sm:$0xff]  }
 0x265   :  { %1488 = vmatprep.subr.bf16.mxu0 %v7000_v23  ;;  %1529 = vmatprep.subr.bf16.mxu1 %v7001_v24  ;;  %v5414_v23 = vld [vmem:[#allocation2 + $0x60] ss:$16 sps:$4 sm:$0xff]   ;;  %v5417_v24 = vld [vmem:[#allocation2 + $0x68] ss:$16 sps:$4 sm:$0xff]   ;;  %7039 = vst [vmem:[#allocation25_spill] sm:$0xff] %v5453_v52 }
 0x266   :  { %1518 = vmatprep.mubr.bf16.mxu0 %v6958_v61  ;;  %1559 = vmatprep.mubr.bf16.mxu1 %v6958_v61 }
 0x268   :  { %1489 = vmatpush1.bf16.msra.mxu0 %v7002_v25  ;;  %1530 = vmatpush1.bf16.msra.mxu1 %v7003_v29  ;;  %v5420_v25 = vld [vmem:[#allocation2 + $0x84] ss:$16 sps:$4 sm:$0xff]   ;;  %v5423_v29 = vld [vmem:[#allocation2 + $0x8c] ss:$16 sps:$4 sm:$0xff]  }
 0x269   :  { %1490 = vmatprep.subr.bf16.mxu0 %v7004_v40  ;;  %1531 = vmatprep.subr.bf16.mxu1 %v7005_v30  ;;  %7028 = vst [vmem:[#allocation15_spill] sm:$0xff] %v5420_v25  ;;  %7029 = vst [vmem:[#allocation16_spill] sm:$0xff] %v5423_v29  ;;  %v5426_v40 = vld [vmem:[#allocation2 + $0x80] ss:$16 sps:$4 sm:$0xff]   ;;  %v5429_v30 = vld [vmem:[#allocation2 + $0x88] ss:$16 sps:$4 sm:$0xff]  }
 0x26a   :  { %7030 = vst [vmem:[#allocation18_spill] sm:$0xff] %v5426_v40  ;;  %7031 = vst [vmem:[#allocation17_spill] sm:$0xff] %v5429_v30 }
 0x26c   :  { %v4073_v31 = vpop.eup %4072  ;;  %1491 = vmatpush1.bf16.msra.mxu0 %v7006_v33  ;;  %1532 = vmatpush1.bf16.msra.mxu1 %v7007_v36  ;;  %v5441_v33 = vld [vmem:[#allocation2 + $0xa8] ss:$16 sps:$4 sm:$0xff]   ;;  %v5444_v36 = vld [vmem:[#allocation2 + $0xc4] ss:$16 sps:$4 sm:$0xff]  }
 0x26d   :  { %v4075_v5 = vpop.eup %4074  ;;  %v1398_v47 = vmul.f32 %v4073_v31, %v4071_v28  ;;  %1492 = vmatprep.subr.bf16.mxu0 %v7008_v50  ;;  %1533 = vmatprep.subr.bf16.mxu1 %v7009_v63  ;;  %v5435_v28 = vld [vmem:[#allocation2 + $0xac] ss:$16 sps:$4 sm:$0xff]   ;;  %v5438_v31 = vld [vmem:[#allocation2 + $0xa0] ss:$16 sps:$4 sm:$0xff]   ;;  %7035 = vst [vmem:[#allocation21_spill] sm:$0xff] %v5441_v33  ;;  %7036 = vst [vmem:[#allocation23_spill] sm:$0xff] %v5444_v36 }
 0x26e   :  { %v1397_v53 = vmul.f32 %v4075_v5, %v5217_v39  ;;  %v7017_v39 = vld [vmem:[#allocation67_spill] sm:$0xff]  ;;  %v4077_v7 = vpop.eup %4076  ;;  %7033 = vst [vmem:[#allocation20_spill] sm:$0xff] %v5435_v28  ;;  %7034 = vst [vmem:[#allocation22_spill] sm:$0xff] %v5438_v31  ;;  %v5456_v50 = vld [vmem:[#allocation2 + $0xe4] ss:$16 sps:$4 sm:$0xff]  }
 0x26f   :  { %v5447_v5 = vld [vmem:[#allocation2 + $0xcc] ss:$16 sps:$4 sm:$0xff]   ;;  %7040 = vst [vmem:[#allocation27_spill] sm:$0xff] %v5456_v50 }
 0x270   :  { %v5351_v1 = vadd.f32 %v1398_v47, %v1397_v53  ;;  %1493 = vmatpush1.bf16.msra.mxu0 %v7010_v41  ;;  %1534 = vmatpush1.bf16.msra.mxu1 %v7011_v46  ;;  %7037 = vst [vmem:[#allocation24_spill] sm:$0xff] %v5447_v5  ;;  %v5450_v47 = vld [vmem:[#allocation2 + $0xc0] ss:$16 sps:$4 sm:$0xff]   ;;  %v5459_v63 = vld [vmem:[#allocation2 + $0xec] ss:$16 sps:$4 sm:$0xff]  }
 0x271   :  { %1494 = vmatprep.subr.bf16.mxu0 %v7012_v45  ;;  %1535 = vmatprep.subr.bf16.mxu1 %v7013_v35  ;;  %7038 = vst [vmem:[#allocation26_spill] sm:$0xff] %v5450_v47  ;;  %7041 = vst [vmem:[#allocation28_spill] sm:$0xff] %v5459_v63  ;;  %v5462_v53 = vld [vmem:[#allocation2 + $0xe0] ss:$16 sps:$4 sm:$0xff]   ;;  %v5465_v41 = vld [vmem:[#allocation2 + $0xe8] ss:$16 sps:$4 sm:$0xff]  }
 0x272   :  { %4078 = vtanh.f32 %v5351_v1  ;;  %7042 = vst [vmem:[#allocation30_spill] sm:$0xff] %v5462_v53  ;;  %7043 = vst [vmem:[#allocation29_spill] sm:$0xff] %v5465_v41  ;;  %v5468_v46 = vld [vmem:[#allocation7 + $0x4] ss:$16 sps:$4 sm:$0xff]   ;;  %v5471_v45 = vld [vmem:[#allocation7 + $0xc] ss:$16 sps:$4 sm:$0xff]  }
 0x273   :  { %7044 = vst [vmem:[#allocation31_spill] sm:$0xff] %v5468_v46  ;;  %7045 = vst [vmem:[#allocation32_spill] sm:$0xff] %v5471_v45  ;;  %v5476_v35 = vld [vmem:[#allocation7] ss:$16 sps:$4 sm:$0xff]  }
 0x274   :  { %1495 = vmatpush1.bf16.msra.mxu0 %v7014_v3  ;;  %1536 = vmatpush1.bf16.msra.mxu1 %v7015_v27  ;;  %7046 = vst [vmem:[#allocation34_spill] sm:$0xff] %v5476_v35  ;;  %v5479_v3 = vld [vmem:[#allocation7 + $0x8] ss:$16 sps:$4 sm:$0xff]   ;;  %v5482_v27 = vld [vmem:[#allocation7 + $0x24] ss:$16 sps:$4 sm:$0xff]  }
 0x275   :  { %1496 = vmatprep.subr.bf16.mxu0 %v7016_v37  ;;  %1537 = vmatprep.subr.bf16.mxu1 %v7017_v39  ;;  %7047 = vst [vmem:[#allocation33_spill] sm:$0xff] %v5479_v3  ;;  %7048 = vst [vmem:[#allocation35_spill] sm:$0xff] %v5482_v27  ;;  %v5485_v37 = vld [vmem:[#allocation7 + $0x2c] ss:$16 sps:$4 sm:$0xff]   ;;  %v5490_v39 = vld [vmem:[#allocation7 + $0x20] ss:$16 sps:$4 sm:$0xff]  }
 0x276   :  { %7049 = vst [vmem:[#allocation36_spill] sm:$0xff] %v5485_v37  ;;  %7050 = vst [vmem:[#allocation38_spill] sm:$0xff] %v5490_v39 }
 0x278   :  { %1497 = vmatpush1.bf16.msra.mxu0 %v7018_v49  ;;  %1538 = vmatpush1.bf16.msra.mxu1 %v7019_v54  ;;  %v5493_v49 = vld [vmem:[#allocation7 + $0x28] ss:$16 sps:$4 sm:$0xff]   ;;  %v5496_v54 = vld [vmem:[#allocation7 + $0x44] ss:$16 sps:$4 sm:$0xff]  }
 0x279   :  { %1498 = vmatprep.subr.bf16.mxu0 %v7020_v48  ;;  %1539 = vmatprep.subr.bf16.mxu1 %v7021_v6  ;;  %7051 = vst [vmem:[#allocation37_spill] sm:$0xff] %v5493_v49  ;;  %7052 = vst [vmem:[#allocation39_spill] sm:$0xff] %v5496_v54  ;;  %v5499_v48 = vld [vmem:[#allocation7 + $0x4c] ss:$16 sps:$4 sm:$0xff]   ;;  %v5502_v6 = vld [vmem:[#allocation7 + $0x40] ss:$16 sps:$4 sm:$0xff]  }
 0x27a   :  { %7053 = vst [vmem:[#allocation40_spill] sm:$0xff] %v5499_v48  ;;  %7054 = vst [vmem:[#allocation42_spill] sm:$0xff] %v5502_v6 }
 0x27c   :  { %v4079_v8 = vpop.eup %4078  ;;  %1499 = vmatpush1.bf16.msra.mxu0 %v7022_v10  ;;  %1540 = vmatpush1.bf16.msra.mxu1 %v7023_v11  ;;  %v5511_v10 = vld [vmem:[#allocation7 + $0x6c] ss:$16 sps:$4 sm:$0xff]   ;;  %v5514_v11 = vld [vmem:[#allocation7 + $0x60] ss:$16 sps:$4 sm:$0xff]  }
 0x27d   :  { %1500 = vmatprep.subr.bf16.mxu0 %v7024_v12  ;;  %1541 = vmatprep.subr.bf16.mxu1 %v7025_v13  ;;  %v1401_v59 = vmul.f32 %v4079_v8, %v4077_v7  ;;  %v5505_v7 = vld [vmem:[#allocation7 + $0x48] ss:$16 sps:$4 sm:$0xff]   ;;  %v5508_v8 = vld [vmem:[#allocation7 + $0x64] ss:$16 sps:$4 sm:$0xff]   ;;  %7057 = vst [vmem:[#allocation44_spill] sm:$0xff] %v5511_v10  ;;  %7058 = vst [vmem:[#allocation45_spill] sm:$0xff] %v5514_v11 }
 0x27e   :  { %7055 = vst [vmem:[#allocation41_spill] sm:$0xff] %v5505_v7  ;;  %7056 = vst [vmem:[#allocation43_spill] sm:$0xff] %v5508_v8  ;;  %v5517_v12 = vld [vmem:[#allocation7 + $0x68] ss:$16 sps:$4 sm:$0xff]   ;;  %v5520_v13 = vld [vmem:[#allocation7 + $0x84] ss:$16 sps:$4 sm:$0xff]  }
 0x27f   :  { %v5372_v57 = vpack.c.bf16 %v1401_v59, %v1401_v59  ;;  %7059 = vst [vmem:[#allocation61_spill] sm:$0xff] %v5517_v12  ;;  %7060 = vst [vmem:[#allocation71_spill] sm:$0xff] %v5520_v13  ;;  %v5523_v59 = vld [vmem:[#allocation7 + $0x8c] ss:$16 sps:$4 sm:$0xff]  }
 0x280   :  { %1501 = vmatpush1.bf16.msra.mxu0 %v7026_v14  ;;  %1542 = vmatpush1.bf16.msra.mxu1 %v7027_v58  ;;  %7061 = vst [vmem:[#allocation46_spill] sm:$0xff] %v5523_v59  ;;  %v5526_v14 = vld [vmem:[#allocation7 + $0x80] ss:$16 sps:$4 sm:$0xff]   ;;  %v5529_v58 = vld [vmem:[#allocation7 + $0x88] ss:$16 sps:$4 sm:$0xff]  }
 0x281   :  { %1596 = vmatprep.subr.bf16.mxu0 %v5374_v15  ;;  %1637 = vmatprep.subr.bf16.mxu1 %v5377_v16  ;;  %7062 = vst [vmem:[#allocation47_spill] sm:$0xff] %v5526_v14  ;;  %7063 = vst [vmem:[#allocation48_spill] sm:$0xff] %v5529_v58 }
 0x283   :  { %1519 = vmatmul.mubr.bf16.vlgmr.msra.gmra.mrb[20].mxu0 %v5372_v57  ;;  %1560 = vmatmul.mubr.bf16.vlgmr.msra.gmra.mrb[20].mxu1 %v5372_v57 }
 0x284   :  { %1597 = vmatpush1.bf16.msra.mxu0 %v5220_v60  ;;  %1638 = vmatpush1.bf16.msra.mxu1 %v5223_v2 }
 0x285   :  { %1598 = vmatprep.subr.bf16.mxu0 %v5226_v43  ;;  %1639 = vmatprep.subr.bf16.mxu1 %v5385_v4 }
 0x286   :  { %1628 = vmatprep.mubr.bf16.mxu0 %v6958_v61  ;;  %1669 = vmatprep.mubr.bf16.mxu1 %v6958_v61 }
 0x288   :  { %1599 = vmatpush1.bf16.msra.mxu0 %v5390_v17  ;;  %1640 = vmatpush1.bf16.msra.mxu1 %v5393_v0 }
 0x289   :  { %1600 = vmatprep.subr.bf16.mxu0 %v5396_v18  ;;  %1641 = vmatprep.subr.bf16.mxu1 %v5399_v19 }
 0x28c   :  { %1601 = vmatpush1.bf16.msra.mxu0 %v5402_v38  ;;  %1642 = vmatpush1.bf16.msra.mxu1 %v5405_v20 }
 0x28d   :  { %1602 = vmatprep.subr.bf16.mxu0 %v5408_v21  ;;  %1643 = vmatprep.subr.bf16.mxu1 %v5411_v22 }
 0x290   :  { %1603 = vmatpush1.bf16.msra.mxu0 %v5414_v23  ;;  %1644 = vmatpush1.bf16.msra.mxu1 %v5417_v24 }
 0x291   :  { %1604 = vmatprep.subr.bf16.mxu0 %v5420_v25  ;;  %1645 = vmatprep.subr.bf16.mxu1 %v5423_v29 }
 0x294   :  { %1605 = vmatpush1.bf16.msra.mxu0 %v5426_v40  ;;  %1646 = vmatpush1.bf16.msra.mxu1 %v5429_v30 }
 0x295   :  { %1606 = vmatprep.subr.bf16.mxu0 %v5432_v32  ;;  %1647 = vmatprep.subr.bf16.mxu1 %v5435_v28 }
 0x298   :  { %1607 = vmatpush1.bf16.msra.mxu0 %v5438_v31  ;;  %1648 = vmatpush1.bf16.msra.mxu1 %v5441_v33 }
 0x299   :  { %1608 = vmatprep.subr.bf16.mxu0 %v5444_v36  ;;  %1649 = vmatprep.subr.bf16.mxu1 %v5447_v5 }
 0x29c   :  { %1609 = vmatpush1.bf16.msra.mxu0 %v5450_v47  ;;  %1650 = vmatpush1.bf16.msra.mxu1 %v5453_v52 }
 0x29d   :  { %1610 = vmatprep.subr.bf16.mxu0 %v5456_v50  ;;  %1651 = vmatprep.subr.bf16.mxu1 %v5459_v63 }
 0x2a0   :  { %1611 = vmatpush1.bf16.msra.mxu0 %v5462_v53  ;;  %1652 = vmatpush1.bf16.msra.mxu1 %v5465_v41 }
 0x2a1   :  { %1708 = vmatprep.subr.bf16.mxu0 %v5468_v46  ;;  %1749 = vmatprep.subr.bf16.mxu1 %v5471_v45 }
 0x2a3   :  { %1629 = vmatmul.mubr.bf16.vlgmr.msra.gmra.mrb[24].mxu0 %v5372_v57  ;;  %1670 = vmatmul.mubr.bf16.vlgmr.msra.gmra.mrb[24].mxu1 %v5372_v57  ;;  %v5532_v57 = vld [vmem:[#allocation7 + $0xa4] ss:$16 sps:$4 sm:$0xff]  }
 0x2a4   :  { %1709 = vmatpush1.bf16.msra.mxu0 %v5476_v35  ;;  %1750 = vmatpush1.bf16.msra.mxu1 %v5479_v3  ;;  %7064 = vst [vmem:[#allocation49_spill] sm:$0xff] %v5532_v57 }
 0x2a5   :  { %1710 = vmatprep.subr.bf16.mxu0 %v5482_v27  ;;  %1751 = vmatprep.subr.bf16.mxu1 %v5485_v37 }
 0x2a6   :  { %1740 = vmatprep.mubr.bf16.mxu0 %v6958_v61  ;;  %1781 = vmatprep.mubr.bf16.mxu1 %v6958_v61 }
 0x2a8   :  { %1711 = vmatpush1.bf16.msra.mxu0 %v5490_v39  ;;  %1752 = vmatpush1.bf16.msra.mxu1 %v5493_v49 }
 0x2a9   :  { %1712 = vmatprep.subr.bf16.mxu0 %v5496_v54  ;;  %1753 = vmatprep.subr.bf16.mxu1 %v5499_v48 }
 0x2ac   :  { %1713 = vmatpush1.bf16.msra.mxu0 %v5502_v6  ;;  %1754 = vmatpush1.bf16.msra.mxu1 %v5505_v7 }
 0x2ad   :  { %1714 = vmatprep.subr.bf16.mxu0 %v5508_v8  ;;  %1755 = vmatprep.subr.bf16.mxu1 %v5511_v10 }
 0x2b0   :  { %1715 = vmatpush1.bf16.msra.mxu0 %v5514_v11  ;;  %1756 = vmatpush1.bf16.msra.mxu1 %v5517_v12  ;;  %v5535_v12 = vld [vmem:[#allocation7 + $0xac] ss:$16 sps:$4 sm:$0xff]  }
 0x2b1   :  { %1716 = vmatprep.subr.bf16.mxu0 %v5520_v13  ;;  %1757 = vmatprep.subr.bf16.mxu1 %v5523_v59  ;;  %7065 = vst [vmem:[#allocation50_spill] sm:$0xff] %v5535_v12  ;;  %v5538_v13 = vld [vmem:[#allocation7 + $0xa0] ss:$16 sps:$4 sm:$0xff]   ;;  %v5541_v59 = vld [vmem:[#allocation7 + $0xa8] ss:$16 sps:$4 sm:$0xff]  }
 0x2b2   :  { %7066 = vst [vmem:[#allocation51_spill] sm:$0xff] %v5538_v13  ;;  %7067 = vst [vmem:[#allocation52_spill] sm:$0xff] %v5541_v59 }
 0x2b4   :  { %1717 = vmatpush1.bf16.msra.mxu0 %v5526_v14  ;;  %1758 = vmatpush1.bf16.msra.mxu1 %v5529_v58  ;;  %v5544_v14 = vld [vmem:[#allocation7 + $0xc4] ss:$16 sps:$4 sm:$0xff]   ;;  %v5547_v58 = vld [vmem:[#allocation7 + $0xcc] ss:$16 sps:$4 sm:$0xff]  }
 0x2b5   :  { %1718 = vmatprep.subr.bf16.mxu0 %v5532_v57  ;;  %1759 = vmatprep.subr.bf16.mxu1 %v5535_v12  ;;  %7068 = vst [vmem:[#allocation53_spill] sm:$0xff] %v5544_v14  ;;  %7069 = vst [vmem:[#allocation54_spill] sm:$0xff] %v5547_v58  ;;  %v5550_v57 = vld [vmem:[#allocation7 + $0xc0] ss:$16 sps:$4 sm:$0xff]   ;;  %v5553_v12 = vld [vmem:[#allocation7 + $0xc8] ss:$16 sps:$4 sm:$0xff]  }
 0x2b6   :  { %7070 = vst [vmem:[#allocation55_spill] sm:$0xff] %v5550_v57  ;;  %7071 = vst [vmem:[#allocation57_spill] sm:$0xff] %v5553_v12 }
 0x2b8   :  { %1719 = vmatpush1.bf16.msra.mxu0 %v5538_v13  ;;  %1760 = vmatpush1.bf16.msra.mxu1 %v5541_v59  ;;  %v5556_v13 = vld [vmem:[#allocation7 + $0xe4] ss:$16 sps:$4 sm:$0xff]   ;;  %v5559_v59 = vld [vmem:[#allocation7 + $0xec] ss:$16 sps:$4 sm:$0xff]  }
 0x2b9   :  { %1720 = vmatprep.subr.bf16.mxu0 %v5544_v14  ;;  %1761 = vmatprep.subr.bf16.mxu1 %v5547_v58  ;;  %7072 = vst [vmem:[#allocation58_spill] sm:$0xff] %v5556_v13  ;;  %7073 = vst [vmem:[#allocation59_spill] sm:$0xff] %v5559_v59  ;;  %v5562_v14 = vld [vmem:[#allocation7 + $0xe0] ss:$16 sps:$4 sm:$0xff]   ;;  %v5565_v58 = vld [vmem:[#allocation7 + $0xe8] ss:$16 sps:$4 sm:$0xff]  }
 0x2ba   :  { %7074 = vst [vmem:[#allocation60_spill] sm:$0xff] %v5562_v14  ;;  %7075 = vst [vmem:[#allocation62_spill] sm:$0xff] %v5565_v58 }
 0x2bc   :  { %1721 = vmatpush1.bf16.msra.mxu0 %v5550_v57  ;;  %1762 = vmatpush1.bf16.msra.mxu1 %v5553_v12  ;;  %v5568_v57 = vld [vmem:[#allocation5 + $0x4] ss:$16 sps:$4 sm:$0xff]   ;;  %v5571_v12 = vld [vmem:[#allocation5 + $0xc] ss:$16 sps:$4 sm:$0xff]  }
 0x2bd   :  { %1722 = vmatprep.subr.bf16.mxu0 %v5556_v13  ;;  %1763 = vmatprep.subr.bf16.mxu1 %v5559_v59  ;;  %7076 = vst [vmem:[#allocation63_spill] sm:$0xff] %v5568_v57  ;;  %7077 = vst [vmem:[#allocation64_spill] sm:$0xff] %v5571_v12 }
 0x2c0   :  { %1723 = vmatpush1.bf16.msra.mxu0 %v5562_v14  ;;  %1764 = vmatpush1.bf16.msra.mxu1 %v5565_v58 }
 0x2c1   :  { %1790 = vmatprep.subr.bf16.mxu0 %v5568_v57  ;;  %1831 = vmatprep.subr.bf16.mxu1 %v5571_v12 }
 0x336   :  { %v1438_v13 = vpop.f32.mrb[16].mxu0  ;;  %v1479_v11 = vpop.f32.mrb[16].mxu1 }
 0x337   :  { %v1440_v10 = vpop.f32.mrb[17].mxu0  ;;  %v1481_v59 = vpop.f32.mrb[17].mxu1 }
 0x338   :  { %v1442_v8 = vpop.f32.mrb[18].mxu0  ;;  %v1483_v7 = vpop.f32.mrb[18].mxu1 }
 0x339   :  { %v1443_v6 = vpop.f32.mrb[19].mxu0  ;;  %v1484_v14 = vpop.f32.mrb[19].mxu1 }
 0x356   :  { %v1520_v48 = vpop.f32.mrb[20].mxu0  ;;  %v1561_v54 = vpop.f32.mrb[20].mxu1 }
 0x357   :  { %v1521_v49 = vadd.f32 %v1520_v48, %v1438_v13  ;;  %v1562_v58 = vadd.f32 %v1561_v54, %v1479_v11  ;;  %v1522_v39 = vpop.f32.mrb[21].mxu0  ;;  %v1563_v37 = vpop.f32.mrb[21].mxu1  ;;  %v7079_v13 = vld [vmem:[#allocation80_spill] sm:$0xff] }
 0x358   :  { %v1523_v27 = vadd.f32 %v1522_v39, %v1440_v10  ;;  %v1564_v57 = vadd.f32 %v1563_v37, %v1481_v59  ;;  %v1524_v3 = vpop.f32.mrb[22].mxu0  ;;  %v1565_v35 = vpop.f32.mrb[22].mxu1  ;;  %v7078_v10 = vld [vmem:[#allocation79_spill] sm:$0xff]  ;;  %v369_v59 = vadd.f32 %v5214_v44, %v7079_v13 }
 0x359   :  { %v1568_v12 = vadd.f32 %v1521_v49, %v5314_v55  ;;  %v1525_v45 = vpop.f32.mrb[23].mxu0  ;;  %v1566_v46 = vpop.f32.mrb[23].mxu1  ;;  %v1570_v54 = vadd.f32 %v1562_v58, %v5326_v26 }
 0x35a   :  { %v1569_v41 = vadd.f32 %v1523_v27, %v5317_v62  ;;  %v1571_v6 = vadd.f32 %v1564_v57, %v5322_v34 }
 0x35b   :  { %v3768_v8 = vmul.f32 -1.442695, %v1568_v12  ;;  %v367_v12 = vadd.f32 %v5194_v56, %v7078_v10 }
 0x35c   :  { %v3769_v7 = vmul.f32 -1.442695, %v1569_v41  ;;  %v3770_v48 = vmul.f32 -1.442695, %v1571_v6  ;;  %v7081_v6 = vld [vmem:[#allocation82_spill] sm:$0xff] }
 0x35d   :  { %4080 = vpow2.f32 %v3768_v8  ;;  %v7080_v8 = vld [vmem:[#allocation81_spill] sm:$0xff] }
 0x35e   :  { %4082 = vpow2.f32 %v3769_v7  ;;  %v368_v7 = vadd.f32 %v5197_v51, %v7080_v8 }
 0x35f   :  { %4084 = vpow2.f32 %v3770_v48  ;;  %v370_v48 = vadd.f32 %v5206_v42, %v7081_v6 }
 0x360   :  { %4086 = vtanh.f32 %v1570_v54 }
 0x367   :  { %v4081_v11 = vpop.eup %4080 }
 0x368   :  { %v4083_v39 = vpop.eup %4082  ;;  %v1575_v37 = vadd.f32 1.0, %v4081_v11 }
 0x369   :  { %v1581_v35 = vadd.f32 1.0, %v4083_v39  ;;  %v4085_v46 = vpop.eup %4084 }
 0x36a   :  { %4088 = vrcp.f32 %v1575_v37  ;;  %v4087_v45 = vpop.eup %4086  ;;  %v1588_v49 = vadd.f32 1.0, %v4085_v46 }
 0x36b   :  { %4090 = vrcp.f32 %v1581_v35 }
 0x36c   :  { %4092 = vrcp.f32 %v1588_v49  ;;  %v5590_v49 = vld [vmem:[#allocation5] ss:$16 sps:$4 sm:$0xff]  }
 0x374   :  { %v4089_v3 = vpop.eup %4088 }
 0x375   :  { %v4091_v27 = vpop.eup %4090  ;;  %v1592_v41 = vmul.f32 %v4089_v3, %v4087_v45 }
 0x376   :  { %v1591_v14 = vmul.f32 %v4091_v27, %v5333_v9  ;;  %v1630_v58 = vpop.f32.mrb[24].mxu0  ;;  %v1671_v57 = vpop.f32.mrb[24].mxu1 }
 0x377   :  { %v1678_v54 = vadd.f32 %v1630_v58, %v367_v12  ;;  %v1680_v11 = vadd.f32 %v1671_v57, %v369_v59  ;;  %v1632_v39 = vpop.f32.mrb[25].mxu0  ;;  %v1673_v37 = vpop.f32.mrb[25].mxu1 }
 0x378   :  { %v5587_v35 = vadd.f32 %v1592_v41, %v1591_v14  ;;  %v1679_v46 = vadd.f32 %v1632_v39, %v368_v7  ;;  %v1681_v45 = vadd.f32 %v1673_v37, %v370_v48  ;;  %v1634_v3 = vpop.f32.mrb[26].mxu0  ;;  %v1675_v10 = vpop.f32.mrb[26].mxu1  ;;  %v5596_v48 = vld [vmem:[#allocation5 + $0x24] ss:$16 sps:$4 sm:$0xff]   ;;  %v5607_v39 = vld [vmem:[#allocation5 + $0x28] ss:$16 sps:$4 sm:$0xff]  }
 0x379   :  { %v3771_v9 = vmul.f32 -1.442695, %v1678_v54  ;;  %v1635_v27 = vpop.f32.mrb[27].mxu0  ;;  %v1676_v13 = vpop.f32.mrb[27].mxu1  ;;  %v5599_v54 = vld [vmem:[#allocation5 + $0x2c] ss:$16 sps:$4 sm:$0xff]  }
 0x37a   :  { %v3772_v44 = vmul.f32 -1.442695, %v1679_v46  ;;  %4094 = vtanh.f32 %v5587_v35  ;;  %v3773_v8 = vmul.f32 -1.442695, %v1681_v45  ;;  %v4093_v12 = vpop.eup %4092  ;;  %v5610_v37 = vld [vmem:[#allocation5 + $0x44] ss:$16 sps:$4 sm:$0xff]  }
 0x37b   :  { %4096 = vpow2.f32 %v3771_v9  ;;  %v5613_v46 = vld [vmem:[#allocation5 + $0x4c] ss:$16 sps:$4 sm:$0xff]   ;;  %v5616_v9 = vld [vmem:[#allocation5 + $0x40] ss:$16 sps:$4 sm:$0xff]   ;;  %v5619_v27 = vld [vmem:[#allocation5 + $0x48] ss:$16 sps:$4 sm:$0xff]  }
 0x37c   :  { %4098 = vpow2.f32 %v3772_v44  ;;  %v5593_v44 = vld [vmem:[#allocation5 + $0x8] ss:$16 sps:$4 sm:$0xff]  }
 0x37d   :  { %4100 = vpow2.f32 %v3773_v8 }
 0x37e   :  { %4102 = vtanh.f32 %v1680_v11  ;;  %v5604_v11 = vld [vmem:[#allocation5 + $0x20] ss:$16 sps:$4 sm:$0xff]  }
 0x384   :  { %v4095_v59 = vpop.eup %4094 }
 0x385   :  { %v4097_v58 = vpop.eup %4096  ;;  %v1595_v57 = vmul.f32 %v4095_v59, %v4093_v12  ;;  %v5622_v59 = vld [vmem:[#allocation5 + $0x64] ss:$16 sps:$4 sm:$0xff]  }
 0x386   :  { %v4099_v41 = vpop.eup %4098  ;;  %v1685_v14 = vadd.f32 1.0, %v4097_v58  ;;  %v5625_v58 = vld [vmem:[#allocation5 + $0x6c] ss:$16 sps:$4 sm:$0xff]  }
 0x387   :  { %v1691_v7 = vadd.f32 1.0, %v4099_v41  ;;  %v1707_v6 = vpack.c.bf16 %v1595_v57, %v1595_v57  ;;  %v4101_v45 = vpop.eup %4100 }
 0x388   :  { %4104 = vrcp.f32 %v1685_v14  ;;  %v4103_v3 = vpop.eup %4102  ;;  %v1698_v12 = vadd.f32 1.0, %v4101_v45  ;;  %v5631_v14 = vld [vmem:[#allocation5 + $0x60] ss:$16 sps:$4 sm:$0xff]   ;;  %v5640_v45 = vld [vmem:[#allocation5 + $0x8c] ss:$16 sps:$4 sm:$0xff]  }
 0x389   :  { %4106 = vrcp.f32 %v1691_v7  ;;  %1741 = vmatmul.mubr.bf16.vlgmr.msra.gmra.mrb[28].mxu0 %v1707_v6  ;;  %1782 = vmatmul.mubr.bf16.vlgmr.msra.gmra.mrb[28].mxu1 %v1707_v6  ;;  %v5634_v7 = vld [vmem:[#allocation5 + $0x68] ss:$16 sps:$4 sm:$0xff]   ;;  %v5637_v6 = vld [vmem:[#allocation5 + $0x84] ss:$16 sps:$4 sm:$0xff]   ;;  %7084 = vst [vmem:[#allocation67_spill] sm:$0xff] %v5640_v45 }
 0x38a   :  { %1791 = vmatpush1.bf16.msra.mxu0 %v5590_v49  ;;  %1832 = vmatpush1.bf16.msra.mxu1 %v5593_v44  ;;  %7082 = vst [vmem:[#allocation65_spill] sm:$0xff] %v5634_v7  ;;  %4108 = vrcp.f32 %v1698_v12  ;;  %7083 = vst [vmem:[#allocation66_spill] sm:$0xff] %v5637_v6  ;;  %v5659_v12 = vld [vmem:[#allocation5 + $0xa8] ss:$16 sps:$4 sm:$0xff]  }
 0x38b   :  { %1792 = vmatprep.subr.bf16.mxu0 %v5596_v48  ;;  %1833 = vmatprep.subr.bf16.mxu1 %v5599_v54  ;;  %7090 = vst [vmem:[#allocation74_spill] sm:$0xff] %v5659_v12 }
 0x38c   :  { %1822 = vmatprep.mubr.bf16.mxu0 %v6958_v61  ;;  %1863 = vmatprep.mubr.bf16.mxu1 %v6958_v61 }
 0x38e   :  { %1793 = vmatpush1.bf16.msra.mxu0 %v5604_v11  ;;  %1834 = vmatpush1.bf16.msra.mxu1 %v5607_v39 }
 0x38f   :  { %1794 = vmatprep.subr.bf16.mxu0 %v5610_v37  ;;  %1835 = vmatprep.subr.bf16.mxu1 %v5613_v46 }
 0x392   :  { %v4105_v10 = vpop.eup %4104  ;;  %1795 = vmatpush1.bf16.msra.mxu0 %v5616_v9  ;;  %1836 = vmatpush1.bf16.msra.mxu1 %v5619_v27 }
 0x393   :  { %v4107_v13 = vpop.eup %4106  ;;  %v1702_v8 = vmul.f32 %v4105_v10, %v4103_v3  ;;  %1796 = vmatprep.subr.bf16.mxu0 %v5622_v59  ;;  %1837 = vmatprep.subr.bf16.mxu1 %v5625_v58  ;;  %v5647_v3 = vld [vmem:[#allocation5 + $0x88] ss:$16 sps:$4 sm:$0xff]   ;;  %v5650_v10 = vld [vmem:[#allocation5 + $0xa4] ss:$16 sps:$4 sm:$0xff]  }
 0x394   :  { %v1701_v57 = vmul.f32 %v4107_v13, %v5351_v1  ;;  %v5644_v1 = vld [vmem:[#allocation5 + $0x80] ss:$16 sps:$4 sm:$0xff]   ;;  %7086 = vst [vmem:[#allocation69_spill] sm:$0xff] %v5647_v3  ;;  %7087 = vst [vmem:[#allocation70_spill] sm:$0xff] %v5650_v10  ;;  %v5653_v13 = vld [vmem:[#allocation5 + $0xac] ss:$16 sps:$4 sm:$0xff]  }
 0x395   :  { %7085 = vst [vmem:[#allocation68_spill] sm:$0xff] %v5644_v1  ;;  %7088 = vst [vmem:[#allocation72_spill] sm:$0xff] %v5653_v13 }
 0x396   :  { %v5629_v41 = vadd.f32 %v1702_v8, %v1701_v57  ;;  %1797 = vmatpush1.bf16.msra.mxu0 %v5631_v14  ;;  %1838 = vmatpush1.bf16.msra.mxu1 %v5634_v7  ;;  %v5656_v8 = vld [vmem:[#allocation5 + $0xa0] ss:$16 sps:$4 sm:$0xff]   ;;  %v5662_v57 = vld [vmem:[#allocation5 + $0xc4] ss:$16 sps:$4 sm:$0xff]   ;;  %v5683_v7 = vld [vmem:[#allocation5 + $0xe8] ss:$16 sps:$4 sm:$0xff]  }
 0x397   :  { %1798 = vmatprep.subr.bf16.mxu0 %v5637_v6  ;;  %1839 = vmatprep.subr.bf16.mxu1 %v5640_v45  ;;  %7089 = vst [vmem:[#allocation73_spill] sm:$0xff] %v5656_v8  ;;  %7091 = vst [vmem:[#allocation75_spill] sm:$0xff] %v5662_v57  ;;  %v5668_v45 = vld [vmem:[#allocation5 + $0xc0] ss:$16 sps:$4 sm:$0xff]  }
 0x398   :  { %4110 = vtanh.f32 %v5629_v41  ;;  %v5680_v6 = vld [vmem:[#allocation5 + $0xe0] ss:$16 sps:$4 sm:$0xff]  }
 0x39a   :  { %1799 = vmatpush1.bf16.msra.mxu0 %v5644_v1  ;;  %1840 = vmatpush1.bf16.msra.mxu1 %v5647_v3  ;;  %v5665_v3 = vld [vmem:[#allocation5 + $0xcc] ss:$16 sps:$4 sm:$0xff]  }
 0x39b   :  { %1800 = vmatprep.subr.bf16.mxu0 %v5650_v10  ;;  %1841 = vmatprep.subr.bf16.mxu1 %v5653_v13  ;;  %7092 = vst [vmem:[#allocation76_spill] sm:$0xff] %v5665_v3  ;;  %v4109_v10 = vpop.eup %4108  ;;  %v5671_v13 = vld [vmem:[#allocation5 + $0xc8] ss:$16 sps:$4 sm:$0xff]  }
 0x39e   :  { %1801 = vmatpush1.bf16.msra.mxu0 %v5656_v8  ;;  %1842 = vmatpush1.bf16.msra.mxu1 %v5659_v12  ;;  %v5674_v8 = vld [vmem:[#allocation5 + $0xe4] ss:$16 sps:$4 sm:$0xff]   ;;  %v5677_v12 = vld [vmem:[#allocation5 + $0xec] ss:$16 sps:$4 sm:$0xff]  }
 0x39f   :  { %1802 = vmatprep.subr.bf16.mxu0 %v5662_v57  ;;  %1843 = vmatprep.subr.bf16.mxu1 %v5665_v3 }
 0x3a2   :  { %v4111_v1 = vpop.eup %4110  ;;  %1803 = vmatpush1.bf16.msra.mxu0 %v5668_v45  ;;  %1844 = vmatpush1.bf16.msra.mxu1 %v5671_v13 }
 0x3a3   :  { %1804 = vmatprep.subr.bf16.mxu0 %v5674_v8  ;;  %1845 = vmatprep.subr.bf16.mxu1 %v5677_v12  ;;  %v1705_v57 = vmul.f32 %v4111_v1, %v4109_v10  ;;  %v7096_v1 = vld [vmem:[#allocation34_spill] sm:$0xff]  ;;  %v7097_v10 = vld [vmem:[#allocation33_spill] sm:$0xff] }
 0x3a5   :  { %v1706_v3 = vpack.c.bf16 %v1705_v57, %v1705_v57  ;;  %v7098_v57 = vld [vmem:[#allocation35_spill] sm:$0xff] }
 0x3a6   :  { %1805 = vmatpush1.bf16.msra.mxu0 %v5680_v6  ;;  %1846 = vmatpush1.bf16.msra.mxu1 %v5683_v7 }
 0x3a7   :  { %1900 = vmatprep.subr.bf16.mxu0 %v5374_v15  ;;  %1941 = vmatprep.subr.bf16.mxu1 %v5377_v16 }
 0x3a9   :  { %1823 = vmatmul.mubr.bf16.vlgmr.msra.gmra.mrb[32].mxu0 %v1706_v3  ;;  %1864 = vmatmul.mubr.bf16.vlgmr.msra.gmra.mrb[32].mxu1 %v1706_v3 }
 0x3aa   :  { %1901 = vmatpush1.bf16.msra.mxu0 %v5220_v60  ;;  %1942 = vmatpush1.bf16.msra.mxu1 %v5223_v2  ;;  %v7093_v60 = vld [vmem:[#allocation29_spill] sm:$0xff]  ;;  %v7094_v2 = vld [vmem:[#allocation31_spill] sm:$0xff] }
 0x3ab   :  { %1902 = vmatprep.subr.bf16.mxu0 %v5226_v43  ;;  %1943 = vmatprep.subr.bf16.mxu1 %v5385_v4  ;;  %v7095_v43 = vld [vmem:[#allocation32_spill] sm:$0xff] }
 0x3ac   :  { %1932 = vmatprep.mubr.bf16.mxu0 %v6958_v61  ;;  %1973 = vmatprep.mubr.bf16.mxu1 %v6958_v61 }
 0x3ae   :  { %1903 = vmatpush1.bf16.msra.mxu0 %v5390_v17  ;;  %1944 = vmatpush1.bf16.msra.mxu1 %v5393_v0 }
 0x3af   :  { %1904 = vmatprep.subr.bf16.mxu0 %v5396_v18  ;;  %1945 = vmatprep.subr.bf16.mxu1 %v5399_v19 }
 0x3b2   :  { %1905 = vmatpush1.bf16.msra.mxu0 %v5402_v38  ;;  %1946 = vmatpush1.bf16.msra.mxu1 %v5405_v20 }
 0x3b3   :  { %1906 = vmatprep.subr.bf16.mxu0 %v5408_v21  ;;  %1947 = vmatprep.subr.bf16.mxu1 %v5411_v22 }
 0x3b6   :  { %1907 = vmatpush1.bf16.msra.mxu0 %v5414_v23  ;;  %1948 = vmatpush1.bf16.msra.mxu1 %v5417_v24 }
 0x3b7   :  { %1908 = vmatprep.subr.bf16.mxu0 %v5420_v25  ;;  %1949 = vmatprep.subr.bf16.mxu1 %v5423_v29 }
 0x3ba   :  { %1909 = vmatpush1.bf16.msra.mxu0 %v5426_v40  ;;  %1950 = vmatpush1.bf16.msra.mxu1 %v5429_v30 }
 0x3bb   :  { %1910 = vmatprep.subr.bf16.mxu0 %v5432_v32  ;;  %1951 = vmatprep.subr.bf16.mxu1 %v5435_v28 }
 0x3be   :  { %1911 = vmatpush1.bf16.msra.mxu0 %v5438_v31  ;;  %1952 = vmatpush1.bf16.msra.mxu1 %v5441_v33 }
 0x3bf   :  { %1912 = vmatprep.subr.bf16.mxu0 %v5444_v36  ;;  %1953 = vmatprep.subr.bf16.mxu1 %v5447_v5 }
 0x3c2   :  { %1913 = vmatpush1.bf16.msra.mxu0 %v5450_v47  ;;  %1954 = vmatpush1.bf16.msra.mxu1 %v5453_v52  ;;  %v7099_v52 = vld [vmem:[#allocation36_spill] sm:$0xff] }
 0x3c3   :  { %1914 = vmatprep.subr.bf16.mxu0 %v5456_v50  ;;  %1955 = vmatprep.subr.bf16.mxu1 %v5459_v63  ;;  %v7109_v63 = vld [vmem:[#allocation61_spill] sm:$0xff]  ;;  %v7110_v50 = vld [vmem:[#allocation71_spill] sm:$0xff] }
 0x3c6   :  { %1915 = vmatpush1.bf16.msra.mxu0 %v5462_v53  ;;  %1956 = vmatpush1.bf16.msra.mxu1 %v7093_v60  ;;  %v7100_v53 = vld [vmem:[#allocation38_spill] sm:$0xff]  ;;  %v7101_v60 = vld [vmem:[#allocation37_spill] sm:$0xff] }
 0x3c7   :  { %2012 = vmatprep.subr.bf16.mxu0 %v7094_v2  ;;  %2053 = vmatprep.subr.bf16.mxu1 %v7095_v43  ;;  %v7102_v2 = vld [vmem:[#allocation39_spill] sm:$0xff]  ;;  %v7103_v43 = vld [vmem:[#allocation40_spill] sm:$0xff] }
 0x3c9   :  { %1933 = vmatmul.mubr.bf16.vlgmr.msra.gmra.mrb[36].mxu0 %v1706_v3  ;;  %1974 = vmatmul.mubr.bf16.vlgmr.msra.gmra.mrb[36].mxu1 %v1706_v3  ;;  %v7104_v3 = vld [vmem:[#allocation42_spill] sm:$0xff] }
 0x3ca   :  { %2013 = vmatpush1.bf16.msra.mxu0 %v7096_v1  ;;  %2054 = vmatpush1.bf16.msra.mxu1 %v7097_v10  ;;  %v7105_v1 = vld [vmem:[#allocation41_spill] sm:$0xff]  ;;  %v7106_v10 = vld [vmem:[#allocation43_spill] sm:$0xff] }
 0x3cb   :  { %2014 = vmatprep.subr.bf16.mxu0 %v7098_v57  ;;  %2055 = vmatprep.subr.bf16.mxu1 %v7099_v52  ;;  %v7107_v57 = vld [vmem:[#allocation44_spill] sm:$0xff]  ;;  %v7108_v52 = vld [vmem:[#allocation45_spill] sm:$0xff] }
 0x3cc   :  { %2044 = vmatprep.mubr.bf16.mxu0 %v6958_v61  ;;  %2085 = vmatprep.mubr.bf16.mxu1 %v6958_v61 }
 0x3ce   :  { %2015 = vmatpush1.bf16.msra.mxu0 %v7100_v53  ;;  %2056 = vmatpush1.bf16.msra.mxu1 %v7101_v60  ;;  %v7111_v53 = vld [vmem:[#allocation46_spill] sm:$0xff]  ;;  %v7112_v60 = vld [vmem:[#allocation47_spill] sm:$0xff] }
 0x3cf   :  { %2016 = vmatprep.subr.bf16.mxu0 %v7102_v2  ;;  %2057 = vmatprep.subr.bf16.mxu1 %v7103_v43  ;;  %v7113_v2 = vld [vmem:[#allocation48_spill] sm:$0xff]  ;;  %v7114_v43 = vld [vmem:[#allocation49_spill] sm:$0xff] }
 0x3d2   :  { %2017 = vmatpush1.bf16.msra.mxu0 %v7104_v3  ;;  %2058 = vmatpush1.bf16.msra.mxu1 %v7105_v1  ;;  %v7115_v3 = vld [vmem:[#allocation50_spill] sm:$0xff]  ;;  %v7116_v1 = vld [vmem:[#allocation51_spill] sm:$0xff] }
 0x3d3   :  { %2018 = vmatprep.subr.bf16.mxu0 %v7106_v10  ;;  %2059 = vmatprep.subr.bf16.mxu1 %v7107_v57  ;;  %v7117_v10 = vld [vmem:[#allocation52_spill] sm:$0xff]  ;;  %v7118_v57 = vld [vmem:[#allocation53_spill] sm:$0xff] }
 0x3d6   :  { %2019 = vmatpush1.bf16.msra.mxu0 %v7108_v52  ;;  %2060 = vmatpush1.bf16.msra.mxu1 %v7109_v63  ;;  %v7119_v52 = vld [vmem:[#allocation54_spill] sm:$0xff]  ;;  %v7120_v63 = vld [vmem:[#allocation55_spill] sm:$0xff] }
 0x3d7   :  { %2020 = vmatprep.subr.bf16.mxu0 %v7110_v50  ;;  %2061 = vmatprep.subr.bf16.mxu1 %v7111_v53  ;;  %v7121_v50 = vld [vmem:[#allocation57_spill] sm:$0xff]  ;;  %v7122_v53 = vld [vmem:[#allocation58_spill] sm:$0xff] }
 0x3da   :  { %2021 = vmatpush1.bf16.msra.mxu0 %v7112_v60  ;;  %2062 = vmatpush1.bf16.msra.mxu1 %v7113_v2  ;;  %v7123_v60 = vld [vmem:[#allocation59_spill] sm:$0xff]  ;;  %v7124_v2 = vld [vmem:[#allocation60_spill] sm:$0xff] }
 0x3db   :  { %2022 = vmatprep.subr.bf16.mxu0 %v7114_v43  ;;  %2063 = vmatprep.subr.bf16.mxu1 %v7115_v3  ;;  %v7125_v43 = vld [vmem:[#allocation62_spill] sm:$0xff]  ;;  %v7126_v3 = vld [vmem:[#allocation63_spill] sm:$0xff] }
 0x3de   :  { %2023 = vmatpush1.bf16.msra.mxu0 %v7116_v1  ;;  %2064 = vmatpush1.bf16.msra.mxu1 %v7117_v10  ;;  %v7127_v1 = vld [vmem:[#allocation64_spill] sm:$0xff] }
 0x3df   :  { %2024 = vmatprep.subr.bf16.mxu0 %v7118_v57  ;;  %2065 = vmatprep.subr.bf16.mxu1 %v7119_v52 }
 0x3e2   :  { %2025 = vmatpush1.bf16.msra.mxu0 %v7120_v63  ;;  %2066 = vmatpush1.bf16.msra.mxu1 %v7121_v50 }
 0x3e3   :  { %2026 = vmatprep.subr.bf16.mxu0 %v7122_v53  ;;  %2067 = vmatprep.subr.bf16.mxu1 %v7123_v60 }
 0x3e6   :  { %2027 = vmatpush1.bf16.msra.mxu0 %v7124_v2  ;;  %2068 = vmatpush1.bf16.msra.mxu1 %v7125_v43 }
 0x3e7   :  { %2094 = vmatprep.subr.bf16.mxu0 %v7126_v3  ;;  %2135 = vmatprep.subr.bf16.mxu1 %v7127_v1 }
 0x45c   :  { %v1742_v10 = vpop.f32.mrb[28].mxu0  ;;  %v1783_v57 = vpop.f32.mrb[28].mxu1 }
 0x45d   :  { %v1744_v47 = vpop.f32.mrb[29].mxu0  ;;  %v1785_v52 = vpop.f32.mrb[29].mxu1 }
 0x45e   :  { %v1746_v5 = vpop.f32.mrb[30].mxu0  ;;  %v1787_v63 = vpop.f32.mrb[30].mxu1 }
 0x45f   :  { %v1747_v36 = vpop.f32.mrb[31].mxu0  ;;  %v1788_v50 = vpop.f32.mrb[31].mxu1 }
 0x47c   :  { %v1824_v33 = vpop.f32.mrb[32].mxu0  ;;  %v1865_v53 = vpop.f32.mrb[32].mxu1 }
 0x47d   :  { %v1825_v31 = vadd.f32 %v1824_v33, %v1742_v10  ;;  %v1866_v60 = vadd.f32 %v1865_v53, %v1783_v57  ;;  %v1826_v28 = vpop.f32.mrb[33].mxu0  ;;  %v1867_v2 = vpop.f32.mrb[33].mxu1  ;;  %v7130_v10 = vld [vmem:[#allocation104_spill] sm:$0xff] }
 0x47e   :  { %v1827_v32 = vadd.f32 %v1826_v28, %v1744_v47  ;;  %v1868_v43 = vadd.f32 %v1867_v2, %v1785_v52  ;;  %v1828_v30 = vpop.f32.mrb[34].mxu0  ;;  %v1869_v3 = vpop.f32.mrb[34].mxu1  ;;  %v7128_v2 = vld [vmem:[#allocation83_spill] sm:$0xff] }
 0x47f   :  { %v1872_v1 = vadd.f32 %v1825_v31, %v5314_v55  ;;  %v1829_v40 = vpop.f32.mrb[35].mxu0  ;;  %v1870_v29 = vpop.f32.mrb[35].mxu1  ;;  %v1874_v50 = vadd.f32 %v1866_v60, %v5326_v26 }
 0x480   :  { %v1873_v25 = vadd.f32 %v1827_v32, %v5317_v62  ;;  %v1875_v36 = vadd.f32 %v1868_v43, %v5322_v34  ;;  %v371_v43 = vadd.f32 %v5194_v56, %v7128_v2 }
 0x481   :  { %v3774_v5 = vmul.f32 -1.442695, %v1872_v1  ;;  %v7129_v1 = vld [vmem:[#allocation84_spill] sm:$0xff] }
 0x482   :  { %v3775_v63 = vmul.f32 -1.442695, %v1873_v25  ;;  %v3776_v33 = vmul.f32 -1.442695, %v1875_v36  ;;  %v373_v60 = vadd.f32 %v7130_v10, %v7129_v1 }
 0x483   :  { %4112 = vpow2.f32 %v3774_v5 }
 0x484   :  { %4114 = vpow2.f32 %v3775_v63  ;;  %v7131_v63 = vld [vmem:[#allocation85_spill] sm:$0xff] }
 0x485   :  { %4116 = vpow2.f32 %v3776_v33  ;;  %v372_v36 = vadd.f32 %v5197_v51, %v7131_v63  ;;  %v7132_v33 = vld [vmem:[#allocation86_spill] sm:$0xff] }
 0x486   :  { %4118 = vtanh.f32 %v1874_v50  ;;  %v374_v50 = vadd.f32 %v5206_v42, %v7132_v33 }
 0x48d   :  { %v4113_v53 = vpop.eup %4112 }
 0x48e   :  { %v4115_v28 = vpop.eup %4114  ;;  %v1879_v47 = vadd.f32 1.0, %v4113_v53 }
 0x48f   :  { %v1885_v30 = vadd.f32 1.0, %v4115_v28  ;;  %v4117_v29 = vpop.eup %4116 }
 0x490   :  { %4120 = vrcp.f32 %v1879_v47  ;;  %v4119_v40 = vpop.eup %4118  ;;  %v1892_v52 = vadd.f32 1.0, %v4117_v29 }
 0x491   :  { %4122 = vrcp.f32 %v1885_v30 }
 0x492   :  { %4124 = vrcp.f32 %v1892_v52 }
 0x49a   :  { %v4121_v32 = vpop.eup %4120 }
 0x49b   :  { %v4123_v31 = vpop.eup %4122  ;;  %v1896_v25 = vmul.f32 %v4121_v32, %v4119_v40 }
 0x49c   :  { %v1895_v57 = vmul.f32 %v4123_v31, %v5587_v35  ;;  %v1934_v3 = vpop.f32.mrb[36].mxu0  ;;  %v1975_v5 = vpop.f32.mrb[36].mxu1 }
 0x49d   :  { %v1982_v53 = vadd.f32 %v1934_v3, %v371_v43  ;;  %v1984_v28 = vadd.f32 %v1975_v5, %v373_v60  ;;  %v1936_v47 = vpop.f32.mrb[37].mxu0  ;;  %v1977_v30 = vpop.f32.mrb[37].mxu1 }
 0x49e   :  { %v5769_v29 = vadd.f32 %v1896_v25, %v1895_v57  ;;  %v1983_v40 = vadd.f32 %v1936_v47, %v372_v36  ;;  %v1985_v32 = vadd.f32 %v1977_v30, %v374_v50  ;;  %v1938_v2 = vpop.f32.mrb[38].mxu0  ;;  %v1979_v1 = vpop.f32.mrb[38].mxu1 }
 0x49f   :  { %v3777_v35 = vmul.f32 -1.442695, %v1982_v53  ;;  %v1939_v31 = vpop.f32.mrb[39].mxu0  ;;  %v1980_v10 = vpop.f32.mrb[39].mxu1  ;;  %v7135_v2 = vld [vmem:[#allocation67_spill] sm:$0xff]  ;;  %v7136_v1 = vld [vmem:[#allocation68_spill] sm:$0xff] }
 0x4a0   :  { %v3778_v56 = vmul.f32 -1.442695, %v1983_v40  ;;  %4126 = vtanh.f32 %v5769_v29  ;;  %v3779_v63 = vmul.f32 -1.442695, %v1985_v32  ;;  %v4125_v43 = vpop.eup %4124  ;;  %v7133_v40 = vld [vmem:[#allocation65_spill] sm:$0xff]  ;;  %v7134_v32 = vld [vmem:[#allocation66_spill] sm:$0xff] }
 0x4a1   :  { %4128 = vpow2.f32 %v3777_v35  ;;  %v7137_v35 = vld [vmem:[#allocation69_spill] sm:$0xff]  ;;  %v7138_v31 = vld [vmem:[#allocation70_spill] sm:$0xff] }
 0x4a2   :  { %4130 = vpow2.f32 %v3778_v56 }
 0x4a3   :  { %4132 = vpow2.f32 %v3779_v63  ;;  %v7140_v63 = vld [vmem:[#allocation73_spill] sm:$0xff] }
 0x4a4   :  { %4134 = vtanh.f32 %v1984_v28 }
 0x4aa   :  { %v4127_v60 = vpop.eup %4126 }
 0x4ab   :  { %v4129_v3 = vpop.eup %4128  ;;  %v1899_v5 = vmul.f32 %v4127_v60, %v4125_v43  ;;  %v7141_v43 = vld [vmem:[#allocation74_spill] sm:$0xff]  ;;  %v7142_v60 = vld [vmem:[#allocation75_spill] sm:$0xff] }
 0x4ac   :  { %v4131_v25 = vpop.eup %4130  ;;  %v1989_v57 = vadd.f32 1.0, %v4129_v3  ;;  %v7143_v3 = vld [vmem:[#allocation76_spill] sm:$0xff] }
 0x4ad   :  { %v1995_v36 = vadd.f32 1.0, %v4131_v25  ;;  %v2011_v33 = vpack.c.bf16 %v1899_v5, %v1899_v5  ;;  %v4133_v56 = vpop.eup %4132 }
 0x4ae   :  { %4136 = vrcp.f32 %v1989_v57  ;;  %v4135_v52 = vpop.eup %4134  ;;  %v2002_v28 = vadd.f32 1.0, %v4133_v56  ;;  %v5813_v56 = vld [vmem:[#allocation2 + $0x8] ss:$16 sps:$4 sm:$0xff]  }
 0x4af   :  { %4138 = vrcp.f32 %v1995_v36  ;;  %2045 = vmatmul.mubr.bf16.vlgmr.msra.gmra.mrb[40].mxu0 %v2011_v33  ;;  %2086 = vmatmul.mubr.bf16.vlgmr.msra.gmra.mrb[40].mxu1 %v2011_v33  ;;  %v5810_v33 = vld [vmem:[#allocation2] ss:$16 sps:$4 sm:$0xff]  }
 0x4b0   :  { %2095 = vmatpush1.bf16.msra.mxu0 %v5590_v49  ;;  %2136 = vmatpush1.bf16.msra.mxu1 %v5593_v44  ;;  %4140 = vrcp.f32 %v2002_v28  ;;  %v7160_v28 = vld [vmem:[#allocation31_spill] sm:$0xff] }
 0x4b1   :  { %2096 = vmatprep.subr.bf16.mxu0 %v5596_v48  ;;  %2137 = vmatprep.subr.bf16.mxu1 %v5599_v54 }
 0x4b2   :  { %2126 = vmatprep.mubr.bf16.mxu0 %v6958_v61  ;;  %2167 = vmatprep.mubr.bf16.mxu1 %v6958_v61 }
 0x4b4   :  { %2097 = vmatpush1.bf16.msra.mxu0 %v5604_v11  ;;  %2138 = vmatpush1.bf16.msra.mxu1 %v5607_v39 }
 0x4b5   :  { %2098 = vmatprep.subr.bf16.mxu0 %v5610_v37  ;;  %2139 = vmatprep.subr.bf16.mxu1 %v5613_v46 }
 0x4b8   :  { %v4137_v10 = vpop.eup %4136  ;;  %2099 = vmatpush1.bf16.msra.mxu0 %v5616_v9  ;;  %2140 = vmatpush1.bf16.msra.mxu1 %v5619_v27 }
 0x4b9   :  { %v4139_v50 = vpop.eup %4138  ;;  %v2006_v53 = vmul.f32 %v4137_v10, %v4135_v52  ;;  %2100 = vmatprep.subr.bf16.mxu0 %v5622_v59  ;;  %2141 = vmatprep.subr.bf16.mxu1 %v5625_v58  ;;  %v5816_v52 = vld [vmem:[#allocation2 + $0x24] ss:$16 sps:$4 sm:$0xff]  }
 0x4ba   :  { %v2005_v47 = vmul.f32 %v4139_v50, %v5629_v41  ;;  %v7139_v41 = vld [vmem:[#allocation72_spill] sm:$0xff]  ;;  %v4141_v5 = vpop.eup %4140  ;;  %v7158_v50 = vld [vmem:[#allocation30_spill] sm:$0xff] }
 0x4bb   :  { %v7157_v10 = vld [vmem:[#allocation28_spill] sm:$0xff] }
 0x4bc   :  { %v5787_v30 = vadd.f32 %v2006_v53, %v2005_v47  ;;  %2101 = vmatpush1.bf16.msra.mxu0 %v5631_v14  ;;  %2142 = vmatpush1.bf16.msra.mxu1 %v7133_v40  ;;  %v7159_v53 = vld [vmem:[#allocation29_spill] sm:$0xff]  ;;  %v7161_v47 = vld [vmem:[#allocation32_spill] sm:$0xff] }
 0x4bd   :  { %2102 = vmatprep.subr.bf16.mxu0 %v7134_v32  ;;  %2143 = vmatprep.subr.bf16.mxu1 %v7135_v2 }
 0x4be   :  { %4142 = vtanh.f32 %v5787_v30 }
 0x4c0   :  { %2103 = vmatpush1.bf16.msra.mxu0 %v7136_v1  ;;  %2144 = vmatpush1.bf16.msra.mxu1 %v7137_v35 }
 0x4c1   :  { %2104 = vmatprep.subr.bf16.mxu0 %v7138_v31  ;;  %2145 = vmatprep.subr.bf16.mxu1 %v7139_v41 }
 0x4c4   :  { %2105 = vmatpush1.bf16.msra.mxu0 %v7140_v63  ;;  %2146 = vmatpush1.bf16.msra.mxu1 %v7141_v43 }
 0x4c5   :  { %2106 = vmatprep.subr.bf16.mxu0 %v7142_v60  ;;  %2147 = vmatprep.subr.bf16.mxu1 %v7143_v3 }
 0x4c8   :  { %v4143_v25 = vpop.eup %4142  ;;  %2107 = vmatpush1.bf16.msra.mxu0 %v5668_v45  ;;  %2148 = vmatpush1.bf16.msra.mxu1 %v5671_v13 }
 0x4c9   :  { %2108 = vmatprep.subr.bf16.mxu0 %v5674_v8  ;;  %2149 = vmatprep.subr.bf16.mxu1 %v5677_v12  ;;  %v2009_v57 = vmul.f32 %v4143_v25, %v4141_v5  ;;  %v7162_v5 = vld [vmem:[#allocation34_spill] sm:$0xff]  ;;  %v7163_v25 = vld [vmem:[#allocation33_spill] sm:$0xff] }
 0x4cb   :  { %v2010_v36 = vpack.c.bf16 %v2009_v57, %v2009_v57  ;;  %v7164_v57 = vld [vmem:[#allocation35_spill] sm:$0xff] }
 0x4cc   :  { %2109 = vmatpush1.bf16.msra.mxu0 %v5680_v6  ;;  %2150 = vmatpush1.bf16.msra.mxu1 %v5683_v7 }
 0x4cd   :  { %2204 = vmatprep.subr.bf16.mxu0 %v5374_v15  ;;  %2245 = vmatprep.subr.bf16.mxu1 %v5377_v16  ;;  %v7144_v15 = vld [vmem:[#allocation15_spill] sm:$0xff]  ;;  %v7145_v16 = vld [vmem:[#allocation16_spill] sm:$0xff] }
 0x4cf   :  { %2127 = vmatmul.mubr.bf16.vlgmr.msra.gmra.mrb[44].mxu0 %v2010_v36  ;;  %2168 = vmatmul.mubr.bf16.vlgmr.msra.gmra.mrb[44].mxu1 %v2010_v36 }
 0x4d0   :  { %2205 = vmatpush1.bf16.msra.mxu0 %v5810_v33  ;;  %2246 = vmatpush1.bf16.msra.mxu1 %v5813_v56 }
 0x4d1   :  { %2206 = vmatprep.subr.bf16.mxu0 %v5816_v52  ;;  %2247 = vmatprep.subr.bf16.mxu1 %v5385_v4  ;;  %v7146_v4 = vld [vmem:[#allocation18_spill] sm:$0xff] }
 0x4d2   :  { %2236 = vmatprep.mubr.bf16.mxu0 %v6958_v61  ;;  %2277 = vmatprep.mubr.bf16.mxu1 %v6958_v61 }
 0x4d4   :  { %2207 = vmatpush1.bf16.msra.mxu0 %v5390_v17  ;;  %2248 = vmatpush1.bf16.msra.mxu1 %v5393_v0  ;;  %v7147_v17 = vld [vmem:[#allocation17_spill] sm:$0xff]  ;;  %v7148_v0 = vld [vmem:[#allocation19_spill] sm:$0xff] }
 0x4d5   :  { %2208 = vmatprep.subr.bf16.mxu0 %v5396_v18  ;;  %2249 = vmatprep.subr.bf16.mxu1 %v5399_v19  ;;  %v7149_v18 = vld [vmem:[#allocation20_spill] sm:$0xff]  ;;  %v7150_v19 = vld [vmem:[#allocation22_spill] sm:$0xff] }
 0x4d8   :  { %2209 = vmatpush1.bf16.msra.mxu0 %v5402_v38  ;;  %2250 = vmatpush1.bf16.msra.mxu1 %v5405_v20  ;;  %v7151_v38 = vld [vmem:[#allocation21_spill] sm:$0xff]  ;;  %v7152_v20 = vld [vmem:[#allocation23_spill] sm:$0xff] }
 0x4d9   :  { %2210 = vmatprep.subr.bf16.mxu0 %v5408_v21  ;;  %2251 = vmatprep.subr.bf16.mxu1 %v5411_v22  ;;  %v7153_v21 = vld [vmem:[#allocation24_spill] sm:$0xff]  ;;  %v7154_v22 = vld [vmem:[#allocation26_spill] sm:$0xff] }
 0x4dc   :  { %2211 = vmatpush1.bf16.msra.mxu0 %v5414_v23  ;;  %2252 = vmatpush1.bf16.msra.mxu1 %v5417_v24  ;;  %v7155_v23 = vld [vmem:[#allocation25_spill] sm:$0xff]  ;;  %v7156_v24 = vld [vmem:[#allocation27_spill] sm:$0xff] }
 0x4dd   :  { %2212 = vmatprep.subr.bf16.mxu0 %v7144_v15  ;;  %2253 = vmatprep.subr.bf16.mxu1 %v7145_v16  ;;  %v7165_v15 = vld [vmem:[#allocation36_spill] sm:$0xff]  ;;  %v7166_v16 = vld [vmem:[#allocation38_spill] sm:$0xff] }
 0x4e0   :  { %2213 = vmatpush1.bf16.msra.mxu0 %v7146_v4  ;;  %2254 = vmatpush1.bf16.msra.mxu1 %v7147_v17  ;;  %v7167_v4 = vld [vmem:[#allocation37_spill] sm:$0xff]  ;;  %v7168_v17 = vld [vmem:[#allocation39_spill] sm:$0xff] }
 0x4e1   :  { %2214 = vmatprep.subr.bf16.mxu0 %v7148_v0  ;;  %2255 = vmatprep.subr.bf16.mxu1 %v7149_v18  ;;  %v7169_v0 = vld [vmem:[#allocation40_spill] sm:$0xff]  ;;  %v7171_v18 = vld [vmem:[#allocation41_spill] sm:$0xff] }
 0x4e4   :  { %2215 = vmatpush1.bf16.msra.mxu0 %v7150_v19  ;;  %2256 = vmatpush1.bf16.msra.mxu1 %v7151_v38  ;;  %v7172_v19 = vld [vmem:[#allocation43_spill] sm:$0xff]  ;;  %v7173_v38 = vld [vmem:[#allocation44_spill] sm:$0xff] }
 0x4e5   :  { %2216 = vmatprep.subr.bf16.mxu0 %v7152_v20  ;;  %2257 = vmatprep.subr.bf16.mxu1 %v7153_v21  ;;  %v7174_v20 = vld [vmem:[#allocation45_spill] sm:$0xff] }
 0x4e6   :  { %v7175_v21 = vld [vmem:[#allocation61_spill] sm:$0xff] }
 0x4e8   :  { %2217 = vmatpush1.bf16.msra.mxu0 %v7154_v22  ;;  %2258 = vmatpush1.bf16.msra.mxu1 %v7155_v23  ;;  %v7176_v22 = vld [vmem:[#allocation71_spill] sm:$0xff]  ;;  %v7177_v23 = vld [vmem:[#allocation46_spill] sm:$0xff] }
 0x4e9   :  { %2218 = vmatprep.subr.bf16.mxu0 %v7156_v24  ;;  %2259 = vmatprep.subr.bf16.mxu1 %v7157_v10  ;;  %v7178_v24 = vld [vmem:[#allocation47_spill] sm:$0xff]  ;;  %v7179_v10 = vld [vmem:[#allocation48_spill] sm:$0xff] }
 0x4ec   :  { %2219 = vmatpush1.bf16.msra.mxu0 %v7158_v50  ;;  %2260 = vmatpush1.bf16.msra.mxu1 %v7159_v53  ;;  %v7180_v50 = vld [vmem:[#allocation49_spill] sm:$0xff]  ;;  %v7181_v53 = vld [vmem:[#allocation50_spill] sm:$0xff] }
 0x4ed   :  { %2316 = vmatprep.subr.bf16.mxu0 %v7160_v28  ;;  %2357 = vmatprep.subr.bf16.mxu1 %v7161_v47  ;;  %v7182_v28 = vld [vmem:[#allocation51_spill] sm:$0xff]  ;;  %v7183_v47 = vld [vmem:[#allocation52_spill] sm:$0xff] }
 0x4ef   :  { %2237 = vmatmul.mubr.bf16.vlgmr.msra.gmra.mrb[48].mxu0 %v2010_v36  ;;  %2278 = vmatmul.mubr.bf16.vlgmr.msra.gmra.mrb[48].mxu1 %v2010_v36  ;;  %v7170_v36 = vld [vmem:[#allocation42_spill] sm:$0xff] }
 0x4f0   :  { %2317 = vmatpush1.bf16.msra.mxu0 %v7162_v5  ;;  %2358 = vmatpush1.bf16.msra.mxu1 %v7163_v25  ;;  %v7184_v5 = vld [vmem:[#allocation53_spill] sm:$0xff]  ;;  %v7185_v25 = vld [vmem:[#allocation54_spill] sm:$0xff] }
 0x4f1   :  { %2318 = vmatprep.subr.bf16.mxu0 %v7164_v57  ;;  %2359 = vmatprep.subr.bf16.mxu1 %v7165_v15  ;;  %v7186_v57 = vld [vmem:[#allocation55_spill] sm:$0xff]  ;;  %v7187_v15 = vld [vmem:[#allocation57_spill] sm:$0xff] }
 0x4f2   :  { %2348 = vmatprep.mubr.bf16.mxu0 %v6958_v61  ;;  %2389 = vmatprep.mubr.bf16.mxu1 %v6958_v61 }
 0x4f4   :  { %2319 = vmatpush1.bf16.msra.mxu0 %v7166_v16  ;;  %2360 = vmatpush1.bf16.msra.mxu1 %v7167_v4  ;;  %v7188_v16 = vld [vmem:[#allocation58_spill] sm:$0xff]  ;;  %v7189_v4 = vld [vmem:[#allocation59_spill] sm:$0xff] }
 0x4f5   :  { %2320 = vmatprep.subr.bf16.mxu0 %v7168_v17  ;;  %2361 = vmatprep.subr.bf16.mxu1 %v7169_v0  ;;  %v7190_v17 = vld [vmem:[#allocation60_spill] sm:$0xff]  ;;  %v7191_v0 = vld [vmem:[#allocation62_spill] sm:$0xff] }
 0x4f8   :  { %2321 = vmatpush1.bf16.msra.mxu0 %v7170_v36  ;;  %2362 = vmatpush1.bf16.msra.mxu1 %v7171_v18  ;;  %v7192_v36 = vld [vmem:[#allocation63_spill] sm:$0xff]  ;;  %v7193_v18 = vld [vmem:[#allocation64_spill] sm:$0xff] }
 0x4f9   :  { %2322 = vmatprep.subr.bf16.mxu0 %v7172_v19  ;;  %2363 = vmatprep.subr.bf16.mxu1 %v7173_v38 }
 0x4fc   :  { %2323 = vmatpush1.bf16.msra.mxu0 %v7174_v20  ;;  %2364 = vmatpush1.bf16.msra.mxu1 %v7175_v21 }
 0x4fd   :  { %2324 = vmatprep.subr.bf16.mxu0 %v7176_v22  ;;  %2365 = vmatprep.subr.bf16.mxu1 %v7177_v23 }
 0x500   :  { %2325 = vmatpush1.bf16.msra.mxu0 %v7178_v24  ;;  %2366 = vmatpush1.bf16.msra.mxu1 %v7179_v10 }
 0x501   :  { %2326 = vmatprep.subr.bf16.mxu0 %v7180_v50  ;;  %2367 = vmatprep.subr.bf16.mxu1 %v7181_v53 }
 0x504   :  { %2327 = vmatpush1.bf16.msra.mxu0 %v7182_v28  ;;  %2368 = vmatpush1.bf16.msra.mxu1 %v7183_v47 }
 0x505   :  { %2328 = vmatprep.subr.bf16.mxu0 %v7184_v5  ;;  %2369 = vmatprep.subr.bf16.mxu1 %v7185_v25 }
 0x508   :  { %2329 = vmatpush1.bf16.msra.mxu0 %v7186_v57  ;;  %2370 = vmatpush1.bf16.msra.mxu1 %v7187_v15 }
 0x509   :  { %2330 = vmatprep.subr.bf16.mxu0 %v7188_v16  ;;  %2371 = vmatprep.subr.bf16.mxu1 %v7189_v4 }
 0x50c   :  { %2331 = vmatpush1.bf16.msra.mxu0 %v7190_v17  ;;  %2372 = vmatpush1.bf16.msra.mxu1 %v7191_v0 }
 0x50d   :  { %2398 = vmatprep.subr.bf16.mxu0 %v7192_v36  ;;  %2439 = vmatprep.subr.bf16.mxu1 %v7193_v18 }
 0x582   :  { %v2046_v19 = vpop.f32.mrb[40].mxu0  ;;  %v2087_v38 = vpop.f32.mrb[40].mxu1 }
 0x583   :  { %v2048_v20 = vpop.f32.mrb[41].mxu0  ;;  %v2089_v21 = vpop.f32.mrb[41].mxu1 }
 0x584   :  { %v2050_v22 = vpop.f32.mrb[42].mxu0  ;;  %v2091_v23 = vpop.f32.mrb[42].mxu1 }
 0x585   :  { %v2051_v24 = vpop.f32.mrb[43].mxu0  ;;  %v2092_v10 = vpop.f32.mrb[43].mxu1 }
 0x5a2   :  { %v2128_v50 = vpop.f32.mrb[44].mxu0  ;;  %v2169_v53 = vpop.f32.mrb[44].mxu1 }
 0x5a3   :  { %v2129_v28 = vadd.f32 %v2128_v50, %v2046_v19  ;;  %v2170_v47 = vadd.f32 %v2169_v53, %v2087_v38  ;;  %v2130_v5 = vpop.f32.mrb[45].mxu0  ;;  %v2171_v25 = vpop.f32.mrb[45].mxu1 }
 0x5a4   :  { %v2131_v57 = vadd.f32 %v2130_v5, %v2048_v20  ;;  %v2172_v15 = vadd.f32 %v2171_v25, %v2089_v21  ;;  %v2132_v16 = vpop.f32.mrb[46].mxu0  ;;  %v2173_v4 = vpop.f32.mrb[46].mxu1 }
 0x5a5   :  { %v2176_v17 = vadd.f32 %v2129_v28, %v5314_v55  ;;  %v2133_v0 = vpop.f32.mrb[47].mxu0  ;;  %v2174_v36 = vpop.f32.mrb[47].mxu1  ;;  %v2178_v38 = vadd.f32 %v2170_v47, %v5326_v26  ;;  %v7194_v4 = vld [vmem:[#allocation87_spill] sm:$0xff] }
 0x5a6   :  { %v2177_v18 = vadd.f32 %v2131_v57, %v5317_v62  ;;  %v2179_v24 = vadd.f32 %v2172_v15, %v5322_v34  ;;  %v7196_v0 = vld [vmem:[#allocation88_spill] sm:$0xff] }
 0x5a7   :  { %v3780_v22 = vmul.f32 -1.442695, %v2176_v17  ;;  %v7195_v17 = vld [vmem:[#allocation103_spill] sm:$0xff]  ;;  %v7197_v36 = vld [vmem:[#allocation104_spill] sm:$0xff] }
 0x5a8   :  { %v3781_v23 = vmul.f32 -1.442695, %v2177_v18  ;;  %v3782_v19 = vmul.f32 -1.442695, %v2179_v24  ;;  %v375_v15 = vadd.f32 %v7195_v17, %v7194_v4  ;;  %v377_v47 = vadd.f32 %v7197_v36, %v7196_v0  ;;  %v7198_v24 = vld [vmem:[#allocation89_spill] sm:$0xff] }
 0x5a9   :  { %4144 = vpow2.f32 %v3780_v22 }
 0x5aa   :  { %4146 = vpow2.f32 %v3781_v23 }
 0x5ab   :  { %4148 = vpow2.f32 %v3782_v19  ;;  %v376_v19 = vadd.f32 %v5197_v51, %v7198_v24 }
 0x5ac   :  { %4150 = vtanh.f32 %v2178_v38  ;;  %v7199_v38 = vld [vmem:[#allocation90_spill] sm:$0xff] }
 0x5b3   :  { %v4145_v10 = vpop.eup %4144 }
 0x5b4   :  { %v4147_v20 = vpop.eup %4146  ;;  %v2183_v21 = vadd.f32 1.0, %v4145_v10  ;;  %v378_v10 = vadd.f32 %v5206_v42, %v7199_v38  ;;  %v6011_v38 = vld [vmem:[#allocation2 + $0xcc] ss:$16 sps:$4 sm:$0xff]  }
 0x5b5   :  { %v2189_v50 = vadd.f32 1.0, %v4147_v20  ;;  %v4149_v53 = vpop.eup %4148  ;;  %7206 = vst [vmem:[#allocation83_spill] sm:$0xff] %v6011_v38 }
 0x5b6   :  { %4152 = vrcp.f32 %v2183_v21  ;;  %v4151_v28 = vpop.eup %4150  ;;  %v2196_v16 = vadd.f32 1.0, %v4149_v53 }
 0x5b7   :  { %4154 = vrcp.f32 %v2189_v50 }
 0x5b8   :  { %4156 = vrcp.f32 %v2196_v16 }
 0x5c0   :  { %v4153_v5 = vpop.eup %4152 }
 0x5c1   :  { %v4155_v25 = vpop.eup %4154  ;;  %v2200_v57 = vmul.f32 %v4153_v5, %v4151_v28 }
 0x5c2   :  { %v2199_v18 = vmul.f32 %v4155_v25, %v5769_v29  ;;  %v2238_v22 = vpop.f32.mrb[48].mxu0  ;;  %v2279_v23 = vpop.f32.mrb[48].mxu1 }
 0x5c3   :  { %v2286_v20 = vadd.f32 %v2238_v22, %v375_v15  ;;  %v2288_v21 = vadd.f32 %v2279_v23, %v377_v47  ;;  %v2240_v50 = vpop.f32.mrb[49].mxu0  ;;  %v2281_v53 = vpop.f32.mrb[49].mxu1 }
 0x5c4   :  { %v5897_v28 = vadd.f32 %v2200_v57, %v2199_v18  ;;  %v2287_v5 = vadd.f32 %v2240_v50, %v376_v19  ;;  %v2289_v4 = vadd.f32 %v2281_v53, %v378_v10  ;;  %v2242_v17 = vpop.f32.mrb[50].mxu0  ;;  %v2283_v0 = vpop.f32.mrb[50].mxu1  ;;  %v6014_v10 = vld [vmem:[#allocation2 + $0xc0] ss:$16 sps:$4 sm:$0xff]   ;;  %v6023_v50 = vld [vmem:[#allocation2 + $0xec] ss:$16 sps:$4 sm:$0xff]  }
 0x5c5   :  { %v3783_v29 = vmul.f32 -1.442695, %v2286_v20  ;;  %v2243_v25 = vpop.f32.mrb[51].mxu0  ;;  %v2284_v36 = vpop.f32.mrb[51].mxu1  ;;  %7207 = vst [vmem:[#allocation84_spill] sm:$0xff] %v6014_v10  ;;  %7210 = vst [vmem:[#allocation65_spill] sm:$0xff] %v6023_v50 }
 0x5c6   :  { %v3784_v26 = vmul.f32 -1.442695, %v2287_v5  ;;  %4158 = vtanh.f32 %v5897_v28  ;;  %v3785_v24 = vmul.f32 -1.442695, %v2289_v4  ;;  %v4157_v15 = vpop.eup %4156  ;;  %v6008_v36 = vld [vmem:[#allocation2 + $0xc4] ss:$16 sps:$4 sm:$0xff]  }
 0x5c7   :  { %4160 = vpow2.f32 %v3783_v29  ;;  %7205 = vst [vmem:[#allocation82_spill] sm:$0xff] %v6008_v36  ;;  %v6017_v20 = vld [vmem:[#allocation2 + $0xc8] ss:$16 sps:$4 sm:$0xff]   ;;  %v6026_v53 = vld [vmem:[#allocation2 + $0xe0] ss:$16 sps:$4 sm:$0xff]  }
 0x5c8   :  { %4162 = vpow2.f32 %v3784_v26  ;;  %7208 = vst [vmem:[#allocation85_spill] sm:$0xff] %v6017_v20  ;;  %7211 = vst [vmem:[#allocation66_spill] sm:$0xff] %v6026_v53  ;;  %v6029_v5 = vld [vmem:[#allocation2 + $0xe8] ss:$16 sps:$4 sm:$0xff]   ;;  %v6032_v4 = vld [vmem:[#allocation7 + $0x4] ss:$16 sps:$4 sm:$0xff]  }
 0x5c9   :  { %4164 = vpow2.f32 %v3785_v24  ;;  %7212 = vst [vmem:[#allocation67_spill] sm:$0xff] %v6029_v5  ;;  %7213 = vst [vmem:[#allocation68_spill] sm:$0xff] %v6032_v4  ;;  %v6035_v0 = vld [vmem:[#allocation7 + $0xc] ss:$16 sps:$4 sm:$0xff]   ;;  %v6040_v29 = vld [vmem:[#allocation7] ss:$16 sps:$4 sm:$0xff]  }
 0x5ca   :  { %4166 = vtanh.f32 %v2288_v21  ;;  %v6020_v21 = vld [vmem:[#allocation2 + $0xe4] ss:$16 sps:$4 sm:$0xff]   ;;  %7214 = vst [vmem:[#allocation69_spill] sm:$0xff] %v6035_v0  ;;  %7215 = vst [vmem:[#allocation70_spill] sm:$0xff] %v6040_v29  ;;  %v6043_v25 = vld [vmem:[#allocation7 + $0x8] ss:$16 sps:$4 sm:$0xff]  }
 0x5cb   :  { %7209 = vst [vmem:[#allocation86_spill] sm:$0xff] %v6020_v21  ;;  %7216 = vst [vmem:[#allocation72_spill] sm:$0xff] %v6043_v25  ;;  %v6046_v24 = vld [vmem:[#allocation7 + $0x24] ss:$16 sps:$4 sm:$0xff]  }
 0x5cc   :  { %7217 = vst [vmem:[#allocation73_spill] sm:$0xff] %v6046_v24 }
 0x5d0   :  { %v4159_v47 = vpop.eup %4158 }
 0x5d1   :  { %v4161_v22 = vpop.eup %4160  ;;  %v2203_v23 = vmul.f32 %v4159_v47, %v4157_v15  ;;  %v6049_v15 = vld [vmem:[#allocation7 + $0x2c] ss:$16 sps:$4 sm:$0xff]   ;;  %v6054_v47 = vld [vmem:[#allocation7 + $0x20] ss:$16 sps:$4 sm:$0xff]  }
 0x5d2   :  { %v4163_v57 = vpop.eup %4162  ;;  %v2293_v18 = vadd.f32 1.0, %v4161_v22  ;;  %7218 = vst [vmem:[#allocation74_spill] sm:$0xff] %v6049_v15  ;;  %7219 = vst [vmem:[#allocation75_spill] sm:$0xff] %v6054_v47  ;;  %v6057_v22 = vld [vmem:[#allocation7 + $0x28] ss:$16 sps:$4 sm:$0xff]  }
 0x5d3   :  { %v2299_v17 = vadd.f32 1.0, %v4163_v57  ;;  %v2315_v19 = vpack.c.bf16 %v2203_v23, %v2203_v23  ;;  %v4165_v26 = vpop.eup %4164  ;;  %7220 = vst [vmem:[#allocation76_spill] sm:$0xff] %v6057_v22  ;;  %v6060_v23 = vld [vmem:[#allocation7 + $0x44] ss:$16 sps:$4 sm:$0xff]   ;;  %v6063_v57 = vld [vmem:[#allocation7 + $0x4c] ss:$16 sps:$4 sm:$0xff]  }
 0x5d4   :  { %4168 = vrcp.f32 %v2293_v18  ;;  %7221 = vst [vmem:[#allocation15_spill] sm:$0xff] %v6060_v23  ;;  %7222 = vst [vmem:[#allocation16_spill] sm:$0xff] %v6063_v57  ;;  %v6066_v18 = vld [vmem:[#allocation7 + $0x40] ss:$16 sps:$4 sm:$0xff]  }
 0x5d5   :  { %4170 = vrcp.f32 %v2299_v17  ;;  %2349 = vmatmul.mubr.bf16.vlgmr.msra.gmra.mrb[52].mxu0 %v2315_v19  ;;  %2390 = vmatmul.mubr.bf16.vlgmr.msra.gmra.mrb[52].mxu1 %v2315_v19  ;;  %7223 = vst [vmem:[#allocation18_spill] sm:$0xff] %v6066_v18  ;;  %v6069_v17 = vld [vmem:[#allocation7 + $0x48] ss:$16 sps:$4 sm:$0xff]   ;;  %v6072_v19 = vld [vmem:[#allocation7 + $0x64] ss:$16 sps:$4 sm:$0xff]  }
 0x5d6   :  { %2399 = vmatpush1.bf16.msra.mxu0 %v5590_v49  ;;  %2440 = vmatpush1.bf16.msra.mxu1 %v5593_v44  ;;  %v4167_v49 = vpop.eup %4166  ;;  %7224 = vst [vmem:[#allocation17_spill] sm:$0xff] %v6069_v17  ;;  %7225 = vst [vmem:[#allocation19_spill] sm:$0xff] %v6072_v19 }
 0x5d7   :  { %2400 = vmatprep.subr.bf16.mxu0 %v5596_v48  ;;  %2441 = vmatprep.subr.bf16.mxu1 %v5599_v54  ;;  %v2306_v54 = vadd.f32 1.0, %v4165_v26  ;;  %v6075_v26 = vld [vmem:[#allocation7 + $0x6c] ss:$16 sps:$4 sm:$0xff]  }
 0x5d8   :  { %2430 = vmatprep.mubr.bf16.mxu0 %v6958_v61  ;;  %2471 = vmatprep.mubr.bf16.mxu1 %v6958_v61  ;;  %7226 = vst [vmem:[#allocation20_spill] sm:$0xff] %v6075_v26 }
 0x5d9   :  { %4172 = vrcp.f32 %v2306_v54  ;;  %v6090_v54 = vld [vmem:[#allocation7 + $0x80] ss:$16 sps:$4 sm:$0xff]  }
 0x5da   :  { %2401 = vmatpush1.bf16.msra.mxu0 %v5604_v11  ;;  %2442 = vmatpush1.bf16.msra.mxu1 %v5607_v39  ;;  %7231 = vst [vmem:[#allocation26_spill] sm:$0xff] %v6090_v54 }
 0x5db   :  { %2402 = vmatprep.subr.bf16.mxu0 %v5610_v37  ;;  %2443 = vmatprep.subr.bf16.mxu1 %v5613_v46 }
 0x5de   :  { %v4169_v16 = vpop.eup %4168  ;;  %2403 = vmatpush1.bf16.msra.mxu0 %v5616_v9  ;;  %2444 = vmatpush1.bf16.msra.mxu1 %v5619_v27 }
 0x5df   :  { %v4171_v44 = vpop.eup %4170  ;;  %v2310_v48 = vmul.f32 %v4169_v16, %v4167_v49  ;;  %2404 = vmatprep.subr.bf16.mxu0 %v5622_v59  ;;  %2445 = vmatprep.subr.bf16.mxu1 %v5625_v58  ;;  %v5938_v59 = vld [vmem:[#allocation2 + $0x4] ss:$16 sps:$4 sm:$0xff]   ;;  %v5941_v58 = vld [vmem:[#allocation2 + $0xc] ss:$16 sps:$4 sm:$0xff]   ;;  %v6078_v49 = vld [vmem:[#allocation7 + $0x60] ss:$16 sps:$4 sm:$0xff]  }
 0x5e0   :  { %v2309_v11 = vmul.f32 %v4171_v44, %v5787_v30  ;;  %v5972_v30 = vld [vmem:[#allocation2 + $0x64] ss:$16 sps:$4 sm:$0xff]   ;;  %7227 = vst [vmem:[#allocation22_spill] sm:$0xff] %v6078_v49  ;;  %v6081_v16 = vld [vmem:[#allocation7 + $0x68] ss:$16 sps:$4 sm:$0xff]  }
 0x5e1   :  { %7228 = vst [vmem:[#allocation21_spill] sm:$0xff] %v6081_v16  ;;  %v6084_v44 = vld [vmem:[#allocation7 + $0x84] ss:$16 sps:$4 sm:$0xff]  }
 0x5e2   :  { %v5915_v39 = vadd.f32 %v2310_v48, %v2309_v11  ;;  %2405 = vmatpush1.bf16.msra.mxu0 %v5631_v14  ;;  %2446 = vmatpush1.bf16.msra.mxu1 %v7133_v40  ;;  %v5949_v14 = vld [vmem:[#allocation2 + $0x2c] ss:$16 sps:$4 sm:$0xff]   ;;  %7229 = vst [vmem:[#allocation23_spill] sm:$0xff] %v6084_v44  ;;  %v6093_v11 = vld [vmem:[#allocation7 + $0x88] ss:$16 sps:$4 sm:$0xff]  }
 0x5e3   :  { %2406 = vmatprep.subr.bf16.mxu0 %v7134_v32  ;;  %2447 = vmatprep.subr.bf16.mxu1 %v7135_v2  ;;  %v4173_v37 = vpop.eup %4172  ;;  %v5975_v40 = vld [vmem:[#allocation2 + $0x6c] ss:$16 sps:$4 sm:$0xff]   ;;  %v5978_v32 = vld [vmem:[#allocation2 + $0x60] ss:$16 sps:$4 sm:$0xff]   ;;  %v5981_v2 = vld [vmem:[#allocation2 + $0x68] ss:$16 sps:$4 sm:$0xff]  }
 0x5e4   :  { %4174 = vtanh.f32 %v5915_v39  ;;  %v6087_v48 = vld [vmem:[#allocation7 + $0x8c] ss:$16 sps:$4 sm:$0xff]   ;;  %7232 = vst [vmem:[#allocation25_spill] sm:$0xff] %v6093_v11 }
 0x5e5   :  { %7230 = vst [vmem:[#allocation24_spill] sm:$0xff] %v6087_v48 }
 0x5e6   :  { %2407 = vmatpush1.bf16.msra.mxu0 %v7136_v1  ;;  %2448 = vmatpush1.bf16.msra.mxu1 %v7137_v35  ;;  %v5984_v1 = vld [vmem:[#allocation2 + $0x84] ss:$16 sps:$4 sm:$0xff]   ;;  %v5987_v35 = vld [vmem:[#allocation2 + $0x8c] ss:$16 sps:$4 sm:$0xff]  }
 0x5e7   :  { %2408 = vmatprep.subr.bf16.mxu0 %v7138_v31  ;;  %2449 = vmatprep.subr.bf16.mxu1 %v7139_v41  ;;  %v5990_v31 = vld [vmem:[#allocation2 + $0x80] ss:$16 sps:$4 sm:$0xff]   ;;  %v5993_v41 = vld [vmem:[#allocation2 + $0x88] ss:$16 sps:$4 sm:$0xff]  }
 0x5e8   :  { %7200 = vst [vmem:[#allocation77_spill] sm:$0xff] %v5993_v41 }
 0x5ea   :  { %2409 = vmatpush1.bf16.msra.mxu0 %v7140_v63  ;;  %2450 = vmatpush1.bf16.msra.mxu1 %v7141_v43  ;;  %v5996_v63 = vld [vmem:[#allocation2 + $0xa4] ss:$16 sps:$4 sm:$0xff]   ;;  %v5999_v43 = vld [vmem:[#allocation2 + $0xac] ss:$16 sps:$4 sm:$0xff]  }
 0x5eb   :  { %2410 = vmatprep.subr.bf16.mxu0 %v7142_v60  ;;  %2451 = vmatprep.subr.bf16.mxu1 %v7143_v3  ;;  %7201 = vst [vmem:[#allocation78_spill] sm:$0xff] %v5996_v63  ;;  %7202 = vst [vmem:[#allocation79_spill] sm:$0xff] %v5999_v43  ;;  %v6002_v60 = vld [vmem:[#allocation2 + $0xa0] ss:$16 sps:$4 sm:$0xff]   ;;  %v6005_v3 = vld [vmem:[#allocation2 + $0xa8] ss:$16 sps:$4 sm:$0xff]  }
 0x5ec   :  { %7203 = vst [vmem:[#allocation80_spill] sm:$0xff] %v6002_v60  ;;  %7204 = vst [vmem:[#allocation81_spill] sm:$0xff] %v6005_v3 }
 0x5ee   :  { %v4175_v46 = vpop.eup %4174  ;;  %2411 = vmatpush1.bf16.msra.mxu0 %v5668_v45  ;;  %2452 = vmatpush1.bf16.msra.mxu1 %v5671_v13  ;;  %v5960_v45 = vld [vmem:[#allocation2 + $0x44] ss:$16 sps:$4 sm:$0xff]   ;;  %v5963_v13 = vld [vmem:[#allocation2 + $0x4c] ss:$16 sps:$4 sm:$0xff]  }
 0x5ef   :  { %2412 = vmatprep.subr.bf16.mxu0 %v5674_v8  ;;  %2453 = vmatprep.subr.bf16.mxu1 %v5677_v12  ;;  %v2313_v9 = vmul.f32 %v4175_v46, %v4173_v37  ;;  %v5966_v8 = vld [vmem:[#allocation2 + $0x40] ss:$16 sps:$4 sm:$0xff]   ;;  %v5969_v12 = vld [vmem:[#allocation2 + $0x48] ss:$16 sps:$4 sm:$0xff]   ;;  %v6096_v37 = vld [vmem:[#allocation7 + $0xa4] ss:$16 sps:$4 sm:$0xff]  }
 0x5f0   :  { %7233 = vst [vmem:[#allocation27_spill] sm:$0xff] %v6096_v37  ;;  %v6099_v46 = vld [vmem:[#allocation7 + $0xac] ss:$16 sps:$4 sm:$0xff]  }
 0x5f1   :  { %v5934_v27 = vpack.c.bf16 %v2313_v9, %v2313_v9  ;;  %7234 = vst [vmem:[#allocation28_spill] sm:$0xff] %v6099_v46  ;;  %v6102_v9 = vld [vmem:[#allocation7 + $0xa0] ss:$16 sps:$4 sm:$0xff]  }
 0x5f2   :  { %2413 = vmatpush1.bf16.msra.mxu0 %v5680_v6  ;;  %2454 = vmatpush1.bf16.msra.mxu1 %v5683_v7  ;;  %v5954_v7 = vld [vmem:[#allocation2 + $0x20] ss:$16 sps:$4 sm:$0xff]   ;;  %v5957_v6 = vld [vmem:[#allocation2 + $0x28] ss:$16 sps:$4 sm:$0xff]   ;;  %7235 = vst [vmem:[#allocation30_spill] sm:$0xff] %v6102_v9 }
 0x5f3   :  { %2508 = vmatprep.subr.bf16.mxu0 %v5938_v59  ;;  %2549 = vmatprep.subr.bf16.mxu1 %v5941_v58 }
 0x5f5   :  { %2431 = vmatmul.mubr.bf16.vlgmr.msra.gmra.mrb[56].mxu0 %v5934_v27  ;;  %2472 = vmatmul.mubr.bf16.vlgmr.msra.gmra.mrb[56].mxu1 %v5934_v27 }
 0x5f6   :  { %2509 = vmatpush1.bf16.msra.mxu0 %v5810_v33  ;;  %2550 = vmatpush1.bf16.msra.mxu1 %v5813_v56 }
 0x5f7   :  { %2510 = vmatprep.subr.bf16.mxu0 %v5816_v52  ;;  %2551 = vmatprep.subr.bf16.mxu1 %v5949_v14 }
 0x5f8   :  { %2540 = vmatprep.mubr.bf16.mxu0 %v6958_v61  ;;  %2581 = vmatprep.mubr.bf16.mxu1 %v6958_v61 }
 0x5fa   :  { %2511 = vmatpush1.bf16.msra.mxu0 %v5954_v7  ;;  %2552 = vmatpush1.bf16.msra.mxu1 %v5957_v6 }
 0x5fb   :  { %2512 = vmatprep.subr.bf16.mxu0 %v5960_v45  ;;  %2553 = vmatprep.subr.bf16.mxu1 %v5963_v13 }
 0x5fe   :  { %2513 = vmatpush1.bf16.msra.mxu0 %v5966_v8  ;;  %2554 = vmatpush1.bf16.msra.mxu1 %v5969_v12 }
 0x5ff   :  { %2514 = vmatprep.subr.bf16.mxu0 %v5972_v30  ;;  %2555 = vmatprep.subr.bf16.mxu1 %v5975_v40 }
 0x602   :  { %2515 = vmatpush1.bf16.msra.mxu0 %v5978_v32  ;;  %2556 = vmatpush1.bf16.msra.mxu1 %v5981_v2 }
 0x603   :  { %2516 = vmatprep.subr.bf16.mxu0 %v5984_v1  ;;  %2557 = vmatprep.subr.bf16.mxu1 %v5987_v35 }
 0x606   :  { %2517 = vmatpush1.bf16.msra.mxu0 %v5990_v31  ;;  %2558 = vmatpush1.bf16.msra.mxu1 %v5993_v41 }
 0x607   :  { %2518 = vmatprep.subr.bf16.mxu0 %v5996_v63  ;;  %2559 = vmatprep.subr.bf16.mxu1 %v5999_v43 }
 0x60a   :  { %2519 = vmatpush1.bf16.msra.mxu0 %v6002_v60  ;;  %2560 = vmatpush1.bf16.msra.mxu1 %v6005_v3 }
 0x60b   :  { %2520 = vmatprep.subr.bf16.mxu0 %v6008_v36  ;;  %2561 = vmatprep.subr.bf16.mxu1 %v6011_v38 }
 0x60e   :  { %2521 = vmatpush1.bf16.msra.mxu0 %v6014_v10  ;;  %2562 = vmatpush1.bf16.msra.mxu1 %v6017_v20 }
 0x60f   :  { %2522 = vmatprep.subr.bf16.mxu0 %v6020_v21  ;;  %2563 = vmatprep.subr.bf16.mxu1 %v6023_v50 }
 0x612   :  { %2523 = vmatpush1.bf16.msra.mxu0 %v6026_v53  ;;  %2564 = vmatpush1.bf16.msra.mxu1 %v6029_v5 }
 0x613   :  { %2620 = vmatprep.subr.bf16.mxu0 %v6032_v4  ;;  %2661 = vmatprep.subr.bf16.mxu1 %v6035_v0 }
 0x615   :  { %2541 = vmatmul.mubr.bf16.vlgmr.msra.gmra.mrb[60].mxu0 %v5934_v27  ;;  %2582 = vmatmul.mubr.bf16.vlgmr.msra.gmra.mrb[60].mxu1 %v5934_v27  ;;  %v6105_v27 = vld [vmem:[#allocation7 + $0xa8] ss:$16 sps:$4 sm:$0xff]  }
 0x616   :  { %2621 = vmatpush1.bf16.msra.mxu0 %v6040_v29  ;;  %2662 = vmatpush1.bf16.msra.mxu1 %v6043_v25  ;;  %7236 = vst [vmem:[#allocation29_spill] sm:$0xff] %v6105_v27 }
 0x617   :  { %2622 = vmatprep.subr.bf16.mxu0 %v6046_v24  ;;  %2663 = vmatprep.subr.bf16.mxu1 %v6049_v15 }
 0x618   :  { %2652 = vmatprep.mubr.bf16.mxu0 %v6958_v61  ;;  %2693 = vmatprep.mubr.bf16.mxu1 %v6958_v61 }
 0x61a   :  { %2623 = vmatpush1.bf16.msra.mxu0 %v6054_v47  ;;  %2664 = vmatpush1.bf16.msra.mxu1 %v6057_v22 }
 0x61b   :  { %2624 = vmatprep.subr.bf16.mxu0 %v6060_v23  ;;  %2665 = vmatprep.subr.bf16.mxu1 %v6063_v57 }
 0x61e   :  { %2625 = vmatpush1.bf16.msra.mxu0 %v6066_v18  ;;  %2666 = vmatpush1.bf16.msra.mxu1 %v6069_v17 }
 0x61f   :  { %2626 = vmatprep.subr.bf16.mxu0 %v6072_v19  ;;  %2667 = vmatprep.subr.bf16.mxu1 %v6075_v26 }
 0x622   :  { %2627 = vmatpush1.bf16.msra.mxu0 %v6078_v49  ;;  %2668 = vmatpush1.bf16.msra.mxu1 %v6081_v16 }
 0x623   :  { %2628 = vmatprep.subr.bf16.mxu0 %v6084_v44  ;;  %2669 = vmatprep.subr.bf16.mxu1 %v6087_v48 }
 0x626   :  { %2629 = vmatpush1.bf16.msra.mxu0 %v6090_v54  ;;  %2670 = vmatpush1.bf16.msra.mxu1 %v6093_v11  ;;  %v6108_v54 = vld [vmem:[#allocation7 + $0xc4] ss:$16 sps:$4 sm:$0xff]   ;;  %v6111_v11 = vld [vmem:[#allocation7 + $0xcc] ss:$16 sps:$4 sm:$0xff]  }
 0x627   :  { %2630 = vmatprep.subr.bf16.mxu0 %v6096_v37  ;;  %2671 = vmatprep.subr.bf16.mxu1 %v6099_v46  ;;  %7237 = vst [vmem:[#allocation31_spill] sm:$0xff] %v6108_v54  ;;  %7238 = vst [vmem:[#allocation32_spill] sm:$0xff] %v6111_v11  ;;  %v6114_v37 = vld [vmem:[#allocation7 + $0xc0] ss:$16 sps:$4 sm:$0xff]   ;;  %v6117_v46 = vld [vmem:[#allocation7 + $0xc8] ss:$16 sps:$4 sm:$0xff]  }
 0x628   :  { %7239 = vst [vmem:[#allocation34_spill] sm:$0xff] %v6114_v37  ;;  %7240 = vst [vmem:[#allocation33_spill] sm:$0xff] %v6117_v46 }
 0x62a   :  { %2631 = vmatpush1.bf16.msra.mxu0 %v6102_v9  ;;  %2672 = vmatpush1.bf16.msra.mxu1 %v6105_v27  ;;  %v6120_v9 = vld [vmem:[#allocation7 + $0xe4] ss:$16 sps:$4 sm:$0xff]   ;;  %v6123_v27 = vld [vmem:[#allocation7 + $0xec] ss:$16 sps:$4 sm:$0xff]  }
 0x62b   :  { %2632 = vmatprep.subr.bf16.mxu0 %v6108_v54  ;;  %2673 = vmatprep.subr.bf16.mxu1 %v6111_v11  ;;  %7241 = vst [vmem:[#allocation35_spill] sm:$0xff] %v6120_v9  ;;  %7242 = vst [vmem:[#allocation36_spill] sm:$0xff] %v6123_v27  ;;  %v6126_v54 = vld [vmem:[#allocation7 + $0xe0] ss:$16 sps:$4 sm:$0xff]   ;;  %v6129_v11 = vld [vmem:[#allocation7 + $0xe8] ss:$16 sps:$4 sm:$0xff]  }
 0x62c   :  { %7243 = vst [vmem:[#allocation38_spill] sm:$0xff] %v6126_v54  ;;  %7244 = vst [vmem:[#allocation37_spill] sm:$0xff] %v6129_v11 }
 0x62e   :  { %2633 = vmatpush1.bf16.msra.mxu0 %v6114_v37  ;;  %2674 = vmatpush1.bf16.msra.mxu1 %v6117_v46  ;;  %v6132_v37 = vld [vmem:[#allocation5 + $0x4] ss:$16 sps:$4 sm:$0xff]   ;;  %v6135_v46 = vld [vmem:[#allocation5 + $0xc] ss:$16 sps:$4 sm:$0xff]  }
 0x62f   :  { %2634 = vmatprep.subr.bf16.mxu0 %v6120_v9  ;;  %2675 = vmatprep.subr.bf16.mxu1 %v6123_v27  ;;  %7245 = vst [vmem:[#allocation39_spill] sm:$0xff] %v6132_v37  ;;  %7246 = vst [vmem:[#allocation40_spill] sm:$0xff] %v6135_v46 }
 0x632   :  { %2635 = vmatpush1.bf16.msra.mxu0 %v6126_v54  ;;  %2676 = vmatpush1.bf16.msra.mxu1 %v6129_v11 }
 0x633   :  { %2702 = vmatprep.subr.bf16.mxu0 %v6132_v37  ;;  %2743 = vmatprep.subr.bf16.mxu1 %v6135_v46 }
 0x6a8   :  { %v2350_v9 = vpop.f32.mrb[52].mxu0  ;;  %v2391_v48 = vpop.f32.mrb[52].mxu1 }
 0x6a9   :  { %v2352_v44 = vpop.f32.mrb[53].mxu0  ;;  %v2393_v27 = vpop.f32.mrb[53].mxu1 }
 0x6aa   :  { %v2354_v16 = vpop.f32.mrb[54].mxu0  ;;  %v2395_v49 = vpop.f32.mrb[54].mxu1 }
 0x6ab   :  { %v2355_v26 = vpop.f32.mrb[55].mxu0  ;;  %v2396_v54 = vpop.f32.mrb[55].mxu1 }
 0x6c8   :  { %v2432_v19 = vpop.f32.mrb[56].mxu0  ;;  %v2473_v17 = vpop.f32.mrb[56].mxu1 }
 0x6c9   :  { %v2433_v18 = vadd.f32 %v2432_v19, %v2350_v9  ;;  %v2474_v11 = vadd.f32 %v2473_v17, %v2391_v48  ;;  %v2434_v57 = vpop.f32.mrb[57].mxu0  ;;  %v2475_v23 = vpop.f32.mrb[57].mxu1  ;;  %v7247_v17 = vld [vmem:[#allocation13_spill] sm:$0xff]  ;;  %v7250_v9 = vld [vmem:[#allocation92_spill] sm:$0xff] }
 0x6ca   :  { %v2435_v22 = vadd.f32 %v2434_v57, %v2352_v44  ;;  %v2476_v37 = vadd.f32 %v2475_v23, %v2393_v27  ;;  %v2436_v47 = vpop.f32.mrb[58].mxu0  ;;  %v2477_v15 = vpop.f32.mrb[58].mxu1  ;;  %v7248_v44 = vld [vmem:[#allocation91_spill] sm:$0xff]  ;;  %v7251_v27 = vld [vmem:[#allocation104_spill] sm:$0xff] }
 0x6cb   :  { %v2480_v46 = vadd.f32 %v2433_v18, %v5314_v55  ;;  %v2437_v24 = vpop.f32.mrb[59].mxu0  ;;  %v2478_v25 = vpop.f32.mrb[59].mxu1  ;;  %v2482_v48 = vadd.f32 %v2474_v11, %v7247_v17  ;;  %v381_v11 = vadd.f32 %v7251_v27, %v7250_v9 }
 0x6cc   :  { %v2481_v29 = vadd.f32 %v2435_v22, %v5317_v62  ;;  %v2483_v26 = vadd.f32 %v2476_v37, %v5322_v34 }
 0x6cd   :  { %v3786_v16 = vmul.f32 -1.442695, %v2480_v46  ;;  %v7249_v46 = vld [vmem:[#allocation103_spill] sm:$0xff] }
 0x6ce   :  { %v3787_v49 = vmul.f32 -1.442695, %v2481_v29  ;;  %v3788_v19 = vmul.f32 -1.442695, %v2483_v26  ;;  %v379_v37 = vadd.f32 %v7249_v46, %v7248_v44 }
 0x6cf   :  { %4176 = vpow2.f32 %v3786_v16 }
 0x6d0   :  { %4178 = vpow2.f32 %v3787_v49 }
 0x6d1   :  { %4180 = vpow2.f32 %v3788_v19  ;;  %v7252_v19 = vld [vmem:[#allocation93_spill] sm:$0xff] }
 0x6d2   :  { %4182 = vtanh.f32 %v2482_v48  ;;  %v380_v48 = vadd.f32 %v5197_v51, %v7252_v19 }
 0x6d9   :  { %v4177_v54 = vpop.eup %4176 }
 0x6da   :  { %v4179_v57 = vpop.eup %4178  ;;  %v2487_v23 = vadd.f32 1.0, %v4177_v54  ;;  %v7253_v54 = vld [vmem:[#allocation94_spill] sm:$0xff] }
 0x6db   :  { %v2493_v15 = vadd.f32 1.0, %v4179_v57  ;;  %v4181_v25 = vpop.eup %4180  ;;  %v382_v57 = vadd.f32 %v5206_v42, %v7253_v54  ;;  %v6168_v54 = vld [vmem:[#allocation5 + $0x20] ss:$16 sps:$4 sm:$0xff]  }
 0x6dc   :  { %4184 = vrcp.f32 %v2487_v23  ;;  %v4183_v24 = vpop.eup %4182  ;;  %v2500_v18 = vadd.f32 1.0, %v4181_v25 }
 0x6dd   :  { %4186 = vrcp.f32 %v2493_v15 }
 0x6de   :  { %4188 = vrcp.f32 %v2500_v18  ;;  %v6154_v18 = vld [vmem:[#allocation5] ss:$16 sps:$4 sm:$0xff]  }
 0x6e6   :  { %v4185_v47 = vpop.eup %4184 }
 0x6e7   :  { %v4187_v22 = vpop.eup %4186  ;;  %v2504_v29 = vmul.f32 %v4185_v47, %v4183_v24 }
 0x6e8   :  { %v2503_v16 = vmul.f32 %v4187_v22, %v5897_v28  ;;  %v2542_v49 = vpop.f32.mrb[60].mxu0  ;;  %v2583_v26 = vpop.f32.mrb[60].mxu1 }
 0x6e9   :  { %v2590_v23 = vadd.f32 %v2542_v49, %v379_v37  ;;  %v2592_v15 = vadd.f32 %v2583_v26, %v381_v11  ;;  %v2544_v24 = vpop.f32.mrb[61].mxu0  ;;  %v2585_v25 = vpop.f32.mrb[61].mxu1 }
 0x6ea   :  { %v6151_v47 = vadd.f32 %v2504_v29, %v2503_v16  ;;  %v2591_v44 = vadd.f32 %v2544_v24, %v380_v48  ;;  %v2593_v46 = vadd.f32 %v2585_v25, %v382_v57  ;;  %v2546_v17 = vpop.f32.mrb[62].mxu0  ;;  %v2587_v9 = vpop.f32.mrb[62].mxu1  ;;  %v6171_v57 = vld [vmem:[#allocation5 + $0x28] ss:$16 sps:$4 sm:$0xff]  }
 0x6eb   :  { %v3789_v28 = vmul.f32 -1.442695, %v2590_v23  ;;  %v2547_v22 = vpop.f32.mrb[63].mxu0  ;;  %v2588_v27 = vpop.f32.mrb[63].mxu1  ;;  %v6174_v23 = vld [vmem:[#allocation5 + $0x44] ss:$16 sps:$4 sm:$0xff]  }
 0x6ec   :  { %v3790_v34 = vmul.f32 -1.442695, %v2591_v44  ;;  %4190 = vtanh.f32 %v6151_v47  ;;  %v3791_v19 = vmul.f32 -1.442695, %v2593_v46  ;;  %v4189_v37 = vpop.eup %4188  ;;  %v6160_v46 = vld [vmem:[#allocation5 + $0x24] ss:$16 sps:$4 sm:$0xff]  }
 0x6ed   :  { %4192 = vpow2.f32 %v3789_v28  ;;  %v6163_v27 = vld [vmem:[#allocation5 + $0x2c] ss:$16 sps:$4 sm:$0xff]   ;;  %v6180_v9 = vld [vmem:[#allocation5 + $0x40] ss:$16 sps:$4 sm:$0xff]   ;;  %v6183_v28 = vld [vmem:[#allocation5 + $0x48] ss:$16 sps:$4 sm:$0xff]  }
 0x6ee   :  { %4194 = vpow2.f32 %v3790_v34  ;;  %v6157_v34 = vld [vmem:[#allocation5 + $0x8] ss:$16 sps:$4 sm:$0xff]  }
 0x6ef   :  { %4196 = vpow2.f32 %v3791_v19 }
 0x6f0   :  { %4198 = vtanh.f32 %v2592_v15  ;;  %v6177_v15 = vld [vmem:[#allocation5 + $0x4c] ss:$16 sps:$4 sm:$0xff]  }
 0x6f6   :  { %v4191_v11 = vpop.eup %4190 }
 0x6f7   :  { %v4193_v49 = vpop.eup %4192  ;;  %v2507_v26 = vmul.f32 %v4191_v11, %v4189_v37  ;;  %v6186_v11 = vld [vmem:[#allocation5 + $0x64] ss:$16 sps:$4 sm:$0xff]  }
 0x6f8   :  { %v4195_v29 = vpop.eup %4194  ;;  %v2597_v16 = vadd.f32 1.0, %v4193_v49  ;;  %v6189_v49 = vld [vmem:[#allocation5 + $0x6c] ss:$16 sps:$4 sm:$0xff]  }
 0x6f9   :  { %v2603_v17 = vadd.f32 1.0, %v4195_v29  ;;  %v2619_v48 = vpack.c.bf16 %v2507_v26, %v2507_v26  ;;  %v4197_v24 = vpop.eup %4196 }
 0x6fa   :  { %4200 = vrcp.f32 %v2597_v16  ;;  %v4199_v25 = vpop.eup %4198  ;;  %v2610_v37 = vadd.f32 1.0, %v4197_v24  ;;  %v6195_v16 = vld [vmem:[#allocation5 + $0x60] ss:$16 sps:$4 sm:$0xff]   ;;  %v6204_v24 = vld [vmem:[#allocation5 + $0x8c] ss:$16 sps:$4 sm:$0xff]  }
 0x6fb   :  { %4202 = vrcp.f32 %v2603_v17  ;;  %2653 = vmatmul.mubr.bf16.vlgmr.msra.gmra.mrb[64].mxu0 %v2619_v48  ;;  %2694 = vmatmul.mubr.bf16.vlgmr.msra.gmra.mrb[64].mxu1 %v2619_v48  ;;  %v6198_v17 = vld [vmem:[#allocation5 + $0x68] ss:$16 sps:$4 sm:$0xff]   ;;  %v6201_v48 = vld [vmem:[#allocation5 + $0x84] ss:$16 sps:$4 sm:$0xff]   ;;  %7256 = vst [vmem:[#allocation43_spill] sm:$0xff] %v6204_v24 }
 0x6fc   :  { %2703 = vmatpush1.bf16.msra.mxu0 %v6154_v18  ;;  %2744 = vmatpush1.bf16.msra.mxu1 %v6157_v34  ;;  %7254 = vst [vmem:[#allocation42_spill] sm:$0xff] %v6198_v17  ;;  %4204 = vrcp.f32 %v2610_v37  ;;  %7255 = vst [vmem:[#allocation41_spill] sm:$0xff] %v6201_v48  ;;  %v6223_v37 = vld [vmem:[#allocation5 + $0xa8] ss:$16 sps:$4 sm:$0xff]  }
 0x6fd   :  { %2704 = vmatprep.subr.bf16.mxu0 %v6160_v46  ;;  %2745 = vmatprep.subr.bf16.mxu1 %v6163_v27  ;;  %7262 = vst [vmem:[#allocation47_spill] sm:$0xff] %v6223_v37 }
 0x6fe   :  { %2734 = vmatprep.mubr.bf16.mxu0 %v6958_v61  ;;  %2775 = vmatprep.mubr.bf16.mxu1 %v6958_v61 }
 0x700   :  { %2705 = vmatpush1.bf16.msra.mxu0 %v6168_v54  ;;  %2746 = vmatpush1.bf16.msra.mxu1 %v6171_v57 }
 0x701   :  { %2706 = vmatprep.subr.bf16.mxu0 %v6174_v23  ;;  %2747 = vmatprep.subr.bf16.mxu1 %v6177_v15 }
 0x704   :  { %v4201_v44 = vpop.eup %4200  ;;  %2707 = vmatpush1.bf16.msra.mxu0 %v6180_v9  ;;  %2748 = vmatpush1.bf16.msra.mxu1 %v6183_v28 }
 0x705   :  { %v4203_v22 = vpop.eup %4202  ;;  %v2614_v19 = vmul.f32 %v4201_v44, %v4199_v25  ;;  %2708 = vmatprep.subr.bf16.mxu0 %v6186_v11  ;;  %2749 = vmatprep.subr.bf16.mxu1 %v6189_v49  ;;  %v6211_v25 = vld [vmem:[#allocation5 + $0x88] ss:$16 sps:$4 sm:$0xff]   ;;  %v6214_v44 = vld [vmem:[#allocation5 + $0xa4] ss:$16 sps:$4 sm:$0xff]  }
 0x706   :  { %v2613_v26 = vmul.f32 %v4203_v22, %v5915_v39  ;;  %v6208_v39 = vld [vmem:[#allocation5 + $0x80] ss:$16 sps:$4 sm:$0xff]   ;;  %7258 = vst [vmem:[#allocation45_spill] sm:$0xff] %v6211_v25  ;;  %7259 = vst [vmem:[#allocation61_spill] sm:$0xff] %v6214_v44  ;;  %v6217_v22 = vld [vmem:[#allocation5 + $0xac] ss:$16 sps:$4 sm:$0xff]  }
 0x707   :  { %7257 = vst [vmem:[#allocation44_spill] sm:$0xff] %v6208_v39  ;;  %7260 = vst [vmem:[#allocation71_spill] sm:$0xff] %v6217_v22 }
 0x708   :  { %v6193_v29 = vadd.f32 %v2614_v19, %v2613_v26  ;;  %2709 = vmatpush1.bf16.msra.mxu0 %v6195_v16  ;;  %2750 = vmatpush1.bf16.msra.mxu1 %v6198_v17  ;;  %v6220_v19 = vld [vmem:[#allocation5 + $0xa0] ss:$16 sps:$4 sm:$0xff]   ;;  %v6226_v26 = vld [vmem:[#allocation5 + $0xc4] ss:$16 sps:$4 sm:$0xff]   ;;  %v6247_v17 = vld [vmem:[#allocation5 + $0xe8] ss:$16 sps:$4 sm:$0xff]  }
 0x709   :  { %2710 = vmatprep.subr.bf16.mxu0 %v6201_v48  ;;  %2751 = vmatprep.subr.bf16.mxu1 %v6204_v24  ;;  %7261 = vst [vmem:[#allocation46_spill] sm:$0xff] %v6220_v19  ;;  %7263 = vst [vmem:[#allocation48_spill] sm:$0xff] %v6226_v26  ;;  %v6232_v24 = vld [vmem:[#allocation5 + $0xc0] ss:$16 sps:$4 sm:$0xff]  }
 0x70a   :  { %4206 = vtanh.f32 %v6193_v29  ;;  %v6244_v48 = vld [vmem:[#allocation5 + $0xe0] ss:$16 sps:$4 sm:$0xff]  }
 0x70c   :  { %2711 = vmatpush1.bf16.msra.mxu0 %v6208_v39  ;;  %2752 = vmatpush1.bf16.msra.mxu1 %v6211_v25  ;;  %v6229_v25 = vld [vmem:[#allocation5 + $0xcc] ss:$16 sps:$4 sm:$0xff]  }
 0x70d   :  { %2712 = vmatprep.subr.bf16.mxu0 %v6214_v44  ;;  %2753 = vmatprep.subr.bf16.mxu1 %v6217_v22  ;;  %7264 = vst [vmem:[#allocation49_spill] sm:$0xff] %v6229_v25  ;;  %v4205_v44 = vpop.eup %4204  ;;  %v6235_v22 = vld [vmem:[#allocation5 + $0xc8] ss:$16 sps:$4 sm:$0xff]  }
 0x710   :  { %2713 = vmatpush1.bf16.msra.mxu0 %v6220_v19  ;;  %2754 = vmatpush1.bf16.msra.mxu1 %v6223_v37  ;;  %v6238_v19 = vld [vmem:[#allocation5 + $0xe4] ss:$16 sps:$4 sm:$0xff]   ;;  %v6241_v37 = vld [vmem:[#allocation5 + $0xec] ss:$16 sps:$4 sm:$0xff]  }
 0x711   :  { %2714 = vmatprep.subr.bf16.mxu0 %v6226_v26  ;;  %2755 = vmatprep.subr.bf16.mxu1 %v6229_v25 }
 0x714   :  { %v4207_v39 = vpop.eup %4206  ;;  %2715 = vmatpush1.bf16.msra.mxu0 %v6232_v24  ;;  %2756 = vmatpush1.bf16.msra.mxu1 %v6235_v22 }
 0x715   :  { %2716 = vmatprep.subr.bf16.mxu0 %v6238_v19  ;;  %2757 = vmatprep.subr.bf16.mxu1 %v6241_v37  ;;  %v2617_v26 = vmul.f32 %v4207_v39, %v4205_v44  ;;  %v7268_v39 = vld [vmem:[#allocation74_spill] sm:$0xff]  ;;  %v7269_v44 = vld [vmem:[#allocation75_spill] sm:$0xff] }
 0x717   :  { %v2618_v25 = vpack.c.bf16 %v2617_v26, %v2617_v26  ;;  %v7270_v26 = vld [vmem:[#allocation76_spill] sm:$0xff] }
 0x718   :  { %2717 = vmatpush1.bf16.msra.mxu0 %v6244_v48  ;;  %2758 = vmatpush1.bf16.msra.mxu1 %v6247_v17 }
 0x719   :  { %2812 = vmatprep.subr.bf16.mxu0 %v5938_v59  ;;  %2853 = vmatprep.subr.bf16.mxu1 %v5941_v58 }
 0x71b   :  { %2735 = vmatmul.mubr.bf16.vlgmr.msra.gmra.mrb[68].mxu0 %v2618_v25  ;;  %2776 = vmatmul.mubr.bf16.vlgmr.msra.gmra.mrb[68].mxu1 %v2618_v25 }
 0x71c   :  { %2813 = vmatpush1.bf16.msra.mxu0 %v5810_v33  ;;  %2854 = vmatpush1.bf16.msra.mxu1 %v5813_v56  ;;  %v7265_v33 = vld [vmem:[#allocation70_spill] sm:$0xff]  ;;  %v7266_v56 = vld [vmem:[#allocation72_spill] sm:$0xff] }
 0x71d   :  { %2814 = vmatprep.subr.bf16.mxu0 %v5816_v52  ;;  %2855 = vmatprep.subr.bf16.mxu1 %v5949_v14  ;;  %v7267_v52 = vld [vmem:[#allocation73_spill] sm:$0xff] }
 0x71e   :  { %2844 = vmatprep.mubr.bf16.mxu0 %v6958_v61  ;;  %2885 = vmatprep.mubr.bf16.mxu1 %v6958_v61 }
 0x720   :  { %2815 = vmatpush1.bf16.msra.mxu0 %v5954_v7  ;;  %2856 = vmatpush1.bf16.msra.mxu1 %v5957_v6 }
 0x721   :  { %2816 = vmatprep.subr.bf16.mxu0 %v5960_v45  ;;  %2857 = vmatprep.subr.bf16.mxu1 %v5963_v13 }
 0x724   :  { %2817 = vmatpush1.bf16.msra.mxu0 %v5966_v8  ;;  %2858 = vmatpush1.bf16.msra.mxu1 %v5969_v12 }
 0x725   :  { %2818 = vmatprep.subr.bf16.mxu0 %v5972_v30  ;;  %2859 = vmatprep.subr.bf16.mxu1 %v5975_v40 }
 0x728   :  { %2819 = vmatpush1.bf16.msra.mxu0 %v5978_v32  ;;  %2860 = vmatpush1.bf16.msra.mxu1 %v5981_v2 }
 0x729   :  { %2820 = vmatprep.subr.bf16.mxu0 %v5984_v1  ;;  %2861 = vmatprep.subr.bf16.mxu1 %v5987_v35 }
 0x72c   :  { %2821 = vmatpush1.bf16.msra.mxu0 %v5990_v31  ;;  %2862 = vmatpush1.bf16.msra.mxu1 %v5993_v41 }
 0x72d   :  { %2822 = vmatprep.subr.bf16.mxu0 %v5996_v63  ;;  %2863 = vmatprep.subr.bf16.mxu1 %v5999_v43 }
 0x730   :  { %2823 = vmatpush1.bf16.msra.mxu0 %v6002_v60  ;;  %2864 = vmatpush1.bf16.msra.mxu1 %v6005_v3 }
 0x731   :  { %2824 = vmatprep.subr.bf16.mxu0 %v6008_v36  ;;  %2865 = vmatprep.subr.bf16.mxu1 %v6011_v38 }
 0x734   :  { %2825 = vmatpush1.bf16.msra.mxu0 %v6014_v10  ;;  %2866 = vmatpush1.bf16.msra.mxu1 %v6017_v20 }
 0x735   :  { %2826 = vmatprep.subr.bf16.mxu0 %v6020_v21  ;;  %2867 = vmatprep.subr.bf16.mxu1 %v6023_v50 }
 0x738   :  { %2827 = vmatpush1.bf16.msra.mxu0 %v6026_v53  ;;  %2868 = vmatpush1.bf16.msra.mxu1 %v6029_v5  ;;  %v7278_v5 = vld [vmem:[#allocation21_spill] sm:$0xff]  ;;  %v7279_v53 = vld [vmem:[#allocation23_spill] sm:$0xff] }
 0x739   :  { %2924 = vmatprep.subr.bf16.mxu0 %v6032_v4  ;;  %2965 = vmatprep.subr.bf16.mxu1 %v6035_v0  ;;  %v7271_v4 = vld [vmem:[#allocation15_spill] sm:$0xff]  ;;  %v7272_v0 = vld [vmem:[#allocation16_spill] sm:$0xff] }
 0x73b   :  { %2845 = vmatmul.mubr.bf16.vlgmr.msra.gmra.mrb[72].mxu0 %v2618_v25  ;;  %2886 = vmatmul.mubr.bf16.vlgmr.msra.gmra.mrb[72].mxu1 %v2618_v25  ;;  %v7273_v25 = vld [vmem:[#allocation18_spill] sm:$0xff] }
 0x73c   :  { %2925 = vmatpush1.bf16.msra.mxu0 %v7265_v33  ;;  %2966 = vmatpush1.bf16.msra.mxu1 %v7266_v56  ;;  %v7274_v33 = vld [vmem:[#allocation17_spill] sm:$0xff]  ;;  %v7275_v56 = vld [vmem:[#allocation19_spill] sm:$0xff] }
 0x73d   :  { %2926 = vmatprep.subr.bf16.mxu0 %v7267_v52  ;;  %2967 = vmatprep.subr.bf16.mxu1 %v7268_v39  ;;  %v7276_v52 = vld [vmem:[#allocation20_spill] sm:$0xff]  ;;  %v7277_v39 = vld [vmem:[#allocation22_spill] sm:$0xff] }
 0x73e   :  { %2956 = vmatprep.mubr.bf16.mxu0 %v6958_v61  ;;  %2997 = vmatprep.mubr.bf16.mxu1 %v6958_v61 }
 0x740   :  { %2927 = vmatpush1.bf16.msra.mxu0 %v7269_v44  ;;  %2968 = vmatpush1.bf16.msra.mxu1 %v7270_v26  ;;  %v7280_v44 = vld [vmem:[#allocation24_spill] sm:$0xff]  ;;  %v7281_v26 = vld [vmem:[#allocation26_spill] sm:$0xff] }
 0x741   :  { %2928 = vmatprep.subr.bf16.mxu0 %v7271_v4  ;;  %2969 = vmatprep.subr.bf16.mxu1 %v7272_v0  ;;  %v7282_v4 = vld [vmem:[#allocation25_spill] sm:$0xff]  ;;  %v7283_v0 = vld [vmem:[#allocation27_spill] sm:$0xff] }
 0x744   :  { %2929 = vmatpush1.bf16.msra.mxu0 %v7273_v25  ;;  %2970 = vmatpush1.bf16.msra.mxu1 %v7274_v33  ;;  %v7284_v25 = vld [vmem:[#allocation28_spill] sm:$0xff]  ;;  %v7285_v33 = vld [vmem:[#allocation30_spill] sm:$0xff] }
 0x745   :  { %2930 = vmatprep.subr.bf16.mxu0 %v7275_v56  ;;  %2971 = vmatprep.subr.bf16.mxu1 %v7276_v52  ;;  %v7286_v56 = vld [vmem:[#allocation29_spill] sm:$0xff]  ;;  %v7287_v52 = vld [vmem:[#allocation31_spill] sm:$0xff] }
 0x748   :  { %2931 = vmatpush1.bf16.msra.mxu0 %v7277_v39  ;;  %2972 = vmatpush1.bf16.msra.mxu1 %v7278_v5  ;;  %v7288_v39 = vld [vmem:[#allocation32_spill] sm:$0xff]  ;;  %v7289_v5 = vld [vmem:[#allocation34_spill] sm:$0xff] }
 0x749   :  { %2932 = vmatprep.subr.bf16.mxu0 %v7279_v53  ;;  %2973 = vmatprep.subr.bf16.mxu1 %v7280_v44  ;;  %v7290_v53 = vld [vmem:[#allocation33_spill] sm:$0xff]  ;;  %v7291_v44 = vld [vmem:[#allocation35_spill] sm:$0xff] }
 0x74c   :  { %2933 = vmatpush1.bf16.msra.mxu0 %v7281_v26  ;;  %2974 = vmatpush1.bf16.msra.mxu1 %v7282_v4  ;;  %v7292_v26 = vld [vmem:[#allocation36_spill] sm:$0xff]  ;;  %v7293_v4 = vld [vmem:[#allocation38_spill] sm:$0xff] }
 0x74d   :  { %2934 = vmatprep.subr.bf16.mxu0 %v7283_v0  ;;  %2975 = vmatprep.subr.bf16.mxu1 %v7284_v25  ;;  %v7294_v0 = vld [vmem:[#allocation37_spill] sm:$0xff]  ;;  %v7295_v25 = vld [vmem:[#allocation39_spill] sm:$0xff] }
 0x750   :  { %2935 = vmatpush1.bf16.msra.mxu0 %v7285_v33  ;;  %2976 = vmatpush1.bf16.msra.mxu1 %v7286_v56  ;;  %v7296_v33 = vld [vmem:[#allocation40_spill] sm:$0xff] }
 0x751   :  { %2936 = vmatprep.subr.bf16.mxu0 %v7287_v52  ;;  %2977 = vmatprep.subr.bf16.mxu1 %v7288_v39 }
 0x754   :  { %2937 = vmatpush1.bf16.msra.mxu0 %v7289_v5  ;;  %2978 = vmatpush1.bf16.msra.mxu1 %v7290_v53 }
 0x755   :  { %2938 = vmatprep.subr.bf16.mxu0 %v7291_v44  ;;  %2979 = vmatprep.subr.bf16.mxu1 %v7292_v26 }
 0x758   :  { %2939 = vmatpush1.bf16.msra.mxu0 %v7293_v4  ;;  %2980 = vmatpush1.bf16.msra.mxu1 %v7294_v0 }
 0x759   :  { %3006 = vmatprep.subr.bf16.mxu0 %v7295_v25  ;;  %3047 = vmatprep.subr.bf16.mxu1 %v7296_v33 }
 0x7ce   :  { %v2654_v56 = vpop.f32.mrb[64].mxu0  ;;  %v2695_v52 = vpop.f32.mrb[64].mxu1 }
 0x7cf   :  { %v2656_v50 = vpop.f32.mrb[65].mxu0  ;;  %v2697_v39 = vpop.f32.mrb[65].mxu1 }
 0x7d0   :  { %v2658_v21 = vpop.f32.mrb[66].mxu0  ;;  %v2699_v5 = vpop.f32.mrb[66].mxu1 }
 0x7d1   :  { %v2659_v20 = vpop.f32.mrb[67].mxu0  ;;  %v2700_v53 = vpop.f32.mrb[67].mxu1 }
 0x7d2   :  { %v7297_v20 = vld [vmem:[#allocation14_spill] sm:$0xff] }
 0x7ee   :  { %v2736_v10 = vpop.f32.mrb[68].mxu0  ;;  %v2777_v44 = vpop.f32.mrb[68].mxu1 }
 0x7ef   :  { %v2737_v38 = vadd.f32 %v2736_v10, %v2654_v56  ;;  %v2778_v26 = vadd.f32 %v2777_v44, %v2695_v52  ;;  %v2738_v36 = vpop.f32.mrb[69].mxu0  ;;  %v2779_v4 = vpop.f32.mrb[69].mxu1  ;;  %v7298_v56 = vld [vmem:[#allocation13_spill] sm:$0xff] }
 0x7f0   :  { %v2739_v3 = vadd.f32 %v2738_v36, %v2656_v50  ;;  %v2780_v0 = vadd.f32 %v2779_v4, %v2697_v39  ;;  %v2740_v60 = vpop.f32.mrb[70].mxu0  ;;  %v2781_v25 = vpop.f32.mrb[70].mxu1  ;;  %v7300_v39 = vld [vmem:[#allocation103_spill] sm:$0xff] }
 0x7f1   :  { %v2784_v33 = vadd.f32 %v2737_v38, %v5314_v55  ;;  %v2741_v43 = vpop.f32.mrb[71].mxu0  ;;  %v2782_v63 = vpop.f32.mrb[71].mxu1  ;;  %v2786_v52 = vadd.f32 %v2778_v26, %v7298_v56  ;;  %v7301_v25 = vld [vmem:[#allocation96_spill] sm:$0xff] }
 0x7f2   :  { %v2785_v41 = vadd.f32 %v2739_v3, %v5317_v62  ;;  %v2787_v53 = vadd.f32 %v2780_v0, %v7297_v20 }
 0x7f3   :  { %v3792_v21 = vmul.f32 -1.442695, %v2784_v33  ;;  %v7299_v33 = vld [vmem:[#allocation95_spill] sm:$0xff] }
 0x7f4   :  { %v3793_v5 = vmul.f32 -1.442695, %v2785_v41  ;;  %v3794_v10 = vmul.f32 -1.442695, %v2787_v53  ;;  %v383_v0 = vadd.f32 %v7300_v39, %v7299_v33 }
 0x7f5   :  { %4208 = vpow2.f32 %v3792_v21  ;;  %v7302_v21 = vld [vmem:[#allocation104_spill] sm:$0xff] }
 0x7f6   :  { %4210 = vpow2.f32 %v3793_v5  ;;  %v385_v26 = vadd.f32 %v7302_v21, %v7301_v25 }
 0x7f7   :  { %4212 = vpow2.f32 %v3794_v10 }
 0x7f8   :  { %4214 = vtanh.f32 %v2786_v52  ;;  %v7303_v52 = vld [vmem:[#allocation97_spill] sm:$0xff] }
 0x7ff   :  { %v4209_v44 = vpop.eup %4208 }
 0x800   :  { %v4211_v36 = vpop.eup %4210  ;;  %v2791_v50 = vadd.f32 1.0, %v4209_v44  ;;  %v384_v44 = vadd.f32 %v5197_v51, %v7303_v52 }
 0x801   :  { %v2797_v60 = vadd.f32 1.0, %v4211_v36  ;;  %v4213_v63 = vpop.eup %4212  ;;  %v7304_v36 = vld [vmem:[#allocation98_spill] sm:$0xff] }
 0x802   :  { %4216 = vrcp.f32 %v2791_v50  ;;  %v4215_v43 = vpop.eup %4214  ;;  %v2804_v4 = vadd.f32 1.0, %v4213_v63  ;;  %v386_v50 = vadd.f32 %v5206_v42, %v7304_v36 }
 0x803   :  { %4218 = vrcp.f32 %v2797_v60 }
 0x804   :  { %4220 = vrcp.f32 %v2804_v4 }
 0x80c   :  { %v4217_v3 = vpop.eup %4216 }
 0x80d   :  { %v4219_v38 = vpop.eup %4218  ;;  %v2808_v41 = vmul.f32 %v4217_v3, %v4215_v43 }
 0x80e   :  { %v2807_v5 = vmul.f32 %v4219_v38, %v6151_v47  ;;  %v2846_v53 = vpop.f32.mrb[72].mxu0  ;;  %v2887_v10 = vpop.f32.mrb[72].mxu1 }
 0x80f   :  { %v2894_v60 = vadd.f32 %v2846_v53, %v383_v0  ;;  %v2896_v56 = vadd.f32 %v2887_v10, %v385_v26  ;;  %v2848_v43 = vpop.f32.mrb[73].mxu0  ;;  %v2889_v63 = vpop.f32.mrb[73].mxu1 }
 0x810   :  { %v6333_v3 = vadd.f32 %v2808_v41, %v2807_v5  ;;  %v2895_v33 = vadd.f32 %v2848_v43, %v384_v44  ;;  %v2897_v39 = vadd.f32 %v2889_v63, %v386_v50  ;;  %v2850_v20 = vpop.f32.mrb[74].mxu0  ;;  %v2891_v25 = vpop.f32.mrb[74].mxu1  ;;  %v7305_v43 = vld [vmem:[#allocation42_spill] sm:$0xff]  ;;  %v7306_v63 = vld [vmem:[#allocation41_spill] sm:$0xff] }
 0x811   :  { %v3795_v47 = vmul.f32 -1.442695, %v2894_v60  ;;  %v2851_v38 = vpop.f32.mrb[75].mxu0  ;;  %v2892_v21 = vpop.f32.mrb[75].mxu1  ;;  %v7308_v25 = vld [vmem:[#allocation44_spill] sm:$0xff] }
 0x812   :  { %v3796_v62 = vmul.f32 -1.442695, %v2895_v33  ;;  %4222 = vtanh.f32 %v6333_v3  ;;  %v3797_v52 = vmul.f32 -1.442695, %v2897_v39  ;;  %v4221_v0 = vpop.eup %4220  ;;  %v7307_v33 = vld [vmem:[#allocation43_spill] sm:$0xff]  ;;  %v7310_v38 = vld [vmem:[#allocation61_spill] sm:$0xff] }
 0x813   :  { %4224 = vpow2.f32 %v3795_v47  ;;  %v7309_v47 = vld [vmem:[#allocation45_spill] sm:$0xff] }
 0x814   :  { %4226 = vpow2.f32 %v3796_v62 }
 0x815   :  { %4228 = vpow2.f32 %v3797_v52  ;;  %v7312_v52 = vld [vmem:[#allocation46_spill] sm:$0xff] }
 0x816   :  { %4230 = vtanh.f32 %v2896_v56 }
 0x81c   :  { %v4223_v26 = vpop.eup %4222 }
 0x81d   :  { %v4225_v53 = vpop.eup %4224  ;;  %v2811_v10 = vmul.f32 %v4223_v26, %v4221_v0  ;;  %v7313_v0 = vld [vmem:[#allocation47_spill] sm:$0xff]  ;;  %v7314_v26 = vld [vmem:[#allocation48_spill] sm:$0xff] }
 0x81e   :  { %v4227_v41 = vpop.eup %4226  ;;  %v2901_v5 = vadd.f32 1.0, %v4225_v53  ;;  %v7315_v53 = vld [vmem:[#allocation49_spill] sm:$0xff] }
 0x81f   :  { %v2907_v20 = vadd.f32 1.0, %v4227_v41  ;;  %v2923_v44 = vpack.c.bf16 %v2811_v10, %v2811_v10  ;;  %v4229_v62 = vpop.eup %4228 }
 0x820   :  { %4232 = vrcp.f32 %v2901_v5  ;;  %v4231_v56 = vpop.eup %4230  ;;  %v2914_v36 = vadd.f32 1.0, %v4229_v62  ;;  %v4483_v62 = vld [vmem:[#allocation2 + $0x8] ss:$16 sps:$4 sm:$0xff]  }
 0x821   :  { %4234 = vrcp.f32 %v2907_v20  ;;  %2957 = vmatmul.mubr.bf16.vlgmr.msra.gmra.mrb[76].mxu0 %v2923_v44  ;;  %2998 = vmatmul.mubr.bf16.vlgmr.msra.gmra.mrb[76].mxu1 %v2923_v44  ;;  %v4482_v44 = vld [vmem:[#allocation2] ss:$16 sps:$4 sm:$0xff]  }
 0x822   :  { %3007 = vmatpush1.bf16.msra.mxu0 %v6154_v18  ;;  %3048 = vmatpush1.bf16.msra.mxu1 %v6157_v34  ;;  %4236 = vrcp.f32 %v2914_v36  ;;  %v7335_v36 = vld [vmem:[#allocation75_spill] sm:$0xff] }
 0x823   :  { %3008 = vmatprep.subr.bf16.mxu0 %v6160_v46  ;;  %3049 = vmatprep.subr.bf16.mxu1 %v6163_v27 }
 0x824   :  { %3038 = vmatprep.mubr.bf16.mxu0 %v6958_v61  ;;  %3079 = vmatprep.mubr.bf16.mxu1 %v6958_v61 }
 0x826   :  { %3009 = vmatpush1.bf16.msra.mxu0 %v6168_v54  ;;  %3050 = vmatpush1.bf16.msra.mxu1 %v6171_v57 }
 0x827   :  { %3010 = vmatprep.subr.bf16.mxu0 %v6174_v23  ;;  %3051 = vmatprep.subr.bf16.mxu1 %v6177_v15 }
 0x82a   :  { %v4233_v4 = vpop.eup %4232  ;;  %3011 = vmatpush1.bf16.msra.mxu0 %v6180_v9  ;;  %3052 = vmatpush1.bf16.msra.mxu1 %v6183_v28 }
 0x82b   :  { %v4235_v39 = vpop.eup %4234  ;;  %v2918_v21 = vmul.f32 %v4233_v4, %v4231_v56  ;;  %3012 = vmatprep.subr.bf16.mxu0 %v6186_v11  ;;  %3053 = vmatprep.subr.bf16.mxu1 %v6189_v49  ;;  %v4484_v56 = vld [vmem:[#allocation2 + $0x24] ss:$16 sps:$4 sm:$0xff]  }
 0x82c   :  { %v2917_v50 = vmul.f32 %v4235_v39, %v6193_v29  ;;  %v7311_v29 = vld [vmem:[#allocation71_spill] sm:$0xff]  ;;  %v4237_v10 = vpop.eup %4236  ;;  %v7332_v4 = vld [vmem:[#allocation72_spill] sm:$0xff]  ;;  %v7333_v39 = vld [vmem:[#allocation73_spill] sm:$0xff] }
 0x82e   :  { %v6351_v60 = vadd.f32 %v2918_v21, %v2917_v50  ;;  %3013 = vmatpush1.bf16.msra.mxu0 %v6195_v16  ;;  %3054 = vmatpush1.bf16.msra.mxu1 %v7305_v43  ;;  %v7334_v21 = vld [vmem:[#allocation74_spill] sm:$0xff]  ;;  %v7336_v50 = vld [vmem:[#allocation76_spill] sm:$0xff] }
 0x82f   :  { %3014 = vmatprep.subr.bf16.mxu0 %v7306_v63  ;;  %3055 = vmatprep.subr.bf16.mxu1 %v7307_v33 }
 0x830   :  { %4238 = vtanh.f32 %v6351_v60 }
 0x832   :  { %3015 = vmatpush1.bf16.msra.mxu0 %v7308_v25  ;;  %3056 = vmatpush1.bf16.msra.mxu1 %v7309_v47 }
 0x833   :  { %3016 = vmatprep.subr.bf16.mxu0 %v7310_v38  ;;  %3057 = vmatprep.subr.bf16.mxu1 %v7311_v29 }
 0x836   :  { %3017 = vmatpush1.bf16.msra.mxu0 %v7312_v52  ;;  %3058 = vmatpush1.bf16.msra.mxu1 %v7313_v0 }
 0x837   :  { %3018 = vmatprep.subr.bf16.mxu0 %v7314_v26  ;;  %3059 = vmatprep.subr.bf16.mxu1 %v7315_v53 }
 0x83a   :  { %v4239_v41 = vpop.eup %4238  ;;  %3019 = vmatpush1.bf16.msra.mxu0 %v6232_v24  ;;  %3060 = vmatpush1.bf16.msra.mxu1 %v6235_v22 }
 0x83b   :  { %3020 = vmatprep.subr.bf16.mxu0 %v6238_v19  ;;  %3061 = vmatprep.subr.bf16.mxu1 %v6241_v37  ;;  %v2921_v5 = vmul.f32 %v4239_v41, %v4237_v10  ;;  %v7337_v10 = vld [vmem:[#allocation15_spill] sm:$0xff]  ;;  %v7338_v41 = vld [vmem:[#allocation16_spill] sm:$0xff] }
 0x83d   :  { %v2922_v20 = vpack.c.bf16 %v2921_v5, %v2921_v5  ;;  %v7339_v5 = vld [vmem:[#allocation18_spill] sm:$0xff] }
 0x83e   :  { %3021 = vmatpush1.bf16.msra.mxu0 %v6244_v48  ;;  %3062 = vmatpush1.bf16.msra.mxu1 %v6247_v17 }
 0x83f   :  { %3116 = vmatprep.subr.bf16.mxu0 %v5938_v59  ;;  %3157 = vmatprep.subr.bf16.mxu1 %v5941_v58  ;;  %v7316_v59 = vld [vmem:[#allocation77_spill] sm:$0xff]  ;;  %v7317_v58 = vld [vmem:[#allocation78_spill] sm:$0xff] }
 0x841   :  { %3039 = vmatmul.mubr.bf16.vlgmr.msra.gmra.mrb[80].mxu0 %v2922_v20  ;;  %3080 = vmatmul.mubr.bf16.vlgmr.msra.gmra.mrb[80].mxu1 %v2922_v20 }
 0x842   :  { %3117 = vmatpush1.bf16.msra.mxu0 %v4482_v44  ;;  %3158 = vmatpush1.bf16.msra.mxu1 %v4483_v62  ;;  %v7341_v44 = vld [vmem:[#allocation19_spill] sm:$0xff]  ;;  %v7342_v62 = vld [vmem:[#allocation20_spill] sm:$0xff] }
 0x843   :  { %3118 = vmatprep.subr.bf16.mxu0 %v4484_v56  ;;  %3159 = vmatprep.subr.bf16.mxu1 %v5949_v14  ;;  %v7318_v14 = vld [vmem:[#allocation79_spill] sm:$0xff]  ;;  %v7343_v56 = vld [vmem:[#allocation22_spill] sm:$0xff] }
 0x844   :  { %3148 = vmatprep.mubr.bf16.mxu0 %v6958_v61  ;;  %3189 = vmatprep.mubr.bf16.mxu1 %v6958_v61 }
 0x846   :  { %3119 = vmatpush1.bf16.msra.mxu0 %v5954_v7  ;;  %3160 = vmatpush1.bf16.msra.mxu1 %v5957_v6  ;;  %v7319_v7 = vld [vmem:[#allocation80_spill] sm:$0xff]  ;;  %v7320_v6 = vld [vmem:[#allocation81_spill] sm:$0xff] }
 0x847   :  { %3120 = vmatprep.subr.bf16.mxu0 %v5960_v45  ;;  %3161 = vmatprep.subr.bf16.mxu1 %v5963_v13  ;;  %v7321_v45 = vld [vmem:[#allocation82_spill] sm:$0xff]  ;;  %v7322_v13 = vld [vmem:[#allocation83_spill] sm:$0xff] }
 0x84a   :  { %3121 = vmatpush1.bf16.msra.mxu0 %v5966_v8  ;;  %3162 = vmatpush1.bf16.msra.mxu1 %v5969_v12  ;;  %v7323_v8 = vld [vmem:[#allocation84_spill] sm:$0xff]  ;;  %v7324_v12 = vld [vmem:[#allocation85_spill] sm:$0xff] }
 0x84b   :  { %3122 = vmatprep.subr.bf16.mxu0 %v5972_v30  ;;  %3163 = vmatprep.subr.bf16.mxu1 %v5975_v40  ;;  %v7325_v30 = vld [vmem:[#allocation86_spill] sm:$0xff]  ;;  %v7326_v40 = vld [vmem:[#allocation65_spill] sm:$0xff] }
 0x84e   :  { %3123 = vmatpush1.bf16.msra.mxu0 %v5978_v32  ;;  %3164 = vmatpush1.bf16.msra.mxu1 %v5981_v2  ;;  %v7327_v32 = vld [vmem:[#allocation66_spill] sm:$0xff]  ;;  %v7328_v2 = vld [vmem:[#allocation67_spill] sm:$0xff] }
 0x84f   :  { %3124 = vmatprep.subr.bf16.mxu0 %v5984_v1  ;;  %3165 = vmatprep.subr.bf16.mxu1 %v5987_v35  ;;  %v7329_v1 = vld [vmem:[#allocation68_spill] sm:$0xff]  ;;  %v7330_v35 = vld [vmem:[#allocation69_spill] sm:$0xff] }
 0x852   :  { %3125 = vmatpush1.bf16.msra.mxu0 %v5990_v31  ;;  %3166 = vmatpush1.bf16.msra.mxu1 %v7316_v59  ;;  %v7331_v31 = vld [vmem:[#allocation70_spill] sm:$0xff]  ;;  %v7344_v59 = vld [vmem:[#allocation21_spill] sm:$0xff] }
 0x853   :  { %3126 = vmatprep.subr.bf16.mxu0 %v7317_v58  ;;  %3167 = vmatprep.subr.bf16.mxu1 %v7318_v14  ;;  %v7345_v58 = vld [vmem:[#allocation23_spill] sm:$0xff]  ;;  %v7346_v14 = vld [vmem:[#allocation24_spill] sm:$0xff] }
 0x856   :  { %3127 = vmatpush1.bf16.msra.mxu0 %v7319_v7  ;;  %3168 = vmatpush1.bf16.msra.mxu1 %v7320_v6  ;;  %v7347_v7 = vld [vmem:[#allocation26_spill] sm:$0xff]  ;;  %v7348_v6 = vld [vmem:[#allocation25_spill] sm:$0xff] }
 0x857   :  { %3128 = vmatprep.subr.bf16.mxu0 %v7321_v45  ;;  %3169 = vmatprep.subr.bf16.mxu1 %v7322_v13  ;;  %v7349_v45 = vld [vmem:[#allocation27_spill] sm:$0xff]  ;;  %v7350_v13 = vld [vmem:[#allocation28_spill] sm:$0xff] }
 0x85a   :  { %3129 = vmatpush1.bf16.msra.mxu0 %v7323_v8  ;;  %3170 = vmatpush1.bf16.msra.mxu1 %v7324_v12  ;;  %v7351_v8 = vld [vmem:[#allocation30_spill] sm:$0xff]  ;;  %v7352_v12 = vld [vmem:[#allocation29_spill] sm:$0xff] }
 0x85b   :  { %3130 = vmatprep.subr.bf16.mxu0 %v7325_v30  ;;  %3171 = vmatprep.subr.bf16.mxu1 %v7326_v40  ;;  %v7353_v30 = vld [vmem:[#allocation31_spill] sm:$0xff]  ;;  %v7354_v40 = vld [vmem:[#allocation32_spill] sm:$0xff] }
 0x85e   :  { %3131 = vmatpush1.bf16.msra.mxu0 %v7327_v32  ;;  %3172 = vmatpush1.bf16.msra.mxu1 %v7328_v2  ;;  %v7355_v32 = vld [vmem:[#allocation34_spill] sm:$0xff]  ;;  %v7356_v2 = vld [vmem:[#allocation33_spill] sm:$0xff] }
 0x85f   :  { %3228 = vmatprep.subr.bf16.mxu0 %v7329_v1  ;;  %3269 = vmatprep.subr.bf16.mxu1 %v7330_v35  ;;  %v7357_v1 = vld [vmem:[#allocation35_spill] sm:$0xff]  ;;  %v7358_v35 = vld [vmem:[#allocation36_spill] sm:$0xff] }
 0x861   :  { %3149 = vmatmul.mubr.bf16.vlgmr.msra.gmra.mrb[84].mxu0 %v2922_v20  ;;  %3190 = vmatmul.mubr.bf16.vlgmr.msra.gmra.mrb[84].mxu1 %v2922_v20  ;;  %v7340_v20 = vld [vmem:[#allocation17_spill] sm:$0xff] }
 0x862   :  { %3229 = vmatpush1.bf16.msra.mxu0 %v7331_v31  ;;  %3270 = vmatpush1.bf16.msra.mxu1 %v7332_v4  ;;  %v7359_v31 = vld [vmem:[#allocation38_spill] sm:$0xff]  ;;  %v7360_v4 = vld [vmem:[#allocation37_spill] sm:$0xff] }
 0x863   :  { %3230 = vmatprep.subr.bf16.mxu0 %v7333_v39  ;;  %3271 = vmatprep.subr.bf16.mxu1 %v7334_v21  ;;  %v7361_v39 = vld [vmem:[#allocation39_spill] sm:$0xff]  ;;  %v7362_v21 = vld [vmem:[#allocation40_spill] sm:$0xff] }
 0x864   :  { %3260 = vmatprep.mubr.bf16.mxu0 %v6958_v61  ;;  %3301 = vmatprep.mubr.bf16.mxu1 %v6958_v61 }
 0x866   :  { %3231 = vmatpush1.bf16.msra.mxu0 %v7335_v36  ;;  %3272 = vmatpush1.bf16.msra.mxu1 %v7336_v50 }
 0x867   :  { %3232 = vmatprep.subr.bf16.mxu0 %v7337_v10  ;;  %3273 = vmatprep.subr.bf16.mxu1 %v7338_v41 }
 0x86a   :  { %3233 = vmatpush1.bf16.msra.mxu0 %v7339_v5  ;;  %3274 = vmatpush1.bf16.msra.mxu1 %v7340_v20 }
 0x86b   :  { %3234 = vmatprep.subr.bf16.mxu0 %v7341_v44  ;;  %3275 = vmatprep.subr.bf16.mxu1 %v7342_v62 }
 0x86e   :  { %3235 = vmatpush1.bf16.msra.mxu0 %v7343_v56  ;;  %3276 = vmatpush1.bf16.msra.mxu1 %v7344_v59 }
 0x86f   :  { %3236 = vmatprep.subr.bf16.mxu0 %v7345_v58  ;;  %3277 = vmatprep.subr.bf16.mxu1 %v7346_v14 }
 0x872   :  { %3237 = vmatpush1.bf16.msra.mxu0 %v7347_v7  ;;  %3278 = vmatpush1.bf16.msra.mxu1 %v7348_v6 }
 0x873   :  { %3238 = vmatprep.subr.bf16.mxu0 %v7349_v45  ;;  %3279 = vmatprep.subr.bf16.mxu1 %v7350_v13 }
 0x876   :  { %3239 = vmatpush1.bf16.msra.mxu0 %v7351_v8  ;;  %3280 = vmatpush1.bf16.msra.mxu1 %v7352_v12 }
 0x877   :  { %3240 = vmatprep.subr.bf16.mxu0 %v7353_v30  ;;  %3281 = vmatprep.subr.bf16.mxu1 %v7354_v40 }
 0x87a   :  { %3241 = vmatpush1.bf16.msra.mxu0 %v7355_v32  ;;  %3282 = vmatpush1.bf16.msra.mxu1 %v7356_v2  ;;  %v7363_v2 = vld [vmem:[#allocation12_spill] sm:$0xff] }
 0x87b   :  { %3242 = vmatprep.subr.bf16.mxu0 %v7357_v1  ;;  %3283 = vmatprep.subr.bf16.mxu1 %v7358_v35 }
 0x87e   :  { %3243 = vmatpush1.bf16.msra.mxu0 %v7359_v31  ;;  %3284 = vmatpush1.bf16.msra.mxu1 %v7360_v4  ;;  %v7364_v4 = vld [vmem:[#allocation14_spill] sm:$0xff] }
 0x87f   :  { %3310 = vmatprep.subr.bf16.mxu0 %v7361_v39  ;;  %3351 = vmatprep.subr.bf16.mxu1 %v7362_v21 }
 0x8f4   :  { %v2958_v36 = vpop.f32.mrb[76].mxu0  ;;  %v2999_v50 = vpop.f32.mrb[76].mxu1 }
 0x8f5   :  { %v2960_v10 = vpop.f32.mrb[77].mxu0  ;;  %v3001_v41 = vpop.f32.mrb[77].mxu1 }
 0x8f6   :  { %v2962_v5 = vpop.f32.mrb[78].mxu0  ;;  %v3003_v20 = vpop.f32.mrb[78].mxu1 }
 0x8f7   :  { %v2963_v44 = vpop.f32.mrb[79].mxu0  ;;  %v3004_v62 = vpop.f32.mrb[79].mxu1 }
 0x914   :  { %v3040_v56 = vpop.f32.mrb[80].mxu0  ;;  %v3081_v59 = vpop.f32.mrb[80].mxu1 }
 0x915   :  { %v3041_v58 = vadd.f32 %v3040_v56, %v2958_v36  ;;  %v3082_v14 = vadd.f32 %v3081_v59, %v2999_v50  ;;  %v3042_v7 = vpop.f32.mrb[81].mxu0  ;;  %v3083_v6 = vpop.f32.mrb[81].mxu1  ;;  %v7365_v36 = vld [vmem:[#allocation13_spill] sm:$0xff] }
 0x916   :  { %v3043_v45 = vadd.f32 %v3042_v7, %v2960_v10  ;;  %v3084_v13 = vadd.f32 %v3083_v6, %v3001_v41  ;;  %v3044_v8 = vpop.f32.mrb[82].mxu0  ;;  %v3085_v12 = vpop.f32.mrb[82].mxu1  ;;  %v7366_v6 = vld [vmem:[#allocation99_spill] sm:$0xff] }
 0x917   :  { %v3088_v30 = vadd.f32 %v3041_v58, %v5314_v55  ;;  %v3045_v40 = vpop.f32.mrb[83].mxu0  ;;  %v3086_v32 = vpop.f32.mrb[83].mxu1  ;;  %v3090_v50 = vadd.f32 %v3082_v14, %v7365_v36  ;;  %v7368_v8 = vld [vmem:[#allocation100_spill] sm:$0xff] }
 0x918   :  { %v3089_v1 = vadd.f32 %v3043_v45, %v7363_v2  ;;  %v3091_v39 = vadd.f32 %v3084_v13, %v7364_v4  ;;  %v7367_v45 = vld [vmem:[#allocation103_spill] sm:$0xff]  ;;  %v7369_v12 = vld [vmem:[#allocation104_spill] sm:$0xff] }
 0x919   :  { %v3798_v35 = vmul.f32 -1.442695, %v3088_v30  ;;  %v387_v13 = vadd.f32 %v7367_v45, %v7366_v6  ;;  %v389_v14 = vadd.f32 %v7369_v12, %v7368_v8 }
 0x91a   :  { %v3799_v31 = vmul.f32 -1.442695, %v3089_v1  ;;  %v3800_v21 = vmul.f32 -1.442695, %v3091_v39  ;;  %v7370_v1 = vld [vmem:[#allocation101_spill] sm:$0xff] }
 0x91b   :  { %4240 = vpow2.f32 %v3798_v35  ;;  %v388_v35 = vadd.f32 %v5197_v51, %v7370_v1 }
 0x91c   :  { %4242 = vpow2.f32 %v3799_v31  ;;  %v7371_v31 = vld [vmem:[#allocation102_spill] sm:$0xff] }
 0x91d   :  { %4244 = vpow2.f32 %v3800_v21  ;;  %v390_v39 = vadd.f32 %v5206_v42, %v7371_v31 }
 0x91e   :  { %4246 = vtanh.f32 %v3090_v50 }
 0x925   :  { %v4241_v5 = vpop.eup %4240 }
 0x926   :  { %v4243_v10 = vpop.eup %4242  ;;  %v3095_v41 = vadd.f32 1.0, %v4241_v5 }
 0x927   :  { %v3101_v20 = vadd.f32 1.0, %v4243_v10  ;;  %v4245_v44 = vpop.eup %4244 }
 0x928   :  { %4248 = vrcp.f32 %v3095_v41  ;;  %v4247_v62 = vpop.eup %4246  ;;  %v3108_v7 = vadd.f32 1.0, %v4245_v44 }
 0x929   :  { %4250 = vrcp.f32 %v3101_v20 }
 0x92a   :  { %4252 = vrcp.f32 %v3108_v7 }
 0x932   :  { %v4249_v56 = vpop.eup %4248 }
 0x933   :  { %v4251_v59 = vpop.eup %4250  ;;  %v3112_v58 = vmul.f32 %v4249_v56, %v4247_v62 }
 0x934   :  { %v3111_v30 = vmul.f32 %v4251_v59, %v6333_v3  ;;  %v3150_v40 = vpop.f32.mrb[84].mxu0  ;;  %v3191_v32 = vpop.f32.mrb[84].mxu1 }
 0x935   :  { %v3198_v21 = vadd.f32 %v3150_v40, %v387_v13  ;;  %v3200_v50 = vadd.f32 %v3191_v32, %v389_v14  ;;  %v3152_v5 = vpop.f32.mrb[85].mxu0  ;;  %v3193_v10 = vpop.f32.mrb[85].mxu1 }
 0x936   :  { %v6452_v41 = vadd.f32 %v3112_v58, %v3111_v30  ;;  %v3199_v20 = vadd.f32 %v3152_v5, %v388_v35  ;;  %v3201_v44 = vadd.f32 %v3193_v10, %v390_v39  ;;  %v3154_v62 = vpop.f32.mrb[86].mxu0  ;;  %v3195_v56 = vpop.f32.mrb[86].mxu1 }
 0x937   :  { %v3801_v3 = vmul.f32 -1.442695, %v3198_v21  ;;  %v3155_v59 = vpop.f32.mrb[87].mxu0  ;;  %v3196_v6 = vpop.f32.mrb[87].mxu1 }
 0x938   :  { %v3802_v45 = vmul.f32 -1.442695, %v3199_v20  ;;  %4254 = vtanh.f32 %v6452_v41  ;;  %v3803_v51 = vmul.f32 -1.442695, %v3201_v44  ;;  %v4253_v42 = vpop.eup %4252 }
 0x939   :  { %4256 = vpow2.f32 %v3801_v3 }
 0x93a   :  { %4258 = vpow2.f32 %v3802_v45 }
 0x93b   :  { %4260 = vpow2.f32 %v3803_v51 }
 0x93c   :  { %4262 = vtanh.f32 %v3200_v50 }
 0x942   :  { %v4255_v13 = vpop.eup %4254 }
 0x943   :  { %v4257_v8 = vpop.eup %4256  ;;  %v3115_v12 = vmul.f32 %v4255_v13, %v4253_v42 }
 0x944   :  { %v4259_v58 = vpop.eup %4258  ;;  %v3205_v14 = vadd.f32 1.0, %v4257_v8 }
 0x945   :  { %v3211_v30 = vadd.f32 1.0, %v4259_v58  ;;  %v3227_v40 = vpack.c.bf16 %v3115_v12, %v3115_v12  ;;  %v4261_v7 = vpop.eup %4260 }
 0x946   :  { %4264 = vrcp.f32 %v3205_v14 }
 0x947   :  { %4266 = vrcp.f32 %v3211_v30  ;;  %3261 = vmatmul.mubr.bf16.vlgmr.msra.gmra.mrb[88].mxu0 %v3227_v40  ;;  %3302 = vmatmul.mubr.bf16.vlgmr.msra.gmra.mrb[88].mxu1 %v3227_v40 }
 0x948   :  { %3311 = vmatpush1.bf16.msra.mxu0 %v6154_v18  ;;  %3352 = vmatpush1.bf16.msra.mxu1 %v6157_v34  ;;  %v4263_v18 = vpop.eup %4262 }
 0x949   :  { %3312 = vmatprep.subr.bf16.mxu0 %v6160_v46  ;;  %3353 = vmatprep.subr.bf16.mxu1 %v6163_v27  ;;  %v3218_v27 = vadd.f32 1.0, %v4261_v7 }
 0x94a   :  { %3342 = vmatprep.mubr.bf16.mxu0 %v6958_v61  ;;  %3383 = vmatprep.mubr.bf16.mxu1 %v6958_v61 }
 0x94b   :  { %4268 = vrcp.f32 %v3218_v27 }
 0x94c   :  { %3313 = vmatpush1.bf16.msra.mxu0 %v6168_v54  ;;  %3354 = vmatpush1.bf16.msra.mxu1 %v6171_v57 }
 0x94d   :  { %3314 = vmatprep.subr.bf16.mxu0 %v6174_v23  ;;  %3355 = vmatprep.subr.bf16.mxu1 %v6177_v15 }
 0x950   :  { %v4265_v32 = vpop.eup %4264  ;;  %3315 = vmatpush1.bf16.msra.mxu0 %v6180_v9  ;;  %3356 = vmatpush1.bf16.msra.mxu1 %v6183_v28  ;;  %v4022_v28 = vld [vmem:[%s6571_s7] sm:$0xff]  }
 0x951   :  { %v4267_v34 = vpop.eup %4266  ;;  %v3222_v46 = vmul.f32 %v4265_v32, %v4263_v18  ;;  %3316 = vmatprep.subr.bf16.mxu0 %v6186_v11  ;;  %3357 = vmatprep.subr.bf16.mxu1 %v6189_v49  ;;  %v4586_v11 = vmov 0.0   ;;  %v4023_v49 = vld [vmem:[%s6571_s7 + $0x8] sm:$0xff]   ;;  %v4030_v18 = vld [vmem:[%s6575_s11] sm:$0xff]  }
 0x952   :  { %v3221_v61 = vmul.f32 %v4267_v34, %v6351_v60  ;;  %v4031_v32 = vld [vmem:[%s6575_s11 + $0x8] sm:$0xff]  }
 0x953   :  { %v7372_v34 = vld [vmem:[#allocation56_spill] sm:$0xff] }
 0x954   :  { %v3223_v54 = vadd.f32 %v3222_v46, %v3221_v61  ;;  %3317 = vmatpush1.bf16.msra.mxu0 %v6195_v16  ;;  %3358 = vmatpush1.bf16.msra.mxu1 %v7305_v43  ;;  %v4024_v16 = vld [vmem:[%s6571_s7 + $0x10] sm:$0xff]   ;;  %vm3535_vm1 = vcmp.lt.s32.totalorder %v7372_v34, 2 }
 0x955   :  { %3318 = vmatprep.subr.bf16.mxu0 %v7306_v63  ;;  %3359 = vmatprep.subr.bf16.mxu1 %v7307_v33  ;;  %v4269_v57 = vpop.eup %4268 }
 0x956   :  { %4270 = vtanh.f32 %v3223_v54  ;;  %v3816_v54 = vsel %vm3535_vm1, 1.0, %v4586_v11 }
 0x958   :  { %3319 = vmatpush1.bf16.msra.mxu0 %v7308_v25  ;;  %3360 = vmatpush1.bf16.msra.mxu1 %v7309_v47 }
 0x959   :  { %3320 = vmatprep.subr.bf16.mxu0 %v7310_v38  ;;  %3361 = vmatprep.subr.bf16.mxu1 %v7311_v29 }
 0x95c   :  { %3321 = vmatpush1.bf16.msra.mxu0 %v7312_v52  ;;  %3362 = vmatpush1.bf16.msra.mxu1 %v7313_v0 }
 0x95d   :  { %3322 = vmatprep.subr.bf16.mxu0 %v7314_v26  ;;  %3363 = vmatprep.subr.bf16.mxu1 %v7315_v53 }
 0x960   :  { %v4271_v23 = vpop.eup %4270  ;;  %3323 = vmatpush1.bf16.msra.mxu0 %v6232_v24  ;;  %3364 = vmatpush1.bf16.msra.mxu1 %v6235_v22  ;;  %v4027_v24 = vld [vmem:[%s6571_s7 + $0x28] sm:$0xff]   ;;  %v4028_v22 = vld [vmem:[%s6571_s7 + $0x30] sm:$0xff]  }
 0x961   :  { %3324 = vmatprep.subr.bf16.mxu0 %v6238_v19  ;;  %3365 = vmatprep.subr.bf16.mxu1 %v6241_v37  ;;  %v3225_v15 = vmul.f32 %v4271_v23, %v4269_v57  ;;  %v4029_v19 = vld [vmem:[%s6571_s7 + $0x38] sm:$0xff]  }
 0x963   :  { %v3226_v9 = vpack.c.bf16 %v3225_v15, %v3225_v15 }
 0x964   :  { %3325 = vmatpush1.bf16.msra.mxu0 %v6244_v48  ;;  %3366 = vmatpush1.bf16.msra.mxu1 %v6247_v17  ;;  %v4025_v17 = vld [vmem:[%s6571_s7 + $0x18] sm:$0xff]   ;;  %v4026_v48 = vld [vmem:[%s6571_s7 + $0x20] sm:$0xff]  }
 0x965   :  { %3835 = vmatprep.subr.bf16.mxu0 %v4586_v11  ;;  %3855 = vmatprep.subr.bf16.mxu1 %v4586_v11 }
 0x967   :  { %3343 = vmatmul.mubr.bf16.vlgmr.msra.gmra.mrb[92].mxu0 %v3226_v9  ;;  %3384 = vmatmul.mubr.bf16.vlgmr.msra.gmra.mrb[92].mxu1 %v3226_v9 }
 0x968   :  { %3836 = vmatpush3.bf16.msra.mxu0 %v4022_v28  ;;  %3851 = vmatprep.mubr.msk.bf16.mxu0 %vm4587_vm0, %v4586_v11 }
 0x969   :  { %3837 = vmatprep.subr.bf16.mxu0 %v4586_v11  ;;  %3859 = vmatprep.mubr.msk.bf16.mxu1 %vm4587_vm0, %v4586_v11 }
 0x96a   :  { %3856 = vmatpush3.bf16.msra.mxu1 %v4030_v18 }
 0x96b   :  { %3857 = vmatprep.subr.bf16.mxu1 %v4586_v11 }
 0x96c   :  { %3838 = vmatpush3.bf16.msra.mxu0 %v4023_v49 }
 0x96d   :  { %3839 = vmatprep.subr.bf16.mxu0 %v4586_v11 }
 0x96e   :  { %3858 = vmatpush3.bf16.msra.mxu1 %v4031_v32 }
 0x970   :  { %3840 = vmatpush3.bf16.msra.mxu0 %v4024_v16 }
 0x971   :  { %3841 = vmatprep.subr.bf16.mxu0 %v4586_v11 }
 0x974   :  { %3842 = vmatpush3.bf16.msra.mxu0 %v4025_v17 }
 0x975   :  { %3843 = vmatprep.subr.bf16.mxu0 %v4586_v11 }
 0x978   :  { %3844 = vmatpush3.bf16.msra.mxu0 %v4026_v48 }
 0x979   :  { %3845 = vmatprep.subr.bf16.mxu0 %v4586_v11 }
 0x97c   :  { %3846 = vmatpush3.bf16.msra.mxu0 %v4027_v24 }
 0x97d   :  { %3847 = vmatprep.subr.bf16.mxu0 %v4586_v11 }
 0x980   :  { %3848 = vmatpush3.bf16.msra.mxu0 %v4028_v22 }
 0x981   :  { %3849 = vmatprep.subr.bf16.mxu0 %v4586_v11 }
 0x984   :  { %3850 = vmatpush3.bf16.msra.mxu0 %v4029_v19 }
 0xa1a   :  { %v3262_v37 = vpop.f32.mrb[88].mxu0  ;;  %v3303_v60 = vpop.f32.mrb[88].mxu1 }
 0xa1b   :  { %v3264_v43 = vpop.f32.mrb[89].mxu0  ;;  %v3305_v63 = vpop.f32.mrb[89].mxu1 }
 0xa1c   :  { %v3266_v33 = vpop.f32.mrb[90].mxu0  ;;  %v3307_v25 = vpop.f32.mrb[90].mxu1 }
 0xa1d   :  { %v3267_v47 = vpop.f32.mrb[91].mxu0  ;;  %v3308_v38 = vpop.f32.mrb[91].mxu1 }
 0xa3a   :  { %v3344_v29 = vpop.f32.mrb[92].mxu0  ;;  %v3385_v52 = vpop.f32.mrb[92].mxu1 }
 0xa3b   :  { %v3345_v0 = vadd.f32 %v3344_v29, %v3262_v37  ;;  %v3386_v26 = vadd.f32 %v3385_v52, %v3303_v60  ;;  %v3346_v53 = vpop.f32.mrb[93].mxu0  ;;  %v3387_v1 = vpop.f32.mrb[93].mxu1 }
 0xa3c   :  { %v3347_v35 = vadd.f32 %v3346_v53, %v3264_v43  ;;  %v3388_v31 = vadd.f32 %v3387_v1, %v3305_v63  ;;  %v3348_v39 = vpop.f32.mrb[94].mxu0  ;;  %v3389_v21 = vpop.f32.mrb[94].mxu1  ;;  %v3817_v53 = vld [vmem:[%s6573_s9] ss:$0 sm:$0xff]  ;;  %s4551_s9 = scalar_lea.vmem %s3654_s5, 32 }
 0xa3d   :  { %v3392_v50 = vadd.f32 %v3345_v0, %v5314_v55  ;;  %v3349_v5 = vpop.f32.mrb[95].mxu0  ;;  %v3390_v10 = vpop.f32.mrb[95].mxu1  ;;  %v3394_v59 = vadd.f32 %v3386_v26, %v7365_v36  ;;  %p4552_p10 = scmp.ne.s32.totalorder %s3654_s5, %s4551_s9  ;;  %p4557_p12 = scmp.lt.s32.totalorder %s4551_s9, %s4551_s9 }
 0xa3e   :  { %v3393_v20 = vadd.f32 %v3347_v35, %v7363_v2  ;;  %v3395_v56 = vadd.f32 %v3388_v31, %v7364_v4  ;;  %v3818_v35 = vld [vmem:[%s6574_s10] ss:$0 sm:$0xff] }
 0xa3f   :  { %v3804_v44 = vmul.f32 -1.442695, %v3392_v50  ;;  %v3819_v50 = vld [vmem:[%s6576_s12] ss:$0 sm:$0xff]  ;;  %p4558_p13 = por %p4557_p12, %p4556_p11 }
 0xa40   :  { %v3805_v62 = vmul.f32 -1.442695, %v3393_v20  ;;  %v3806_v3 = vmul.f32 -1.442695, %v3395_v56 }
 0xa41   :  { %4272 = vpow2.f32 %v3804_v44  ;;  %p4559_p0 = pnand %p4558_p13, %p4552_p10 }
 0xa42   :  { %4274 = vpow2.f32 %v3805_v62 }
 0xa43   :  { %4276 = vpow2.f32 %v3806_v3 }
 0xa44   :  { %4278 = vtanh.f32 %v3394_v59 }
 0xa4b   :  { %v4273_v6 = vpop.eup %4272 }
 0xa4c   :  { %v4275_v45 = vpop.eup %4274  ;;  %v3399_v51 = vadd.f32 1.0, %v4273_v6 }
 0xa4d   :  { %v3405_v42 = vadd.f32 1.0, %v4275_v45  ;;  %v4277_v55 = vpop.eup %4276 }
 0xa4e   :  { %4280 = vrcp.f32 %v3399_v51  ;;  %v4279_v13 = vpop.eup %4278  ;;  %v3412_v58 = vadd.f32 1.0, %v4277_v55 }
 0xa4f   :  { %4282 = vrcp.f32 %v3405_v42 }
 0xa50   :  { %4284 = vrcp.f32 %v3412_v58 }
 0xa58   :  { %v4281_v2 = vpop.eup %4280 }
 0xa59   :  { %v4283_v8 = vpop.eup %4282  ;;  %v3416_v12 = vmul.f32 %v4281_v2, %v4279_v13 }
 0xa5a   :  { %v3415_v14 = vmul.f32 %v4283_v8, %v6452_v41  ;;  %v4285_v36 = vpop.eup %4284  ;;  %v3807_v41 = vld [vmem:[%s6572_s8] ss:$0 sm:$0xff] }
 0xa5c   :  { %v3417_v4 = vadd.f32 %v3416_v12, %v3415_v14 }
 0xa5e   :  { %4286 = vtanh.f32 %v3417_v4 }
 0xa68   :  { %v4287_v30 = vpop.eup %4286 }
 0xa69   :  { %v3419_v40 = vmul.f32 %v4287_v30, %v4285_v36 }
 0xa6b   :  { %v3420_v7 = vpack.c.bf16 %v3419_v40, %v3419_v40 }
 0xa6d   :  { %3852 = vmatmul.mubr.bf16.vlgmr.msra.gmra.mrb[96].mxu0 %v3420_v7 }
 0xb40   :  { %v3526_v46 = vpop.f32.mrb[96].mxu0 }
 0xb41   :  { %v3527_v27 = vadd.f32 %v3807_v41, %v3526_v46  ;;  %v3853_v61 = vpop.f32.mrb[97].mxu0 }
 0xb42   :  { %v3529_v57 = vpop.f32.mrb[98].mxu0 }
 0xb43   :  { %v3532_v23 = vmax.f32 %v3527_v27, 0.0  ;;  %v3854_v15 = vpop.f32.mrb[99].mxu0 }
 0xb45   :  { %v3538_v9 = vmul.f32 %v3816_v54, %v3532_v23 }
 0xb47   :  { %v3540_v28 = vsel %vm3539_vm2, %v3538_v9, 0.0 }
 0xb48   :  { %v3541_v49 = vrot.slane %v3540_v28, 4 }
 0xb4a   :  { %v3542_v16 = vadd.f32 %v3541_v49, %v3540_v28 }
 0xb4c   :  { %v3543_v17 = vrot.slane %v3542_v16, 2 }
 0xb4e   :  { %v3544_v48 = vadd.f32 %v3543_v17, %v3542_v16 }
 0xb50   :  { %v3545_v24 = vrot.slane %v3544_v48, 1 }
 0xb52   :  { %v3546_v22 = vadd.f32 %v3545_v24, %v3544_v48 }
 0xb54   :  { %v3547_v19 = vmul.f32 0.5, %v3546_v22 }
 0xb56   :  { %v3548_v37 = vsub.f32 %v3532_v23, %v3547_v19 }
 0xb58   :  { %v3549_v60 = vmul.f32 %v3816_v54, %v3548_v37 }
 0xb5a   :  { %v3550_v43 = vmul.f32 %v3549_v60, %v3549_v60 }
 0xb5c   :  { %v3551_v63 = vsel %vm3539_vm2, %v3550_v43, 0.0 }
 0xb5d   :  { %v3552_v11 = vrot.slane %v3551_v63, 4 }
 0xb5f   :  { %v3553_v33 = vadd.f32 %v3552_v11, %v3551_v63 }
 0xb61   :  { %v3554_v25 = vrot.slane %v3553_v33, 2 }
 0xb63   :  { %v3555_v47 = vadd.f32 %v3554_v25, %v3553_v33 }
 0xb65   :  { %v3556_v38 = vrot.slane %v3555_v47, 1 }
 0xb67   :  { %v3557_v29 = vadd.f32 %v3556_v38, %v3555_v47 }
 0xb69   :  { %v3558_v52 = vmul.f32 0.5, %v3557_v29 }
 0xb6b   :  { %v3559_v0 = vadd.f32 1e-05, %v3558_v52 }
 0xb6d   :  { %4288 = vrsqrt.f32 %v3559_v0 }
 0xb77   :  { %v4289_v26 = vpop.eup %4288 }
 0xb78   :  { %v3561_v1 = vmul.f32 %v4289_v26, %v3548_v37 }
 0xb7a   :  { %v3569_v31 = vmul.f32 %v3817_v53, %v3561_v1 }
 0xb7c   :  { %v3577_v39 = vadd.f32 %v3818_v35, %v3569_v31 }
 0xb7e   :  { %v3578_v21 = vpack.c.bf16 %v3577_v39, %v3577_v39 }
 0xb80   :  { %3860 = vmatmul.mubr.msk.bf16.vlgmr.msra.gmra.mrb[96].mxu1 %vm3539_vm2, %v3578_v21 }
 0xc53   :  { %v3639_v5 = vpop.f32.mrb[96].mxu1 }
 0xc54   :  { %v3640_v10 = vadd.f32 %v3819_v50, %v3639_v5  ;;  %v3861_v20 = vpop.f32.mrb[97].mxu1 }
 0xc55   :  { %v3642_v44 = vpop.f32.mrb[98].mxu1 }
 0xc56   :  { %v3862_v62 = vpop.f32.mrb[99].mxu1  ;;  %3646 = vst.msk [vmem:[#allocation8] sm:$0x3] %vm3645_vm3, %v3640_v10 }
 0xc57   :  { %4562 = shalt.err (!%p4559_p0)
}
 0xc58   :  { %s4563_s12 = scalar_lea.hbm %s6577_s13, 32 }
 0xc59   :  { %p4564_p1 = scmp.ne.s32.totalorder %s6577_s13, %s4563_s12  ;;  %p4567_p2 = scmp.lt.u32.totalorder %s4563_s12, %s6577_s13 }
 0xc5b   :  { %p4569_p3 = pnand %p4567_p2, %p4564_p1 }
 0xc5d   :  { %4572 = shalt.err (!%p4569_p3)
}
 0xc5e   :  { %3656 = dma.vmem_to_hbm [thread:$0]  %s3654_s5, 32, %s6577_s13, [#allocation4]  }
 0xc5f   :  { %4577 = dma.done.wait [#allocation4], 32  }
 0xc60   :  { %4578 = vsyncadd [#allocation4], 4294967264 }
 0xc61   :  { %3660 = vsyncpa [#allocation3], 1 }
 0xc62   :  { %3661 = vsyncpa [#allocation6], 1 }
 0xc63   :  { %3662 = vsyncpa [#allocation4], 1 }

</bundles_post_ra>
